<compile_context>
chip_gen: v7x
topology: tpu7x:2x2x1
jax: 0.10.0
libtpu: 0.0.40
codegen_flags: <defaults>
</compile_context>

<pallas_src>
import numpy as np
import jax
import jax.numpy as jnp
from jax.experimental import pallas as pl
from jax.experimental.pallas import tpu as pltpu


def _round_up(x, m):
    return (x + m - 1) // m * m


def _pick_tk(kp):
    # Largest K tile (multiple of 128, <= 512) that evenly divides the padded K.
    for cand in (512, 384, 256, 128):
        if kp % cand == 0:
            return cand
    return 128  # unreachable: kp is a multiple of 128


# ------------- fused GEMM + bias + ReLU (tiled, bf16 MXU operands, f32 accumulate) -------------

def _gemm_bias_relu_kernel(a_ref, b_ref, bias_ref, o_ref, acc_ref):
    @pl.when(pl.program_id(2) == 0)
    def _init():
        acc_ref[...] = jnp.zeros_like(acc_ref)

    acc_ref[...] += jnp.dot(a_ref[...], b_ref[...],
                            preferred_element_type=jnp.float32)

    @pl.when(pl.program_id(2) == pl.num_programs(2) - 1)
    def _finalize():
        # Single-pass epilogue on the accumulator tile (bias broadcast only here, not per K step).
        o_ref[...] = jnp.maximum(acc_ref[...] + bias_ref[...], 0.0).astype(o_ref.dtype)


def gemm_bias_relu(a, b_mat, bias, out_dtype):
    """relu(a @ b_mat + bias).  a:(M,K), b_mat:(Kp,N) bf16 (pre-padded), bias:(1,N) f32."""
    M, K = a.shape
    Kp, N = b_mat.shape
    a = a.astype(jnp.bfloat16)
    if Kp > K:                       # pad only the K remainder (zeros match b_mat's zero pad rows)
        a = jnp.pad(a, ((0, 0), (0, Kp - K)))

    tm = min(256, _round_up(M, 16))  # M remainder handled by cdiv grid / masked partial edge block
    tn = N                           # layer widths (64..384) fit a single exact-width lane tile
    tk = _pick_tk(Kp)
    grid = (pl.cdiv(M, tm), pl.cdiv(N, tn), Kp // tk)

    cost = pl.CostEstimate(
        flops=2 * M * N * Kp,
        transcendentals=0,
        bytes_accessed=(a.size * 2 + b_mat.size * 2 + bias.size * 4
                        + M * N * np.dtype(out_dtype).itemsize),
    )
    return pl.pallas_call(
        _gemm_bias_relu_kernel,
        out_shape=jax.ShapeDtypeStruct((M, N), out_dtype),
        grid=grid,
        in_specs=[
            pl.BlockSpec((tm, tk), lambda i, j, k: (i, k)),
            pl.BlockSpec((tk, tn), lambda i, j, k: (k, j)),
            pl.BlockSpec((1, tn), lambda i, j, k: (0, j)),
        ],
        out_specs=pl.BlockSpec((tm, tn), lambda i, j, k: (i, j)),
        scratch_shapes=[pltpu.VMEM((tm, tn), jnp.float32)],
        compiler_params=pltpu.CompilerParams(
            dimension_semantics=("parallel", "parallel", "arbitrary"),
            vmem_limit_bytes=32 * 1024 * 1024,
        ),
        cost_estimate=cost,
    )(a, b_mat, bias)


# ------------- MaxPool2d(3, 2): stride-2 positions only, separable 3-tap max -------------

def _maxpool3x3s2_kernel(x_ref, o_ref):
    # One output row per grid step; the whole image block stays resident across rows.
    i = pl.program_id(1)
    ow = o_ref.shape[2]
    rows = x_ref[:, pl.ds(2 * i, 3), :, :]                                  # (1, 3, W, C)
    # H-direction 3-tap max (separable, elementwise).
    mh = jnp.maximum(jnp.maximum(rows[:, 0:1], rows[:, 1:2]), rows[:, 2:3])  # (1, 1, W, C)
    # W-direction 3-tap max, computed only at the stride-2 output columns.
    cols = []
    for j in range(ow):                                                      # static unroll
        w = mh[:, :, 2 * j:2 * j + 3, :]
        cols.append(jnp.maximum(jnp.maximum(w[:, :, 0:1], w[:, :, 1:2]), w[:, :, 2:3]))
    o_ref[...] = jnp.concatenate(cols, axis=2)                               # (1, 1, OW, C)


def maxpool3x3s2(x_nhwc):
    """MaxPool2d(kernel=3, stride=2), VALID — matches nn.MaxPool2d(3, 2)."""
    N, H, W, C = x_nhwc.shape
    OH = (H - 3) // 2 + 1
    OW = (W - 3) // 2 + 1
    return pl.pallas_call(
        _maxpool3x3s2_kernel,
        out_shape=jax.ShapeDtypeStruct((N, OH, OW, C), x_nhwc.dtype),
        grid=(N, OH),
        in_specs=[pl.BlockSpec((1, H, W, C), lambda n, i: (n, 0, 0, 0))],  # resident per image
        out_specs=pl.BlockSpec((1, 1, OW, C), lambda n, i: (n, i, 0, 0)),
        compiler_params=pltpu.CompilerParams(
            dimension_semantics=("parallel", "parallel")),
    )(x_nhwc)


# ------------- conv via im2col (bf16 glue) + fused Pallas GEMM -------------

def _im2col(x_nhwc, k, stride, pad):
    N, H, W, C = x_nhwc.shape
    xp = jnp.pad(x_nhwc, ((0, 0), (pad, pad), (pad, pad), (0, 0)))
    OH = (H + 2 * pad - k) // stride + 1
    OW = (W + 2 * pad - k) // stride + 1
    cols = []
    for di in range(k):
        for dj in range(k):
            cols.append(xp[:, di:di + (OH - 1) * stride + 1:stride,
                           dj:dj + (OW - 1) * stride + 1:stride, :])
    patches = jnp.stack(cols, axis=3)                 # (N, OH, OW, k*k, C)
    return patches.reshape(N * OH * OW, k * k * C), OH, OW


def conv2d_relu(x_nhwc, w_mat, bias, k, stride, pad, out_dtype):
    # NOTE: the k=3 layers could skip im2col entirely (in-VMEM shift-and-accumulate); the
    # patches are at least carried in bf16 to halve the inflated glue traffic.
    N = x_nhwc.shape[0]
    patches, OH, OW = _im2col(x_nhwc, k, stride, pad)
    y = gemm_bias_relu(patches, w_mat, bias, out_dtype)
    return y.reshape(N, OH, OW, w_mat.shape[1])


# ------------- AlexNetConv4 forward -------------

_CONV_CFG = [(11, 4, 2), (5, 1, 2), (3, 1, 1), (3, 1, 1)]   # (kernel, stride, pad) per conv
_POOL_AFTER = (0, 1)                                        # MaxPool(3,2) after conv1, conv2


def init_params(key):
    # TODO(synk): torchvision's pretrained AlexNet weights cannot be loaded here (no file /
    # network access); deterministic synthetic weights with identical shapes are used instead.
    shapes = [(64, 3, 11, 11), (192, 64, 5, 5), (384, 192, 3, 3), (256, 384, 3, 3)]
    params = []
    for i, s in enumerate(shapes):
        kw, kb = jax.random.split(jax.random.fold_in(key, i))
        fan_in = s[1] * s[2] * s[3]
        w = jax.random.normal(kw, s, jnp.float32) / np.sqrt(fan_in).astype(np.float32)
        b = 0.01 * jax.random.normal(kb, (s[0],), jnp.float32)
        params.append((w, b))
    return params


def prepare_params(params):
    """One-time prep: PyTorch OIHW weights -> K-padded bf16 GEMM matrices + f32 bias rows."""
    prepped = []
    for w, b in params:
        OC, IC, KH, KW = w.shape
        K = KH * KW * IC
        w_mat = jnp.transpose(w, (2, 3, 1, 0)).reshape(K, OC)   # matches im2col tap ordering
        Kp = _round_up(K, 128)
        w_mat = jnp.pad(w_mat, ((0, Kp - K), (0, 0))).astype(jnp.bfloat16)
        prepped.append((w_mat, b.reshape(1, OC).astype(jnp.float32)))
    return prepped


def alexnet_conv4_forward(x_nchw, prepped):
    y = jnp.transpose(x_nchw, (0, 2, 3, 1)).astype(jnp.bfloat16)    # NCHW -> NHWC, bf16
    last = len(prepped) - 1
    for i, ((w_mat, bias), (k, s, p)) in enumerate(zip(prepped, _CONV_CFG)):
        out_dtype = jnp.float32 if i == last else jnp.bfloat16
        y = conv2d_relu(y, w_mat, bias, k, s, p, out_dtype)
        if i in _POOL_AFTER:
            y = maxpool3x3s2(y)
    return jnp.transpose(y, (0, 3, 1, 2)).astype(jnp.float32)       # NHWC -> NCHW


def _reference_forward(x_nchw, params):
    # Pure-XLA reference with the same per-layer bf16 operand quantization (f32 accumulate),
    # so the comparison only sees accumulation-order differences.
    y = jnp.transpose(x_nchw, (0, 2, 3, 1)).astype(jnp.bfloat16)
    last = len(params) - 1
    for i, ((w, b), (_k, s, p)) in enumerate(zip(params, _CONV_CFG)):
        w_hwio = jnp.transpose(w, (2, 3, 1, 0)).astype(jnp.bfloat16)
        y = jax.lax.conv_general_dilated(
            y, w_hwio, (s, s), [(p, p), (p, p)],
            dimension_numbers=("NHWC", "HWIO", "NHWC"),
            preferred_element_type=jnp.float32)
        y = jnp.maximum(y + b, 0.0)
        y = y.astype(jnp.float32 if i == last else jnp.bfloat16)
        if i in _POOL_AFTER:
            y = jax.lax.reduce_window(y, jnp.asarray(-jnp.inf, dtype=y.dtype), jax.lax.max,
                                      (1, 3, 3, 1), (1, 2, 2, 1), "VALID")
    return jnp.transpose(y, (0, 3, 1, 2)).astype(jnp.float32)


if __name__ == "__main__":
    key = jax.random.PRNGKey(0)
    k_x, k_p = jax.random.split(key)
    # Small NCHW input (batch=2, 3 channels as AlexNet requires); 63x63 keeps every layer's
    # output spatially valid: 63 -> 15 -> 7 -> 7 -> 3 -> 3 -> 3.
    x = jax.random.normal(k_x, (2, 3, 63, 63), jnp.float32)
    params = init_params(k_p)
    prepped = prepare_params(params)

    fwd = jax.jit(alexnet_conv4_forward)
    out = jax.block_until_ready(fwd(x, prepped))
    assert out.shape == (2, 256, 3, 3), out.shape

    ref = jax.block_until_ready(jax.jit(_reference_forward)(x, params))
    # Both paths use bf16 MXU operands with f32 accumulation; residual difference is
    # accumulation order plus occasional bf16 re-quantization flips.
    np.testing.assert_allclose(np.asarray(out), np.asarray(ref), rtol=2e-2, atol=2e-2)
    print("KERNEL_OK")
</pallas_src>

<mosaic_0001>
module attributes {stable_mosaic.version = 11 : i64} {
  func.func @_gemm_bias_relu_kernel(%arg0: i32, %arg1: i32, %arg2: i32, %arg3: memref<256x384xbf16, #tpu.memory_space<vmem>>, %arg4: memref<384x64xbf16, #tpu.memory_space<vmem>>, %arg5: memref<1x64xf32, #tpu.memory_space<vmem>>, %arg6: memref<256x64xbf16, #tpu.memory_space<vmem>>, %arg7: memref<256x64xf32, #tpu.memory_space<vmem>>) attributes {dimension_semantics = [#tpu.dimension_semantics<parallel>, #tpu.dimension_semantics<parallel>, #tpu.dimension_semantics<arbitrary>], iteration_bounds = array<i64: 2, 1, 1>, scalar_prefetch = 0 : i64, scratch_operands = 1 : i64, tpu.core_type = #tpu.core_type<tc>, window_params = [{transform_indices = @transform_0, window_bounds = array<i64: 256, 384>}, {transform_indices = @transform_1, window_bounds = array<i64: 384, 64>}, {transform_indices = @transform_2, window_bounds = array<i64: 1, 64>}, {transform_indices = @transform_3, window_bounds = array<i64: 256, 64>}]} {
    %c0_i32 = arith.constant 0 : i32
    %0 = arith.cmpi eq, %arg2, %c0_i32 : i32
    %1 = arith.extui %0 : i1 to i32
    %c0_i32_0 = arith.constant 0 : i32
    %2 = arith.cmpi ne, %1, %c0_i32_0 : i32
    scf.if %2 {
      %cst_10 = arith.constant 0.000000e+00 : f32
      %12 = vector.broadcast %cst_10 : f32 to vector<256x64xf32>
      %c0_11 = arith.constant 0 : index
      %c0_12 = arith.constant 0 : index
      %13 = vector.load %arg7[%c0_11, %c0_12] : memref<256x64xf32, #tpu.memory_space<vmem>>, vector<256x64xf32>
      tpu.vector_store %arg7[%c0_11, %c0_12], %12 {strides = array<i32>} : memref<256x64xf32, #tpu.memory_space<vmem>>, vector<256x64xf32>,
    } else {
    }
    %c0 = arith.constant 0 : index
    %c0_1 = arith.constant 0 : index
    %3 = vector.load %arg7[%c0, %c0_1] : memref<256x64xf32, #tpu.memory_space<vmem>>, vector<256x64xf32>
    %c0_2 = arith.constant 0 : index
    %c0_3 = arith.constant 0 : index
    %4 = vector.load %arg3[%c0_2, %c0_3] : memref<256x384xbf16, #tpu.memory_space<vmem>>, vector<256x384xbf16>
    %c0_4 = arith.constant 0 : index
    %c0_5 = arith.constant 0 : index
    %5 = vector.load %arg4[%c0_4, %c0_5] : memref<384x64xbf16, #tpu.memory_space<vmem>>, vector<384x64xbf16>
    %cst = arith.constant dense<0.000000e+00> : vector<256x64xf32>
    %6 = tpu.matmul %4, %5, %cst {dimension_numbers = #tpu.dot_dimension_numbers<[1], [0], [0], [1], [0, 0, 1, 1], [], []>} : vector<256x384xbf16>, vector<384x64xbf16>, vector<256x64xf32> -> vector<256x64xf32>
    %7 = arith.addf %3, %6 : vector<256x64xf32>
    %c0_6 = arith.constant 0 : index
    %c0_7 = arith.constant 0 : index
    %8 = vector.load %arg7[%c0_6, %c0_7] : memref<256x64xf32, #tpu.memory_space<vmem>>, vector<256x64xf32>
    tpu.vector_store %arg7[%c0_6, %c0_7], %7 {strides = array<i32>} : memref<256x64xf32, #tpu.memory_space<vmem>>, vector<256x64xf32>,
    %c0_i32_8 = arith.constant 0 : i32
    %9 = arith.cmpi eq, %arg2, %c0_i32_8 : i32
    %10 = arith.extui %9 : i1 to i32
    %c0_i32_9 = arith.constant 0 : i32
    %11 = arith.cmpi ne, %10, %c0_i32_9 : i32
    scf.if %11 {
      %c0_10 = arith.constant 0 : index
      %c0_11 = arith.constant 0 : index
      %12 = vector.load %arg7[%c0_10, %c0_11] : memref<256x64xf32, #tpu.memory_space<vmem>>, vector<256x64xf32>
      %c0_12 = arith.constant 0 : index
      %c0_13 = arith.constant 0 : index
      %13 = vector.load %arg5[%c0_12, %c0_13] : memref<1x64xf32, #tpu.memory_space<vmem>>, vector<1x64xf32>
      %14 = vector.broadcast %13 : vector<1x64xf32> to vector<256x64xf32>
      %15 = arith.addf %12, %14 : vector<256x64xf32>
      %cst_14 = arith.constant 0.000000e+00 : f32
      %16 = vector.broadcast %cst_14 : f32 to vector<256x64xf32>
      %17 = arith.maximumf %15, %16 : vector<256x64xf32>
      %18 = arith.truncf %17 : vector<256x64xf32> to vector<256x64xbf16>
      %c0_15 = arith.constant 0 : index
      %c0_16 = arith.constant 0 : index
      %19 = vector.load %arg6[%c0_15, %c0_16] : memref<256x64xbf16, #tpu.memory_space<vmem>>, vector<256x64xbf16>
      tpu.vector_store %arg6[%c0_15, %c0_16], %18 {strides = array<i32>} : memref<256x64xbf16, #tpu.memory_space<vmem>>, vector<256x64xbf16>,
    } else {
    }
    return
  }
  func.func @transform_0(%arg0: i32, %arg1: i32, %arg2: i32) -> (i32, i32) {
    %c0_i32 = arith.constant 0 : i32
    return %arg0, %arg2 : i32, i32
  }
  func.func @transform_1(%arg0: i32, %arg1: i32, %arg2: i32) -> (i32, i32) {
    %c0_i32 = arith.constant 0 : i32
    return %arg2, %arg1 : i32, i32
  }
  func.func @transform_2(%arg0: i32, %arg1: i32, %arg2: i32) -> (i32, i32) {
    %c0_i32 = arith.constant 0 : i32
    %c0_i32_0 = arith.constant 0 : i32
    return %c0_i32, %arg1 : i32, i32
  }
  func.func @transform_3(%arg0: i32, %arg1: i32, %arg2: i32) -> (i32, i32) {
    %c0_i32 = arith.constant 0 : i32
    return %arg0, %arg1 : i32, i32
  }
}

module attributes {stable_mosaic.version = 11 : i64} {
  func.func @_maxpool3x3s2_kernel(%arg0: i32, %arg1: i32, %arg2: memref<1x15x15x64xbf16, #tpu.memory_space<vmem>>, %arg3: memref<1x1x7x64xbf16, #tpu.memory_space<vmem>>) attributes {dimension_semantics = [#tpu.dimension_semantics<parallel>, #tpu.dimension_semantics<parallel>], iteration_bounds = array<i64: 2, 7>, scalar_prefetch = 0 : i64, scratch_operands = 0 : i64, tpu.core_type = #tpu.core_type<tc>, window_params = [{transform_indices = @transform_0, window_bounds = array<i64: 1, 15, 15, 64>}, {transform_indices = @transform_1, window_bounds = array<i64: 1, 1, 7, 64>}]} {
    %c2_i32 = arith.constant 2 : i32
    %0 = arith.muli %c2_i32, %arg1 : i32
    %c0 = arith.constant 0 : index
    %1 = arith.index_cast %0 : i32 to index
    %c0_0 = arith.constant 0 : index
    %c0_1 = arith.constant 0 : index
    %2 = vector.load %arg2[%c0, %1, %c0_0, %c0_1] : memref<1x15x15x64xbf16, #tpu.memory_space<vmem>>, vector<1x3x15x64xbf16>
    %3 = vector.extract_strided_slice %2 {offsets = [0, 0, 0, 0], sizes = [1, 1, 15, 64], strides = [1, 1, 1, 1]} : vector<1x3x15x64xbf16> to vector<1x1x15x64xbf16>
    %4 = vector.extract_strided_slice %2 {offsets = [0, 1, 0, 0], sizes = [1, 1, 15, 64], strides = [1, 1, 1, 1]} : vector<1x3x15x64xbf16> to vector<1x1x15x64xbf16>
    %5 = arith.maximumf %3, %4 : vector<1x1x15x64xbf16>
    %6 = vector.extract_strided_slice %2 {offsets = [0, 2, 0, 0], sizes = [1, 1, 15, 64], strides = [1, 1, 1, 1]} : vector<1x3x15x64xbf16> to vector<1x1x15x64xbf16>
    %7 = arith.maximumf %5, %6 : vector<1x1x15x64xbf16>
    %8 = vector.extract_strided_slice %7 {offsets = [0, 0, 0, 0], sizes = [1, 1, 3, 64], strides = [1, 1, 1, 1]} : vector<1x1x15x64xbf16> to vector<1x1x3x64xbf16>
    %9 = vector.extract_strided_slice %8 {offsets = [0, 0, 0, 0], sizes = [1, 1, 1, 64], strides = [1, 1, 1, 1]} : vector<1x1x3x64xbf16> to vector<1x1x1x64xbf16>
    %10 = vector.extract_strided_slice %8 {offsets = [0, 0, 1, 0], sizes = [1, 1, 1, 64], strides = [1, 1, 1, 1]} : vector<1x1x3x64xbf16> to vector<1x1x1x64xbf16>
    %11 = arith.maximumf %9, %10 : vector<1x1x1x64xbf16>
    %12 = vector.extract_strided_slice %8 {offsets = [0, 0, 2, 0], sizes = [1, 1, 1, 64], strides = [1, 1, 1, 1]} : vector<1x1x3x64xbf16> to vector<1x1x1x64xbf16>
    %13 = arith.maximumf %11, %12 : vector<1x1x1x64xbf16>
    %14 = vector.extract_strided_slice %7 {offsets = [0, 0, 2, 0], sizes = [1, 1, 3, 64], strides = [1, 1, 1, 1]} : vector<1x1x15x64xbf16> to vector<1x1x3x64xbf16>
    %15 = vector.extract_strided_slice %14 {offsets = [0, 0, 0, 0], sizes = [1, 1, 1, 64], strides = [1, 1, 1, 1]} : vector<1x1x3x64xbf16> to vector<1x1x1x64xbf16>
    %16 = vector.extract_strided_slice %14 {offsets = [0, 0, 1, 0], sizes = [1, 1, 1, 64], strides = [1, 1, 1, 1]} : vector<1x1x3x64xbf16> to vector<1x1x1x64xbf16>
    %17 = arith.maximumf %15, %16 : vector<1x1x1x64xbf16>
    %18 = vector.extract_strided_slice %14 {offsets = [0, 0, 2, 0], sizes = [1, 1, 1, 64], strides = [1, 1, 1, 1]} : vector<1x1x3x64xbf16> to vector<1x1x1x64xbf16>
    %19 = arith.maximumf %17, %18 : vector<1x1x1x64xbf16>
    %20 = vector.extract_strided_slice %7 {offsets = [0, 0, 4, 0], sizes = [1, 1, 3, 64], strides = [1, 1, 1, 1]} : vector<1x1x15x64xbf16> to vector<1x1x3x64xbf16>
    %21 = vector.extract_strided_slice %20 {offsets = [0, 0, 0, 0], sizes = [1, 1, 1, 64], strides = [1, 1, 1, 1]} : vector<1x1x3x64xbf16> to vector<1x1x1x64xbf16>
    %22 = vector.extract_strided_slice %20 {offsets = [0, 0, 1, 0], sizes = [1, 1, 1, 64], strides = [1, 1, 1, 1]} : vector<1x1x3x64xbf16> to vector<1x1x1x64xbf16>
    %23 = arith.maximumf %21, %22 : vector<1x1x1x64xbf16>
    %24 = vector.extract_strided_slice %20 {offsets = [0, 0, 2, 0], sizes = [1, 1, 1, 64], strides = [1, 1, 1, 1]} : vector<1x1x3x64xbf16> to vector<1x1x1x64xbf16>
    %25 = arith.maximumf %23, %24 : vector<1x1x1x64xbf16>
    %26 = vector.extract_strided_slice %7 {offsets = [0, 0, 6, 0], sizes = [1, 1, 3, 64], strides = [1, 1, 1, 1]} : vector<1x1x15x64xbf16> to vector<1x1x3x64xbf16>
    %27 = vector.extract_strided_slice %26 {offsets = [0, 0, 0, 0], sizes = [1, 1, 1, 64], strides = [1, 1, 1, 1]} : vector<1x1x3x64xbf16> to vector<1x1x1x64xbf16>
    %28 = vector.extract_strided_slice %26 {offsets = [0, 0, 1, 0], sizes = [1, 1, 1, 64], strides = [1, 1, 1, 1]} : vector<1x1x3x64xbf16> to vector<1x1x1x64xbf16>
    %29 = arith.maximumf %27, %28 : vector<1x1x1x64xbf16>
    %30 = vector.extract_strided_slice %26 {offsets = [0, 0, 2, 0], sizes = [1, 1, 1, 64], strides = [1, 1, 1, 1]} : vector<1x1x3x64xbf16> to vector<1x1x1x64xbf16>
    %31 = arith.maximumf %29, %30 : vector<1x1x1x64xbf16>
    %32 = vector.extract_strided_slice %7 {offsets = [0, 0, 8, 0], sizes = [1, 1, 3, 64], strides = [1, 1, 1, 1]} : vector<1x1x15x64xbf16> to vector<1x1x3x64xbf16>
    %33 = vector.extract_strided_slice %32 {offsets = [0, 0, 0, 0], sizes = [1, 1, 1, 64], strides = [1, 1, 1, 1]} : vector<1x1x3x64xbf16> to vector<1x1x1x64xbf16>
    %34 = vector.extract_strided_slice %32 {offsets = [0, 0, 1, 0], sizes = [1, 1, 1, 64], strides = [1, 1, 1, 1]} : vector<1x1x3x64xbf16> to vector<1x1x1x64xbf16>
    %35 = arith.maximumf %33, %34 : vector<1x1x1x64xbf16>
    %36 = vector.extract_strided_slice %32 {offsets = [0, 0, 2, 0], sizes = [1, 1, 1, 64], strides = [1, 1, 1, 1]} : vector<1x1x3x64xbf16> to vector<1x1x1x64xbf16>
    %37 = arith.maximumf %35, %36 : vector<1x1x1x64xbf16>
    %38 = vector.extract_strided_slice %7 {offsets = [0, 0, 10, 0], sizes = [1, 1, 3, 64], strides = [1, 1, 1, 1]} : vector<1x1x15x64xbf16> to vector<1x1x3x64xbf16>
    %39 = vector.extract_strided_slice %38 {offsets = [0, 0, 0, 0], sizes = [1, 1, 1, 64], strides = [1, 1, 1, 1]} : vector<1x1x3x64xbf16> to vector<1x1x1x64xbf16>
    %40 = vector.extract_strided_slice %38 {offsets = [0, 0, 1, 0], sizes = [1, 1, 1, 64], strides = [1, 1, 1, 1]} : vector<1x1x3x64xbf16> to vector<1x1x1x64xbf16>
    %41 = arith.maximumf %39, %40 : vector<1x1x1x64xbf16>
    %42 = vector.extract_strided_slice %38 {offsets = [0, 0, 2, 0], sizes = [1, 1, 1, 64], strides = [1, 1, 1, 1]} : vector<1x1x3x64xbf16> to vector<1x1x1x64xbf16>
    %43 = arith.maximumf %41, %42 : vector<1x1x1x64xbf16>
    %44 = vector.extract_strided_slice %7 {offsets = [0, 0, 12, 0], sizes = [1, 1, 3, 64], strides = [1, 1, 1, 1]} : vector<1x1x15x64xbf16> to vector<1x1x3x64xbf16>
    %45 = vector.extract_strided_slice %44 {offsets = [0, 0, 0, 0], sizes = [1, 1, 1, 64], strides = [1, 1, 1, 1]} : vector<1x1x3x64xbf16> to vector<1x1x1x64xbf16>
    %46 = vector.extract_strided_slice %44 {offsets = [0, 0, 1, 0], sizes = [1, 1, 1, 64], strides = [1, 1, 1, 1]} : vector<1x1x3x64xbf16> to vector<1x1x1x64xbf16>
    %47 = arith.maximumf %45, %46 : vector<1x1x1x64xbf16>
    %48 = vector.extract_strided_slice %44 {offsets = [0, 0, 2, 0], sizes = [1, 1, 1, 64], strides = [1, 1, 1, 1]} : vector<1x1x3x64xbf16> to vector<1x1x1x64xbf16>
    %49 = arith.maximumf %47, %48 : vector<1x1x1x64xbf16>
    %50 = tpu.concatenate %13, %19, %25, %31, %37, %43, %49 in 2 : vector<1x1x1x64xbf16>, vector<1x1x1x64xbf16>, vector<1x1x1x64xbf16>, vector<1x1x1x64xbf16>, vector<1x1x1x64xbf16>, vector<1x1x1x64xbf16>, vector<1x1x1x64xbf16> -> vector<1x1x7x64xbf16>
    %c0_2 = arith.constant 0 : index
    %c0_3 = arith.constant 0 : index
    %c0_4 = arith.constant 0 : index
    %c0_5 = arith.constant 0 : index
    %51 = vector.load %arg3[%c0_2, %c0_3, %c0_4, %c0_5] : memref<1x1x7x64xbf16, #tpu.memory_space<vmem>>, vector<1x1x7x64xbf16>
    tpu.vector_store %arg3[%c0_2, %c0_3, %c0_4, %c0_5], %50 {strides = array<i32>} : memref<1x1x7x64xbf16, #tpu.memory_space<vmem>>, vector<1x1x7x64xbf16>,
    return
  }
  func.func @transform_0(%arg0: i32, %arg1: i32) -> (i32, i32, i32, i32) {
    %c0_i32 = arith.constant 0 : i32
    %c0_i32_0 = arith.constant 0 : i32
    %c0_i32_1 = arith.constant 0 : i32
    %c0_i32_2 = arith.constant 0 : i32
    return %arg0, %c0_i32, %c0_i32_0, %c0_i32_1 : i32, i32, i32, i32
  }
  func.func @transform_1(%arg0: i32, %arg1: i32) -> (i32, i32, i32, i32) {
    %c0_i32 = arith.constant 0 : i32
    %c0_i32_0 = arith.constant 0 : i32
    %c0_i32_1 = arith.constant 0 : i32
    return %arg0, %arg1, %c0_i32, %c0_i32_0 : i32, i32, i32, i32
  }
}

module attributes {stable_mosaic.version = 11 : i64} {
  func.func @_gemm_bias_relu_kernel(%arg0: i32, %arg1: i32, %arg2: i32, %arg3: memref<112x128xbf16, #tpu.memory_space<vmem>>, %arg4: memref<128x192xbf16, #tpu.memory_space<vmem>>, %arg5: memref<1x192xf32, #tpu.memory_space<vmem>>, %arg6: memref<112x192xbf16, #tpu.memory_space<vmem>>, %arg7: memref<112x192xf32, #tpu.memory_space<vmem>>) attributes {dimension_semantics = [#tpu.dimension_semantics<parallel>, #tpu.dimension_semantics<parallel>, #tpu.dimension_semantics<arbitrary>], iteration_bounds = array<i64: 1, 1, 13>, scalar_prefetch = 0 : i64, scratch_operands = 1 : i64, tpu.core_type = #tpu.core_type<tc>, window_params = [{transform_indices = @transform_0, window_bounds = array<i64: 112, 128>}, {transform_indices = @transform_1, window_bounds = array<i64: 128, 192>}, {transform_indices = @transform_2, window_bounds = array<i64: 1, 192>}, {transform_indices = @transform_3, window_bounds = array<i64: 112, 192>}]} {
    %c0_i32 = arith.constant 0 : i32
    %0 = arith.cmpi eq, %arg2, %c0_i32 : i32
    %1 = arith.extui %0 : i1 to i32
    %c0_i32_0 = arith.constant 0 : i32
    %2 = arith.cmpi ne, %1, %c0_i32_0 : i32
    scf.if %2 {
      %cst_9 = arith.constant 0.000000e+00 : f32
      %12 = vector.broadcast %cst_9 : f32 to vector<112x192xf32>
      %c0_10 = arith.constant 0 : index
      %c0_11 = arith.constant 0 : index
      %13 = vector.load %arg7[%c0_10, %c0_11] : memref<112x192xf32, #tpu.memory_space<vmem>>, vector<112x192xf32>
      tpu.vector_store %arg7[%c0_10, %c0_11], %12 {strides = array<i32>} : memref<112x192xf32, #tpu.memory_space<vmem>>, vector<112x192xf32>,
    } else {
    }
    %c0 = arith.constant 0 : index
    %c0_1 = arith.constant 0 : index
    %3 = vector.load %arg7[%c0, %c0_1] : memref<112x192xf32, #tpu.memory_space<vmem>>, vector<112x192xf32>
    %c0_2 = arith.constant 0 : index
    %c0_3 = arith.constant 0 : index
    %4 = vector.load %arg3[%c0_2, %c0_3] : memref<112x128xbf16, #tpu.memory_space<vmem>>, vector<112x128xbf16>
    %c0_4 = arith.constant 0 : index
    %c0_5 = arith.constant 0 : index
    %5 = vector.load %arg4[%c0_4, %c0_5] : memref<128x192xbf16, #tpu.memory_space<vmem>>, vector<128x192xbf16>
    %cst = arith.constant dense<0.000000e+00> : vector<112x192xf32>
    %6 = tpu.matmul %4, %5, %cst {dimension_numbers = #tpu.dot_dimension_numbers<[1], [0], [0], [1], [0, 0, 1, 1], [], []>} : vector<112x128xbf16>, vector<128x192xbf16>, vector<112x192xf32> -> vector<112x192xf32>
    %7 = arith.addf %3, %6 : vector<112x192xf32>
    %c0_6 = arith.constant 0 : index
    %c0_7 = arith.constant 0 : index
    %8 = vector.load %arg7[%c0_6, %c0_7] : memref<112x192xf32, #tpu.memory_space<vmem>>, vector<112x192xf32>
    tpu.vector_store %arg7[%c0_6, %c0_7], %7 {strides = array<i32>} : memref<112x192xf32, #tpu.memory_space<vmem>>, vector<112x192xf32>,
    %c12_i32 = arith.constant 12 : i32
    %9 = arith.cmpi eq, %arg2, %c12_i32 : i32
    %10 = arith.extui %9 : i1 to i32
    %c0_i32_8 = arith.constant 0 : i32
    %11 = arith.cmpi ne, %10, %c0_i32_8 : i32
    scf.if %11 {
      %c0_9 = arith.constant 0 : index
      %c0_10 = arith.constant 0 : index
      %12 = vector.load %arg7[%c0_9, %c0_10] : memref<112x192xf32, #tpu.memory_space<vmem>>, vector<112x192xf32>
      %c0_11 = arith.constant 0 : index
      %c0_12 = arith.constant 0 : index
      %13 = vector.load %arg5[%c0_11, %c0_12] : memref<1x192xf32, #tpu.memory_space<vmem>>, vector<1x192xf32>
      %14 = vector.broadcast %13 : vector<1x192xf32> to vector<112x192xf32>
      %15 = arith.addf %12, %14 : vector<112x192xf32>
      %cst_13 = arith.constant 0.000000e+00 : f32
      %16 = vector.broadcast %cst_13 : f32 to vector<112x192xf32>
      %17 = arith.maximumf %15, %16 : vector<112x192xf32>
      %18 = arith.truncf %17 : vector<112x192xf32> to vector<112x192xbf16>
      %c0_14 = arith.constant 0 : index
      %c0_15 = arith.constant 0 : index
      %19 = vector.load %arg6[%c0_14, %c0_15] : memref<112x192xbf16, #tpu.memory_space<vmem>>, vector<112x192xbf16>
      tpu.vector_store %arg6[%c0_14, %c0_15], %18 {strides = array<i32>} : memref<112x192xbf16, #tpu.memory_space<vmem>>, vector<112x192xbf16>,
    } else {
    }
    return
  }
  func.func @transform_0(%arg0: i32, %arg1: i32, %arg2: i32) -> (i32, i32) {
    %c0_i32 = arith.constant 0 : i32
    return %arg0, %arg2 : i32, i32
  }
  func.func @transform_1(%arg0: i32, %arg1: i32, %arg2: i32) -> (i32, i32) {
    %c0_i32 = arith.constant 0 : i32
    return %arg2, %arg1 : i32, i32
  }
  func.func @transform_2(%arg0: i32, %arg1: i32, %arg2: i32) -> (i32, i32) {
    %c0_i32 = arith.constant 0 : i32
    %c0_i32_0 = arith.constant 0 : i32
    return %c0_i32, %arg1 : i32, i32
  }
  func.func @transform_3(%arg0: i32, %arg1: i32, %arg2: i32) -> (i32, i32) {
    %c0_i32 = arith.constant 0 : i32
    return %arg0, %arg1 : i32, i32
  }
}

module attributes {stable_mosaic.version = 11 : i64} {
  func.func @_maxpool3x3s2_kernel(%arg0: i32, %arg1: i32, %arg2: memref<1x7x7x192xbf16, #tpu.memory_space<vmem>>, %arg3: memref<1x1x3x192xbf16, #tpu.memory_space<vmem>>) attributes {dimension_semantics = [#tpu.dimension_semantics<parallel>, #tpu.dimension_semantics<parallel>], iteration_bounds = array<i64: 2, 3>, scalar_prefetch = 0 : i64, scratch_operands = 0 : i64, tpu.core_type = #tpu.core_type<tc>, window_params = [{transform_indices = @transform_0, window_bounds = array<i64: 1, 7, 7, 192>}, {transform_indices = @transform_1, window_bounds = array<i64: 1, 1, 3, 192>}]} {
    %c2_i32 = arith.constant 2 : i32
    %0 = arith.muli %c2_i32, %arg1 : i32
    %c0 = arith.constant 0 : index
    %1 = arith.index_cast %0 : i32 to index
    %c0_0 = arith.constant 0 : index
    %c0_1 = arith.constant 0 : index
    %2 = vector.load %arg2[%c0, %1, %c0_0, %c0_1] : memref<1x7x7x192xbf16, #tpu.memory_space<vmem>>, vector<1x3x7x192xbf16>
    %3 = vector.extract_strided_slice %2 {offsets = [0, 0, 0, 0], sizes = [1, 1, 7, 192], strides = [1, 1, 1, 1]} : vector<1x3x7x192xbf16> to vector<1x1x7x192xbf16>
    %4 = vector.extract_strided_slice %2 {offsets = [0, 1, 0, 0], sizes = [1, 1, 7, 192], strides = [1, 1, 1, 1]} : vector<1x3x7x192xbf16> to vector<1x1x7x192xbf16>
    %5 = arith.maximumf %3, %4 : vector<1x1x7x192xbf16>
    %6 = vector.extract_strided_slice %2 {offsets = [0, 2, 0, 0], sizes = [1, 1, 7, 192], strides = [1, 1, 1, 1]} : vector<1x3x7x192xbf16> to vector<1x1x7x192xbf16>
    %7 = arith.maximumf %5, %6 : vector<1x1x7x192xbf16>
    %8 = vector.extract_strided_slice %7 {offsets = [0, 0, 0, 0], sizes = [1, 1, 3, 192], strides = [1, 1, 1, 1]} : vector<1x1x7x192xbf16> to vector<1x1x3x192xbf16>
    %9 = vector.extract_strided_slice %8 {offsets = [0, 0, 0, 0], sizes = [1, 1, 1, 192], strides = [1, 1, 1, 1]} : vector<1x1x3x192xbf16> to vector<1x1x1x192xbf16>
    %10 = vector.extract_strided_slice %8 {offsets = [0, 0, 1, 0], sizes = [1, 1, 1, 192], strides = [1, 1, 1, 1]} : vector<1x1x3x192xbf16> to vector<1x1x1x192xbf16>
    %11 = arith.maximumf %9, %10 : vector<1x1x1x192xbf16>
    %12 = vector.extract_strided_slice %8 {offsets = [0, 0, 2, 0], sizes = [1, 1, 1, 192], strides = [1, 1, 1, 1]} : vector<1x1x3x192xbf16> to vector<1x1x1x192xbf16>
    %13 = arith.maximumf %11, %12 : vector<1x1x1x192xbf16>
    %14 = vector.extract_strided_slice %7 {offsets = [0, 0, 2, 0], sizes = [1, 1, 3, 192], strides = [1, 1, 1, 1]} : vector<1x1x7x192xbf16> to vector<1x1x3x192xbf16>
    %15 = vector.extract_strided_slice %14 {offsets = [0, 0, 0, 0], sizes = [1, 1, 1, 192], strides = [1, 1, 1, 1]} : vector<1x1x3x192xbf16> to vector<1x1x1x192xbf16>
    %16 = vector.extract_strided_slice %14 {offsets = [0, 0, 1, 0], sizes = [1, 1, 1, 192], strides = [1, 1, 1, 1]} : vector<1x1x3x192xbf16> to vector<1x1x1x192xbf16>
    %17 = arith.maximumf %15, %16 : vector<1x1x1x192xbf16>
    %18 = vector.extract_strided_slice %14 {offsets = [0, 0, 2, 0], sizes = [1, 1, 1, 192], strides = [1, 1, 1, 1]} : vector<1x1x3x192xbf16> to vector<1x1x1x192xbf16>
    %19 = arith.maximumf %17, %18 : vector<1x1x1x192xbf16>
    %20 = vector.extract_strided_slice %7 {offsets = [0, 0, 4, 0], sizes = [1, 1, 3, 192], strides = [1, 1, 1, 1]} : vector<1x1x7x192xbf16> to vector<1x1x3x192xbf16>
    %21 = vector.extract_strided_slice %20 {offsets = [0, 0, 0, 0], sizes = [1, 1, 1, 192], strides = [1, 1, 1, 1]} : vector<1x1x3x192xbf16> to vector<1x1x1x192xbf16>
    %22 = vector.extract_strided_slice %20 {offsets = [0, 0, 1, 0], sizes = [1, 1, 1, 192], strides = [1, 1, 1, 1]} : vector<1x1x3x192xbf16> to vector<1x1x1x192xbf16>
    %23 = arith.maximumf %21, %22 : vector<1x1x1x192xbf16>
    %24 = vector.extract_strided_slice %20 {offsets = [0, 0, 2, 0], sizes = [1, 1, 1, 192], strides = [1, 1, 1, 1]} : vector<1x1x3x192xbf16> to vector<1x1x1x192xbf16>
    %25 = arith.maximumf %23, %24 : vector<1x1x1x192xbf16>
    %26 = tpu.concatenate %13, %19, %25 in 2 : vector<1x1x1x192xbf16>, vector<1x1x1x192xbf16>, vector<1x1x1x192xbf16> -> vector<1x1x3x192xbf16>
    %c0_2 = arith.constant 0 : index
    %c0_3 = arith.constant 0 : index
    %c0_4 = arith.constant 0 : index
    %c0_5 = arith.constant 0 : index
    %27 = vector.load %arg3[%c0_2, %c0_3, %c0_4, %c0_5] : memref<1x1x3x192xbf16, #tpu.memory_space<vmem>>, vector<1x1x3x192xbf16>
    tpu.vector_store %arg3[%c0_2, %c0_3, %c0_4, %c0_5], %26 {strides = array<i32>} : memref<1x1x3x192xbf16, #tpu.memory_space<vmem>>, vector<1x1x3x192xbf16>,
    return
  }
  func.func @transform_0(%arg0: i32, %arg1: i32) -> (i32, i32, i32, i32) {
    %c0_i32 = arith.constant 0 : i32
    %c0_i32_0 = arith.constant 0 : i32
    %c0_i32_1 = arith.constant 0 : i32
    %c0_i32_2 = arith.constant 0 : i32
    return %arg0, %c0_i32, %c0_i32_0, %c0_i32_1 : i32, i32, i32, i32
  }
  func.func @transform_1(%arg0: i32, %arg1: i32) -> (i32, i32, i32, i32) {
    %c0_i32 = arith.constant 0 : i32
    %c0_i32_0 = arith.constant 0 : i32
    %c0_i32_1 = arith.constant 0 : i32
    return %arg0, %arg1, %c0_i32, %c0_i32_0 : i32, i32, i32, i32
  }
}

module attributes {stable_mosaic.version = 11 : i64} {
  func.func @_gemm_bias_relu_kernel(%arg0: i32, %arg1: i32, %arg2: i32, %arg3: memref<32x256xbf16, #tpu.memory_space<vmem>>, %arg4: memref<256x384xbf16, #tpu.memory_space<vmem>>, %arg5: memref<1x384xf32, #tpu.memory_space<vmem>>, %arg6: memref<32x384xbf16, #tpu.memory_space<vmem>>, %arg7: memref<32x384xf32, #tpu.memory_space<vmem>>) attributes {dimension_semantics = [#tpu.dimension_semantics<parallel>, #tpu.dimension_semantics<parallel>, #tpu.dimension_semantics<arbitrary>], iteration_bounds = array<i64: 1, 1, 7>, scalar_prefetch = 0 : i64, scratch_operands = 1 : i64, tpu.core_type = #tpu.core_type<tc>, window_params = [{transform_indices = @transform_0, window_bounds = array<i64: 32, 256>}, {transform_indices = @transform_1, window_bounds = array<i64: 256, 384>}, {transform_indices = @transform_2, window_bounds = array<i64: 1, 384>}, {transform_indices = @transform_3, window_bounds = array<i64: 32, 384>}]} {
    %c0_i32 = arith.constant 0 : i32
    %0 = arith.cmpi eq, %arg2, %c0_i32 : i32
    %1 = arith.extui %0 : i1 to i32
    %c0_i32_0 = arith.constant 0 : i32
    %2 = arith.cmpi ne, %1, %c0_i32_0 : i32
    scf.if %2 {
      %cst_9 = arith.constant 0.000000e+00 : f32
      %12 = vector.broadcast %cst_9 : f32 to vector<32x384xf32>
      %c0_10 = arith.constant 0 : index
      %c0_11 = arith.constant 0 : index
      %13 = vector.load %arg7[%c0_10, %c0_11] : memref<32x384xf32, #tpu.memory_space<vmem>>, vector<32x384xf32>
      tpu.vector_store %arg7[%c0_10, %c0_11], %12 {strides = array<i32>} : memref<32x384xf32, #tpu.memory_space<vmem>>, vector<32x384xf32>,
    } else {
    }
    %c0 = arith.constant 0 : index
    %c0_1 = arith.constant 0 : index
    %3 = vector.load %arg7[%c0, %c0_1] : memref<32x384xf32, #tpu.memory_space<vmem>>, vector<32x384xf32>
    %c0_2 = arith.constant 0 : index
    %c0_3 = arith.constant 0 : index
    %4 = vector.load %arg3[%c0_2, %c0_3] : memref<32x256xbf16, #tpu.memory_space<vmem>>, vector<32x256xbf16>
    %c0_4 = arith.constant 0 : index
    %c0_5 = arith.constant 0 : index
    %5 = vector.load %arg4[%c0_4, %c0_5] : memref<256x384xbf16, #tpu.memory_space<vmem>>, vector<256x384xbf16>
    %cst = arith.constant dense<0.000000e+00> : vector<32x384xf32>
    %6 = tpu.matmul %4, %5, %cst {dimension_numbers = #tpu.dot_dimension_numbers<[1], [0], [0], [1], [0, 0, 1, 1], [], []>} : vector<32x256xbf16>, vector<256x384xbf16>, vector<32x384xf32> -> vector<32x384xf32>
    %7 = arith.addf %3, %6 : vector<32x384xf32>
    %c0_6 = arith.constant 0 : index
    %c0_7 = arith.constant 0 : index
    %8 = vector.load %arg7[%c0_6, %c0_7] : memref<32x384xf32, #tpu.memory_space<vmem>>, vector<32x384xf32>
    tpu.vector_store %arg7[%c0_6, %c0_7], %7 {strides = array<i32>} : memref<32x384xf32, #tpu.memory_space<vmem>>, vector<32x384xf32>,
    %c6_i32 = arith.constant 6 : i32
    %9 = arith.cmpi eq, %arg2, %c6_i32 : i32
    %10 = arith.extui %9 : i1 to i32
    %c0_i32_8 = arith.constant 0 : i32
    %11 = arith.cmpi ne, %10, %c0_i32_8 : i32
    scf.if %11 {
      %c0_9 = arith.constant 0 : index
      %c0_10 = arith.constant 0 : index
      %12 = vector.load %arg7[%c0_9, %c0_10] : memref<32x384xf32, #tpu.memory_space<vmem>>, vector<32x384xf32>
      %c0_11 = arith.constant 0 : index
      %c0_12 = arith.constant 0 : index
      %13 = vector.load %arg5[%c0_11, %c0_12] : memref<1x384xf32, #tpu.memory_space<vmem>>, vector<1x384xf32>
      %14 = vector.broadcast %13 : vector<1x384xf32> to vector<32x384xf32>
      %15 = arith.addf %12, %14 : vector<32x384xf32>
      %cst_13 = arith.constant 0.000000e+00 : f32
      %16 = vector.broadcast %cst_13 : f32 to vector<32x384xf32>
      %17 = arith.maximumf %15, %16 : vector<32x384xf32>
      %18 = arith.truncf %17 : vector<32x384xf32> to vector<32x384xbf16>
      %c0_14 = arith.constant 0 : index
      %c0_15 = arith.constant 0 : index
      %19 = vector.load %arg6[%c0_14, %c0_15] : memref<32x384xbf16, #tpu.memory_space<vmem>>, vector<32x384xbf16>
      tpu.vector_store %arg6[%c0_14, %c0_15], %18 {strides = array<i32>} : memref<32x384xbf16, #tpu.memory_space<vmem>>, vector<32x384xbf16>,
    } else {
    }
    return
  }
  func.func @transform_0(%arg0: i32, %arg1: i32, %arg2: i32) -> (i32, i32) {
    %c0_i32 = arith.constant 0 : i32
    return %arg0, %arg2 : i32, i32
  }
  func.func @transform_1(%arg0: i32, %arg1: i32, %arg2: i32) -> (i32, i32) {
    %c0_i32 = arith.constant 0 : i32
    return %arg2, %arg1 : i32, i32
  }
  func.func @transform_2(%arg0: i32, %arg1: i32, %arg2: i32) -> (i32, i32) {
    %c0_i32 = arith.constant 0 : i32
    %c0_i32_0 = arith.constant 0 : i32
    return %c0_i32, %arg1 : i32, i32
  }
  func.func @transform_3(%arg0: i32, %arg1: i32, %arg2: i32) -> (i32, i32) {
    %c0_i32 = arith.constant 0 : i32
    return %arg0, %arg1 : i32, i32
  }
}

module attributes {stable_mosaic.version = 11 : i64} {
  func.func @_gemm_bias_relu_kernel(%arg0: i32, %arg1: i32, %arg2: i32, %arg3: memref<32x384xbf16, #tpu.memory_space<vmem>>, %arg4: memref<384x256xbf16, #tpu.memory_space<vmem>>, %arg5: memref<1x256xf32, #tpu.memory_space<vmem>>, %arg6: memref<32x256xf32, #tpu.memory_space<vmem>>, %arg7: memref<32x256xf32, #tpu.memory_space<vmem>>) attributes {dimension_semantics = [#tpu.dimension_semantics<parallel>, #tpu.dimension_semantics<parallel>, #tpu.dimension_semantics<arbitrary>], iteration_bounds = array<i64: 1, 1, 9>, scalar_prefetch = 0 : i64, scratch_operands = 1 : i64, tpu.core_type = #tpu.core_type<tc>, window_params = [{transform_indices = @transform_0, window_bounds = array<i64: 32, 384>}, {transform_indices = @transform_1, window_bounds = array<i64: 384, 256>}, {transform_indices = @transform_2, window_bounds = array<i64: 1, 256>}, {transform_indices = @transform_3, window_bounds = array<i64: 32, 256>}]} {
    %c0_i32 = arith.constant 0 : i32
    %0 = arith.cmpi eq, %arg2, %c0_i32 : i32
    %1 = arith.extui %0 : i1 to i32
    %c0_i32_0 = arith.constant 0 : i32
    %2 = arith.cmpi ne, %1, %c0_i32_0 : i32
    scf.if %2 {
      %cst_9 = arith.constant 0.000000e+00 : f32
      %12 = vector.broadcast %cst_9 : f32 to vector<32x256xf32>
      %c0_10 = arith.constant 0 : index
      %c0_11 = arith.constant 0 : index
      %13 = vector.load %arg7[%c0_10, %c0_11] : memref<32x256xf32, #tpu.memory_space<vmem>>, vector<32x256xf32>
      tpu.vector_store %arg7[%c0_10, %c0_11], %12 {strides = array<i32>} : memref<32x256xf32, #tpu.memory_space<vmem>>, vector<32x256xf32>,
    } else {
    }
    %c0 = arith.constant 0 : index
    %c0_1 = arith.constant 0 : index
    %3 = vector.load %arg7[%c0, %c0_1] : memref<32x256xf32, #tpu.memory_space<vmem>>, vector<32x256xf32>
    %c0_2 = arith.constant 0 : index
    %c0_3 = arith.constant 0 : index
    %4 = vector.load %arg3[%c0_2, %c0_3] : memref<32x384xbf16, #tpu.memory_space<vmem>>, vector<32x384xbf16>
    %c0_4 = arith.constant 0 : index
    %c0_5 = arith.constant 0 : index
    %5 = vector.load %arg4[%c0_4, %c0_5] : memref<384x256xbf16, #tpu.memory_space<vmem>>, vector<384x256xbf16>
    %cst = arith.constant dense<0.000000e+00> : vector<32x256xf32>
    %6 = tpu.matmul %4, %5, %cst {dimension_numbers = #tpu.dot_dimension_numbers<[1], [0], [0], [1], [0, 0, 1, 1], [], []>} : vector<32x384xbf16>, vector<384x256xbf16>, vector<32x256xf32> -> vector<32x256xf32>
    %7 = arith.addf %3, %6 : vector<32x256xf32>
    %c0_6 = arith.constant 0 : index
    %c0_7 = arith.constant 0 : index
    %8 = vector.load %arg7[%c0_6, %c0_7] : memref<32x256xf32, #tpu.memory_space<vmem>>, vector<32x256xf32>
    tpu.vector_store %arg7[%c0_6, %c0_7], %7 {strides = array<i32>} : memref<32x256xf32, #tpu.memory_space<vmem>>, vector<32x256xf32>,
    %c8_i32 = arith.constant 8 : i32
    %9 = arith.cmpi eq, %arg2, %c8_i32 : i32
    %10 = arith.extui %9 : i1 to i32
    %c0_i32_8 = arith.constant 0 : i32
    %11 = arith.cmpi ne, %10, %c0_i32_8 : i32
    scf.if %11 {
      %c0_9 = arith.constant 0 : index
      %c0_10 = arith.constant 0 : index
      %12 = vector.load %arg7[%c0_9, %c0_10] : memref<32x256xf32, #tpu.memory_space<vmem>>, vector<32x256xf32>
      %c0_11 = arith.constant 0 : index
      %c0_12 = arith.constant 0 : index
      %13 = vector.load %arg5[%c0_11, %c0_12] : memref<1x256xf32, #tpu.memory_space<vmem>>, vector<1x256xf32>
      %14 = vector.broadcast %13 : vector<1x256xf32> to vector<32x256xf32>
      %15 = arith.addf %12, %14 : vector<32x256xf32>
      %cst_13 = arith.constant 0.000000e+00 : f32
      %16 = vector.broadcast %cst_13 : f32 to vector<32x256xf32>
      %17 = arith.maximumf %15, %16 : vector<32x256xf32>
      %c0_14 = arith.constant 0 : index
      %c0_15 = arith.constant 0 : index
      %18 = vector.load %arg6[%c0_14, %c0_15] : memref<32x256xf32, #tpu.memory_space<vmem>>, vector<32x256xf32>
      tpu.vector_store %arg6[%c0_14, %c0_15], %17 {strides = array<i32>} : memref<32x256xf32, #tpu.memory_space<vmem>>, vector<32x256xf32>,
    } else {
    }
    return
  }
  func.func @transform_0(%arg0: i32, %arg1: i32, %arg2: i32) -> (i32, i32) {
    %c0_i32 = arith.constant 0 : i32
    return %arg0, %arg2 : i32, i32
  }
  func.func @transform_1(%arg0: i32, %arg1: i32, %arg2: i32) -> (i32, i32) {
    %c0_i32 = arith.constant 0 : i32
    return %arg2, %arg1 : i32, i32
  }
  func.func @transform_2(%arg0: i32, %arg1: i32, %arg2: i32) -> (i32, i32) {
    %c0_i32 = arith.constant 0 : i32
    %c0_i32_0 = arith.constant 0 : i32
    return %c0_i32, %arg1 : i32, i32
  }
  func.func @transform_3(%arg0: i32, %arg1: i32, %arg2: i32) -> (i32, i32) {
    %c0_i32 = arith.constant 0 : i32
    return %arg0, %arg1 : i32, i32
  }
}

</mosaic_0001>

<bundles_post_ra>
// kernel: alexnet_conv4_forward.7
= control target key start
LH: loop header
LB: loop body
LE: loop exit
PB: predicated region body
PF: predicated region fallthrough
CT: control target
= control target key end

     0   :  { %s431_s6 = smov 0   ;;  %s433_s7 = smov 0   ;;  %s497_s0 = inlined_call_operand.vmem [shape: bf16[2,15,15,64], index: 0, kind: input, shape index: {}]   ;;  %s498_s1 = inlined_call_operand.vmem [shape: bf16[2,7,7,64], index: 1, kind: output, shape index: {}]  }
   0x1   :  { %s435_s8 = smov 0   ;;  %s437_s9 = smov 0  }
   0x2   :  { %s439_s10 = smov 0  }
   0x3 LB: > { %s20_s11 = sadd.s32 1, %s411_s8  ;;  %s23_s12 = sadd.s32 1, %s415_s9  ;;  %s419_s10 = sphi %s439_s10, %s11_s10   ;;  %s415_s9 = sphi %s437_s9, %s502_s9   ;;  %s411_s8 = sphi %s435_s8, %s501_s8   ;;  %s407_s7 = sphi %s433_s7, %s500_s7   ;;  %s403_s6 = sphi %s431_s6, %s499_s6  }
   0x4   : > { %p21_p0 = scmp.ge.s32.totalorder %s20_s11, 7  ;;  %p323_p1 = scmp.ge.s32.totalorder %s419_s10, 1 }
   0x5   : > { %p101_p2 = scmp.lt.s32.totalorder %s419_s10, 15 }
   0x6   : > { %s504_s11 = smov (%p21_p0, %s20_s11), 0  ;;  %s506_s12 = smov (!%p21_p0, %s23_s12), %s415_s9 }
   0x7   : > { %p102_p3 = pnand %p323_p1, %p101_p2  ;;  %p25_p4 = scmp.ge.s32.totalorder %s506_s12, 2 }
   0x8   : > { %p124_p5 = scmp.lt.s32.totalorder (!%p102_p3), %s407_s7, 1  ;;  %s338_s14 = sshll.u32 (!%p102_p3), %s403_s6, 4  ;;  %vm204_vm0 = vcmask (!%p102_p3), 1040384   ;;  %vm205_vm1 = vsmask.f32 (!%p102_p3), 256  ;;  %vm213_vm2 = vcmask (!%p102_p3), 1041408  }
   0x9   : > { %s508_s12 = smov (%p25_p4, %s506_s12), 0  ;;  %105 = sbr.rel (%p102_p3) target bundleno = 46 (0x2e), region = 24 }
   0xa   : > { %p131_p6 = scmp.lt.s32.totalorder (!%p102_p3), %s403_s6, 6  ;;  %vm214_vm3 = vsmask.f32 (!%p102_p3), 1280  ;;  %vm206_vm4 = vmand (!%p102_p3), %vm204_vm0, %vm205_vm1  ;;  %vm222_vm5 = vcmask (!%p102_p3), 1042432   ;;  %vm223_vm6 = vsmask.f32 (!%p102_p3), 2304 }
   0xb   : > { %vm215_vm7 = vmand (!%p102_p3), %vm213_vm2, %vm214_vm3  ;;  %vm231_vm8 = vcmask (!%p102_p3), 519168   ;;  %vm232_vm9 = vsmask.f32 (!%p102_p3), 3328 }
   0xc   : > { %vm224_vm10 = vmand (!%p102_p3), %vm222_vm5, %vm223_vm6 }
   0xd   : > { %vm233_vm11 = vmand (!%p102_p3), %vm231_vm8, %vm232_vm9 }
  0x10   : > { %s510_s7 = smov (!%p124_p5, %s407_s7), 1  ;;  %s512_s6 = smov (!%p131_p6, %s403_s6), 6 }
  0x11   : > { %s339_s13 = smul.u32 120, %s510_s7 }
  0x12   : > { %s340_s19 = smul.u32 7, %s510_s7 }
  0x13   : > { %s128_s17 = scalar_lea.vmem %s497_s0, %s339_s13 }
  0x14   : > { %s140_s18 = scalar_lea.vmem %s128_s17, %s338_s14  ;;  %s134_s20 = sadd.s32 %s340_s19, %s512_s6 }
  0x15   : > { %v141_v0 = vld [vmem:[%s140_s18] sm:$0xf]  ;;  %v142_v1 = vld [vmem:[%s140_s18 + $0x4] sm:$0xf]  ;;  %v143_v2 = vld [vmem:[%s140_s18 + $0x8] sm:$0xf] }
  0x16   : > { %v144_v3 = vld [vmem:[%s140_s18 + $0xc] sm:$0xf]  ;;  %v145_v4 = vld [vmem:[%s140_s18 + $0x10] sm:$0xf]  ;;  %v146_v5 = vld [vmem:[%s140_s18 + $0x14] sm:$0xf]  ;;  %v147_v6 = vmax.bf16 %v143_v2, %v141_v0 }
  0x17   : > { %v148_v7 = vmax.bf16 %v144_v3, %v142_v1  ;;  %s325_s21 = sshll.u32 %s134_s20, 2 }
  0x18   : > { %v149_v8 = vmax.bf16 %v147_v6, %v145_v4  ;;  %s136_s24 = scalar_lea.vmem %s498_s1, %s325_s21 }
  0x19   : > { %v150_v9 = vmax.bf16 %v148_v7, %v146_v5  ;;  %v234_v36 = vld [vmem:[%s136_s24] sm:$0xf] }
  0x1a   : > { %v152_v10 = vshrl.u32 %v149_v8, 16  ;;  %v330_v11 = vrot.slane %v149_v8, 9 }
  0x1b   : > { %v164_v12 = vrot.slane %v150_v9, 5  ;;  %v168_v13 = vshrl.u32 %v150_v9, 16 }
  0x1c   : > { %v157_v14 = vmax.bf16 %v152_v10, %v149_v8 }
  0x1d   : > { %v173_v15 = vmax.bf16 %v168_v13, %v150_v9  ;;  %v174_v16 = vrot.slane %v164_v12, 4 }
  0x1e   : > { %v162_v17 = vmax.bf16 %v330_v11, %v157_v14  ;;  %v166_v18 = vmax.bf16 %v164_v12, %v157_v14 }
  0x1f   : > { %v176_v19 = vmax.bf16 %v174_v16, %v173_v15 }
  0x20   : > { %v332_v20 = vcombine.low %v162_v17, %v162_v17  ;;  %v333_v21 = vcombine.low %v166_v18, %v166_v18 }
  0x21   : > { %v334_v22 = vcombine.low %v176_v19, %v176_v19 }
  0x22   : > { %v181_v23 = vshll.u32 %v332_v20, 16  ;;  %v190_v24 = vshll.u32 %v333_v21, 16  ;;  %v185_v25 = vrot.slane %v332_v20, 1 }
  0x23   : > { %v199_v26 = vshll.u32 %v334_v22, 16  ;;  %v197_v29 = vrot.slane %v334_v22, 6  ;;  %v203_v32 = vrot.slane %v334_v22, 7 }
  0x24   : > { %v183_v27 = vrot.slane %v181_v23, 1  ;;  %v192_v28 = vrot.slane %v190_v24, 2 }
  0x25   : > { %v201_v30 = vrot.slane %v199_v26, 7 }
  0x26   : > { %v207_v31 = vsel %vm206_vm4, %v162_v17, %v183_v27 }
  0x27   : > { %v211_v33 = vsel %vm204_vm0, %v207_v31, %v185_v25 }
  0x28   : > { %v216_v34 = vsel %vm215_vm7, %v211_v33, %v192_v28 }
  0x29   : > { %v220_v35 = vsel %vm213_vm2, %v216_v34, %v197_v29 }
  0x2a   : > { %v225_v37 = vsel %vm224_vm10, %v220_v35, %v201_v30 }
  0x2b   : > { %v229_v38 = vsel %vm222_vm5, %v225_v37, %v203_v32 }
  0x2c   : > { %v235_v39 = vsel %vm233_vm11, %v229_v38, %v234_v36 }
  0x2d   : > { %236 = vst [vmem:[%s136_s24] sm:$0xf] %v235_v39 }
  0x2e PF: > { %s11_s10 = sadd.s32 1, %s419_s10   ;;  %s499_s6 = smov %s411_s8 }
  0x2f   : > { %p8_p7 = scmp.ge.s32.totalorder %s11_s10, 16   ;;  %s500_s7 = smov %s415_s9 }
  0x30   : > { %s501_s8 = smov %s504_s11  ;;  %s502_s9 = smov %s508_s12 }
  0x31   :  { %10 = sbr.rel (!%p8_p7) target bundleno = 3 (0x3), region = 55 }

// kernel: alexnet_conv4_forward.6
= control target key start
LH: loop header
LB: loop body
LE: loop exit
PB: predicated region body
PF: predicated region fallthrough
CT: control target
= control target key end

     0   :  { %s2594_s12 = smov 0   ;;  %s2596_s13 = smov 0   ;;  %s3114_s0 = inlined_call_operand.vmem [shape: bf16[450,384], index: 0, kind: input, shape index: {}]   ;;  %s3115_s1 = inlined_call_operand.vmem [shape: bf16[384,64], index: 1, kind: input, shape index: {}]   ;;  %s3116_s2 = inlined_call_operand.vmem [shape: f32[1,64], index: 2, kind: input, shape index: {}]   ;;  %s3117_s3 = inlined_call_operand.vmem [shape: bf16[450,64], index: 3, kind: output, shape index: {}]  }
   0x1   :  { %s2598_s14 = smov 0   ;;  %s2600_s15 = smov 0  }
   0x2   :  { %s2602_s16 = smov 0  }
   0x3 LB: > { %s1908_s17 = sadd.s32 4294967295, %s2539_s16   ;;  %s32_s18 = sadd.s32 1, %s2535_s15  ;;  %s2539_s16 = sphi %s2602_s16, %s13_s16   ;;  %s2535_s15 = sphi %s2600_s15, %s3125_s15   ;;  %s2531_s14 = sphi %s2598_s14, %s3124_s14   ;;  %s2527_s13 = sphi %s2596_s13, %s3123_s13   ;;  %s2523_s12 = sphi %s2594_s12, %s3122_s12  }
   0x4   : > { %p34_p0 = scmp.ge.s32.totalorder %s32_s18, 2  ;;  %s123_s19 = sadd.s32 1, %s2527_s13 }
   0x5   : > { %p133_p1 = scmp.ne.s32.totalorder %s2527_s13, %s2523_s12  ;;  %p134_p2 = scmp.eq.s32.totalorder %s1908_s17, 1 }
   0x6   : > { %s3127_s18 = smov (%p34_p0, %s32_s18), 0  ;;  %p1914_p4 = scmp.ge.s32.totalorder %s2539_s16, 1 }
   0x7   : > { %p2626_p3 = por %p134_p2, %p133_p1  ;;  %s118_s21 = ssub.s32 %s2535_s15, %s3127_s18 }
   0x8   : > { %p201_p5 = scmp.lt.s32.totalorder %s2539_s16, 3  ;;  %p121_p6 = scmp.eq.s32.totalorder %s118_s21, 0 }
   0xa   : > { %p202_p7 = pnand %p1914_p4, %p201_p5 }
   0xb   : > { %s2635_s22 = scalar_select %p121_p6, %s2527_s13, %s123_s19  }
   0xc   : > { %205 = sbr.rel (%p202_p7) target bundleno = 441 (0x1b9), region = 32  ;;  %v2381_v0 = vld [vmem:[%s3115_s1 + $0x40] sm:$0xff] (!%p202_p7)   ;;  %s2641_s25 = sshll.u32 (!%p202_p7), %s2531_s14, 5  ;;  %v2383_v2 = vld [vmem:[%s3115_s1 + $0x48] sm:$0xff] (!%p202_p7)   ;;  %v2385_v4 = vld [vmem:[%s3115_s1 + $0x50] sm:$0xff] (!%p202_p7)   ;;  %vm289_vm0 = vcmask (!%p202_p7), 523264  }
   0xd   : > { %v2382_v1 = vld [vmem:[%s3115_s1] sm:$0xff] (!%p202_p7)   ;;  %2075 = vmatprep.subr.bf16.mxu0 (!%p202_p7), %v2381_v0  ;;  %2259 = vmatprep.subr.bf16.mxu1 (!%p202_p7), %v2381_v0  ;;  %p252_p8 = scmp.lt.s32.totalorder (!%p202_p7), %s2641_s25, 56  ;;  %v2384_v3 = vld [vmem:[%s3115_s1 + $0x8] sm:$0xff] (!%p202_p7)   ;;  %v2386_v5 = vld [vmem:[%s3115_s1 + $0x10] sm:$0xff] (!%p202_p7)   ;;  %vm1487_vm1 = vcmask (!%p202_p7), 519168  }
   0xe   : > { %2076 = vmatpush3.bf16.msra.mxu0 (!%p202_p7), %v2382_v1  ;;  %2267 = vmatpush3.bf16.msra.mxu1 (!%p202_p7), %v2382_v1  ;;  %v2387_v6 = vld [vmem:[%s3115_s1 + $0x58] sm:$0xff] (!%p202_p7)   ;;  %v2389_v8 = vld [vmem:[%s3115_s1 + $0x60] sm:$0xff] (!%p202_p7)   ;;  %v2391_v10 = vld [vmem:[%s3115_s1 + $0x68] sm:$0xff] (!%p202_p7)  }
   0xf   : > { %2077 = vmatprep.subr.bf16.mxu0 (!%p202_p7), %v2383_v2  ;;  %2260 = vmatprep.subr.bf16.mxu1 (!%p202_p7), %v2383_v2  ;;  %v2388_v7 = vld [vmem:[%s3115_s1 + $0x18] sm:$0xff] (!%p202_p7)   ;;  %v2390_v9 = vld [vmem:[%s3115_s1 + $0x20] sm:$0xff] (!%p202_p7)   ;;  %v2392_v13 = vld [vmem:[%s3115_s1 + $0x28] sm:$0xff] (!%p202_p7)  }
  0x10   : > { %v2393_v14 = vld [vmem:[%s3115_s1 + $0x70] sm:$0xff] (!%p202_p7)   ;;  %v2395_v16 = vld [vmem:[%s3115_s1 + $0x78] sm:$0xff] (!%p202_p7)   ;;  %v2403_v18 = vld [vmem:[%s3115_s1 + $0x80] sm:$0xff] (!%p202_p7)  }
  0x11   : > { %v2394_v15 = vld [vmem:[%s3115_s1 + $0x30] sm:$0xff] (!%p202_p7)   ;;  %v2396_v17 = vld [vmem:[%s3115_s1 + $0x38] sm:$0xff] (!%p202_p7)   ;;  %v2404_v22 = vld [vmem:[%s3115_s1 + $0x88] sm:$0xff] (!%p202_p7)  }
  0x12   : > { %2078 = vmatpush3.bf16.msra.mxu0 (!%p202_p7), %v2384_v3  ;;  %2268 = vmatpush3.bf16.msra.mxu1 (!%p202_p7), %v2384_v3  ;;  %v2411_v25 = vld [vmem:[%s3115_s1 + $0x90] sm:$0xff] (!%p202_p7)   ;;  %v2412_v27 = vld [vmem:[%s3115_s1 + $0x98] sm:$0xff] (!%p202_p7)   ;;  %v2419_v30 = vld [vmem:[%s3115_s1 + $0xa0] sm:$0xff] (!%p202_p7)  }
  0x13   : > { %s253_s7 = scalar_select %p252_p8, %s2641_s25, 56  ;;  %2079 = vmatprep.subr.bf16.mxu0 %v2385_v4  ;;  %2261 = vmatprep.subr.bf16.mxu1 %v2385_v4  ;;  %v2420_v33 = vld [vmem:[%s3115_s1 + $0xa8] sm:$0xff]   ;;  %v2427_v36 = vld [vmem:[%s3115_s1 + $0xb0] sm:$0xff]   ;;  %v2428_v40 = vld [vmem:[%s3115_s1 + $0xb8] sm:$0xff]  }
  0x14   : > { %s1528_s27 = ssub.s32 (%p2626_p3), 57, %s2641_s25  ;;  %s2072_s29 = sshll.u32 (%p2626_p3), %s2531_s14, 7 }
  0x15   : > { %s2275_s17 = smul.u32 12, %s253_s7  ;;  %p1529_p9 = scmp.lt.s32.totalorder (%p2626_p3), %s1528_s27, 32 }
  0x16   : > { %2080 = vmatpush3.bf16.msra.mxu0 %v2386_v5  ;;  %2269 = vmatpush3.bf16.msra.mxu1 %v2386_v5  ;;  %s2981_s5 = scalar_lea.vmem (%p2626_p3), %s3117_s3, %s2072_s29  }
  0x17   : > { %2081 = vmatprep.subr.bf16.mxu0 %v2387_v6  ;;  %2262 = vmatprep.subr.bf16.mxu1 %v2387_v6  ;;  %s2672_s28 = scalar_lea.vmem %s3114_s0, %s2275_s17 }
  0x18   : > { %v2399_v11 = vld [vmem:[%s2672_s28 + $0x4] ss:$12 sps:$4 sm:$0xff]   ;;  %v2397_v19 = vld [vmem:[%s2672_s28] ss:$12 sps:$4 sm:$0xff]   ;;  %v2405_v21 = vld [vmem:[%s2672_s28 + $0x1c] ss:$12 sps:$4 sm:$0xff]  }
  0x19   : > { %v2402_v12 = vld [vmem:[%s2672_s28 + $0x124] ss:$12 sps:$4 sm:$0xff]   ;;  %898 = vmatprep.mubr.bf16.mxu0 %v2399_v11  ;;  %v2400_v20 = vld [vmem:[%s2672_s28 + $0x120] ss:$12 sps:$4 sm:$0xff]   ;;  %v2407_v23 = vld [vmem:[%s2672_s28 + $0x13c] ss:$12 sps:$4 sm:$0xff]  }
  0x1a   : > { %2082 = vmatpush3.bf16.msra.mxu0 %v2388_v7  ;;  %2270 = vmatpush3.bf16.msra.mxu1 %v2388_v7  ;;  %v2409_v24 = vld [vmem:[%s2672_s28 + $0x18] ss:$12 sps:$4 sm:$0xff]   ;;  %v2413_v28 = vld [vmem:[%s2672_s28 + $0x34] ss:$12 sps:$4 sm:$0xff]   ;;  %v2417_v31 = vld [vmem:[%s2672_s28 + $0x30] ss:$12 sps:$4 sm:$0xff]  }
  0x1b   : > { %2083 = vmatprep.subr.bf16.mxu0 %v2389_v8  ;;  %2263 = vmatprep.subr.bf16.mxu1 %v2389_v8  ;;  %v2410_v26 = vld [vmem:[%s2672_s28 + $0x138] ss:$12 sps:$4 sm:$0xff]   ;;  %v2415_v29 = vld [vmem:[%s2672_s28 + $0x154] ss:$12 sps:$4 sm:$0xff]   ;;  %v2418_v32 = vld [vmem:[%s2672_s28 + $0x150] ss:$12 sps:$4 sm:$0xff]  }
  0x1c   : > { %994 = vmatprep.mubr.bf16.mxu1 %v2402_v12  ;;  %v2421_v34 = vld [vmem:[%s2672_s28 + $0x4c] ss:$12 sps:$4 sm:$0xff]   ;;  %v2425_v37 = vld [vmem:[%s2672_s28 + $0x48] ss:$12 sps:$4 sm:$0xff]   ;;  %v2429_v39 = vld [vmem:[%s2672_s28 + $0x64] ss:$12 sps:$4 sm:$0xff]  }
  0x1d   : > { %v2423_v35 = vld [vmem:[%s2672_s28 + $0x16c] ss:$12 sps:$4 sm:$0xff]   ;;  %v2426_v38 = vld [vmem:[%s2672_s28 + $0x168] ss:$12 sps:$4 sm:$0xff]   ;;  %v2438_v47 = vld [vmem:[%s2672_s28 + $0x50] ss:$12 sps:$4 sm:$0xff]  }
  0x1e   : > { %2084 = vmatpush3.bf16.msra.mxu0 %v2390_v9  ;;  %2271 = vmatpush3.bf16.msra.mxu1 %v2390_v9  ;;  %v2431_v41 = vld [vmem:[%s2672_s28 + $0x8] ss:$12 sps:$4 sm:$0xff]   ;;  %v2432_v42 = vld [vmem:[%s2672_s28 + $0x60] ss:$12 sps:$4 sm:$0xff]   ;;  %v2436_v45 = vld [vmem:[%s2672_s28 + $0x38] ss:$12 sps:$4 sm:$0xff]  }
  0x1f   : > { %2085 = vmatprep.subr.bf16.mxu0 %v2391_v10  ;;  %2264 = vmatprep.subr.bf16.mxu1 %v2391_v10  ;;  %v2433_v43 = vld [vmem:[%s2672_s28 + $0x20] ss:$12 sps:$4 sm:$0xff]   ;;  %v2434_v44 = vld [vmem:[%s2672_s28 + $0x7c] ss:$12 sps:$4 sm:$0xff]   ;;  %v2437_v46 = vld [vmem:[%s2672_s28 + $0x78] ss:$12 sps:$4 sm:$0xff]  }
  0x20   : > { %v2439_v48 = vld [vmem:[%s2672_s28 + $0x94] ss:$12 sps:$4 sm:$0xff]   ;;  %v2442_v50 = vld [vmem:[%s2672_s28 + $0x90] ss:$12 sps:$4 sm:$0xff]   ;;  %v2444_v52 = vld [vmem:[%s2672_s28 + $0xac] ss:$12 sps:$4 sm:$0xff]  }
  0x21   : > { %v2441_v49 = vld [vmem:[%s2672_s28 + $0x68] ss:$12 sps:$4 sm:$0xff]   ;;  %v2443_v51 = vld [vmem:[%s2672_s28 + $0x80] ss:$12 sps:$4 sm:$0xff]   ;;  %v2446_v53 = vld [vmem:[%s2672_s28 + $0x98] ss:$12 sps:$4 sm:$0xff]  }
  0x22   : > { %2086 = vmatpush3.bf16.msra.mxu0 %v2392_v13  ;;  %2272 = vmatpush3.bf16.msra.mxu1 %v2392_v13  ;;  %v2447_v54 = vld [vmem:[%s2672_s28 + $0xa8] ss:$12 sps:$4 sm:$0xff]   ;;  %v2448_v55 = vld [vmem:[%s2672_s28 + $0xb0] ss:$12 sps:$4 sm:$0xff]   ;;  %v2452_v58 = vld [vmem:[%s2672_s28 + $0xc0] ss:$12 sps:$4 sm:$0xff]  }
  0x23   : > { %2087 = vmatprep.subr.bf16.mxu0 %v2393_v14  ;;  %2265 = vmatprep.subr.bf16.mxu1 %v2393_v14  ;;  %v2449_v56 = vld [vmem:[%s2672_s28 + $0xc4] ss:$12 sps:$4 sm:$0xff]   ;;  %v2451_v57 = vld [vmem:[%s2672_s28 + $0xc8] ss:$12 sps:$4 sm:$0xff]   ;;  %v2453_v59 = vld [vmem:[%s2672_s28 + $0xe0] ss:$12 sps:$4 sm:$0xff]  }
  0x24   : > { %v2454_v60 = vld [vmem:[%s2672_s28 + $0xdc] ss:$12 sps:$4 sm:$0xff]   ;;  %v2456_v61 = vld [vmem:[%s2672_s28 + $0xf8] ss:$12 sps:$4 sm:$0xff]   ;;  %v2459_v0 = vld [vmem:[%s2672_s28 + $0xf4] ss:$12 sps:$4 sm:$0xff]  }
  0x25   : > { %v2457_v62 = vld [vmem:[%s2672_s28 + $0xd8] ss:$12 sps:$4 sm:$0xff]   ;;  %v2458_v63 = vld [vmem:[%s2672_s28 + $0x110] ss:$12 sps:$4 sm:$0xff]   ;;  %v2461_v1 = vld [vmem:[%s2672_s28 + $0x128] ss:$12 sps:$4 sm:$0xff]  }
  0x26   : > { %2088 = vmatpush3.bf16.msra.mxu0 %v2394_v15  ;;  %2273 = vmatpush3.bf16.msra.mxu1 %v2394_v15  ;;  %v2462_v2 = vld [vmem:[%s2672_s28 + $0xf0] ss:$12 sps:$4 sm:$0xff]   ;;  %v2463_v3 = vld [vmem:[%s2672_s28 + $0x140] ss:$12 sps:$4 sm:$0xff]   ;;  %v2466_v5 = vld [vmem:[%s2672_s28 + $0x158] ss:$12 sps:$4 sm:$0xff]  }
  0x27   : > { %2089 = vmatprep.subr.bf16.mxu0 %v2395_v16  ;;  %2266 = vmatprep.subr.bf16.mxu1 %v2395_v16  ;;  %v2464_v4 = vld [vmem:[%s2672_s28 + $0x10c] ss:$12 sps:$4 sm:$0xff]   ;;  %v2467_v6 = vld [vmem:[%s2672_s28 + $0x108] ss:$12 sps:$4 sm:$0xff]   ;;  %v2468_v7 = vld [vmem:[%s2672_s28 + $0x170] ss:$12 sps:$4 sm:$0xff]  }
  0x28   : > { %v2573_v8 = vmov 0.0   ;;  %s242_s28 = sand.u32 1, %s2523_s12  }
  0x29   : > { %292 = vst.msk [vmem:[#allocation2 + $0x10] sm:$0xff] %vm289_vm0, %v2573_v8  ;;  %290 = vst.msk [vmem:[#allocation2] sm:$0xff] %vm289_vm0, %v2573_v8  ;;  %s2829_s12 = sshll.u32 %s242_s28, 7 }
  0x2a   : > { %2090 = vmatpush3.bf16.msra.mxu0 %v2396_v17  ;;  %2274 = vmatpush3.bf16.msra.mxu1 %v2396_v17  ;;  %291 = vst.msk [vmem:[#allocation2 + $0x8] sm:$0xff] %vm289_vm0, %v2573_v8  ;;  %293 = vst.msk [vmem:[#allocation2 + $0x18] sm:$0xff] %vm289_vm0, %v2573_v8  ;;  %s2841_s26 = scalar_lea.vmem [#allocation3], %s2829_s12  }
  0x2b   : > { %2211 = vmatprep.subr.bf16.mxu1 %v2403_v18  ;;  %294 = vst.msk [vmem:[#allocation2 + $0x20] sm:$0xff] %vm289_vm0, %v2573_v8  ;;  %295 = vst.msk [vmem:[#allocation2 + $0x28] sm:$0xff] %vm289_vm0, %v2573_v8 }
  0x2c   : > { %296 = vst.msk [vmem:[#allocation2 + $0x30] sm:$0xff] %vm289_vm0, %v2573_v8  ;;  %297 = vst.msk [vmem:[#allocation2 + $0x38] sm:$0xff] %vm289_vm0, %v2573_v8 }
  0x2d   : > { %899 = vmatmul.mubr.bf16.vlgmr.msra.gmra.mrb[0].mxu0 %v2397_v19  ;;  %995 = vmatmul.mubr.bf16.vlgmr.msra.gmra.mrb[0].mxu1 %v2400_v20  ;;  %298 = vst.msk [vmem:[#allocation2 + $0x40] sm:$0xff] %vm289_vm0, %v2573_v8  ;;  %299 = vst.msk [vmem:[#allocation2 + $0x48] sm:$0xff] %vm289_vm0, %v2573_v8 }
  0x2e   : > { %2212 = vmatpush3.bf16.msra.mxu1 %v2403_v18  ;;  %906 = vmatprep.mubr.bf16.mxu0 %v2405_v21  ;;  %300 = vst.msk [vmem:[#allocation2 + $0x50] sm:$0xff] %vm289_vm0, %v2573_v8  ;;  %301 = vst.msk [vmem:[#allocation2 + $0x58] sm:$0xff] %vm289_vm0, %v2573_v8 }
  0x2f   : > { %2213 = vmatprep.subr.bf16.mxu1 %v2404_v22  ;;  %1002 = vmatprep.mubr.bf16.mxu1 %v2407_v23  ;;  %302 = vst.msk [vmem:[#allocation2 + $0x60] sm:$0xff] %vm289_vm0, %v2573_v8  ;;  %303 = vst.msk [vmem:[#allocation2 + $0x68] sm:$0xff] %vm289_vm0, %v2573_v8 }
  0x30   : > { %304 = vst.msk [vmem:[#allocation2 + $0x70] sm:$0xff] %vm289_vm0, %v2573_v8  ;;  %305 = vst.msk [vmem:[#allocation2 + $0x78] sm:$0xff] %vm289_vm0, %v2573_v8 }
  0x31   : > { %306 = vst.msk [vmem:[#allocation2 + $0x80] sm:$0xff] %vm289_vm0, %v2573_v8  ;;  %307 = vst.msk [vmem:[#allocation2 + $0x88] sm:$0xff] %vm289_vm0, %v2573_v8 }
  0x32   : > { %2214 = vmatpush3.bf16.msra.mxu1 %v2404_v22  ;;  %308 = vst.msk [vmem:[#allocation2 + $0x90] sm:$0xff] %vm289_vm0, %v2573_v8  ;;  %309 = vst.msk [vmem:[#allocation2 + $0x98] sm:$0xff] %vm289_vm0, %v2573_v8 }
  0x33   : > { %2215 = vmatprep.subr.bf16.mxu1 %v2411_v25  ;;  %310 = vst.msk [vmem:[#allocation2 + $0xa0] sm:$0xff] %vm289_vm0, %v2573_v8  ;;  %311 = vst.msk [vmem:[#allocation2 + $0xa8] sm:$0xff] %vm289_vm0, %v2573_v8 }
  0x34   : > { %312 = vst.msk [vmem:[#allocation2 + $0xb0] sm:$0xff] %vm289_vm0, %v2573_v8  ;;  %313 = vst.msk [vmem:[#allocation2 + $0xb8] sm:$0xff] %vm289_vm0, %v2573_v8 }
  0x35   : > { %907 = vmatmul.mubr.bf16.gmra.mrb[4].mxu0 %v2409_v24  ;;  %1003 = vmatmul.mubr.bf16.gmra.mrb[4].mxu1 %v2410_v26  ;;  %314 = vst.msk [vmem:[#allocation2 + $0xc0] sm:$0xff] %vm289_vm0, %v2573_v8  ;;  %315 = vst.msk [vmem:[#allocation2 + $0xc8] sm:$0xff] %vm289_vm0, %v2573_v8 }
  0x36   : > { %2216 = vmatpush3.bf16.msra.mxu1 %v2411_v25  ;;  %914 = vmatprep.mubr.bf16.mxu0 %v2413_v28  ;;  %316 = vst.msk [vmem:[#allocation2 + $0xd0] sm:$0xff] %vm289_vm0, %v2573_v8  ;;  %317 = vst.msk [vmem:[#allocation2 + $0xd8] sm:$0xff] %vm289_vm0, %v2573_v8 }
  0x37   : > { %2217 = vmatprep.subr.bf16.mxu1 %v2412_v27  ;;  %1010 = vmatprep.mubr.bf16.mxu1 %v2415_v29  ;;  %318 = vst.msk [vmem:[#allocation2 + $0xe0] sm:$0xff] %vm289_vm0, %v2573_v8  ;;  %319 = vst.msk [vmem:[#allocation2 + $0xe8] sm:$0xff] %vm289_vm0, %v2573_v8 }
  0x38   : > { %320 = vst.msk [vmem:[#allocation2 + $0xf0] sm:$0xff] %vm289_vm0, %v2573_v8  ;;  %321 = vst.msk [vmem:[#allocation2 + $0xf8] sm:$0xff] %vm289_vm0, %v2573_v8  ;;  %v323_v8 = vld [vmem:[#allocation2 + $0x8] sm:$0xff] }
  0x3a   : > { %2218 = vmatpush3.bf16.msra.mxu1 %v2412_v27 }
  0x3b   : > { %2219 = vmatprep.subr.bf16.mxu1 %v2419_v30 }
  0x3d   : > { %915 = vmatmul.mubr.bf16.gmra.mrb[8].mxu0 %v2417_v31  ;;  %1011 = vmatmul.mubr.bf16.gmra.mrb[8].mxu1 %v2418_v32 }
  0x3e   : > { %2220 = vmatpush3.bf16.msra.mxu1 %v2419_v30  ;;  %922 = vmatprep.mubr.bf16.mxu0 %v2421_v34 }
  0x3f   : > { %2221 = vmatprep.subr.bf16.mxu1 %v2420_v33  ;;  %1018 = vmatprep.mubr.bf16.mxu1 %v2423_v35 }
  0x42   : > { %2222 = vmatpush3.bf16.msra.mxu1 %v2420_v33 }
  0x43   : > { %2223 = vmatprep.subr.bf16.mxu1 %v2427_v36 }
  0x45   : > { %923 = vmatmul.mubr.bf16.gmra.mrb[12].mxu0 %v2425_v37  ;;  %1019 = vmatmul.mubr.bf16.gmra.mrb[12].mxu1 %v2426_v38 }
  0x46   : > { %2224 = vmatpush3.bf16.msra.mxu1 %v2427_v36  ;;  %930 = vmatprep.mubr.bf16.mxu0 %v2429_v39 }
  0x47   : > { %2225 = vmatprep.subr.bf16.mxu1 %v2428_v40  ;;  %2227 = vmatprep.mubr.bf16.mxu1 %v2431_v41 }
  0x4a   : > { %2226 = vmatpush3.bf16.msra.mxu1 %v2428_v40 }
  0x4d   : > { %931 = vmatmul.mubr.bf16.gmra.mrb[16].mxu0 %v2432_v42  ;;  %2228 = vmatmul.mubr.bf16.vlgmr.msra.gmra.mrb[16].mxu1 %v2433_v43 }
  0x4e   : > { %938 = vmatprep.mubr.bf16.mxu0 %v2434_v44  ;;  %2231 = vmatprep.mubr.bf16.mxu1 %v2436_v45 }
  0x55   : > { %939 = vmatmul.mubr.bf16.gmra.mrb[20].mxu0 %v2437_v46  ;;  %2232 = vmatmul.mubr.bf16.gmra.mrb[20].mxu1 %v2438_v47 }
  0x56   : > { %946 = vmatprep.mubr.bf16.mxu0 %v2439_v48  ;;  %2235 = vmatprep.mubr.bf16.mxu1 %v2441_v49 }
  0x5d   : > { %947 = vmatmul.mubr.bf16.gmra.mrb[24].mxu0 %v2442_v50  ;;  %2236 = vmatmul.mubr.bf16.gmra.mrb[24].mxu1 %v2443_v51 }
  0x5e   : > { %954 = vmatprep.mubr.bf16.mxu0 %v2444_v52  ;;  %2239 = vmatprep.mubr.bf16.mxu1 %v2446_v53 }
  0x65   : > { %955 = vmatmul.mubr.bf16.gmra.mrb[28].mxu0 %v2447_v54  ;;  %2240 = vmatmul.mubr.bf16.gmra.mrb[28].mxu1 %v2448_v55 }
  0x66   : > { %962 = vmatprep.mubr.bf16.mxu0 %v2449_v56  ;;  %2243 = vmatprep.mubr.bf16.mxu1 %v2451_v57 }
  0x6d   : > { %963 = vmatmul.mubr.bf16.gmra.mrb[32].mxu0 %v2452_v58  ;;  %2244 = vmatmul.mubr.bf16.gmra.mrb[32].mxu1 %v2453_v59  ;;  %v324_v58 = vld [vmem:[#allocation2 + $0x10] sm:$0xff] }
  0x6e   : > { %970 = vmatprep.mubr.bf16.mxu0 %v2454_v60  ;;  %2247 = vmatprep.mubr.bf16.mxu1 %v2456_v61 }
  0x75   : > { %971 = vmatmul.mubr.bf16.gmra.mrb[36].mxu0 %v2457_v62  ;;  %2248 = vmatmul.mubr.bf16.gmra.mrb[36].mxu1 %v2458_v63  ;;  %v322_v62 = vld [vmem:[#allocation2] sm:$0xff] }
  0x76   : > { %978 = vmatprep.mubr.bf16.mxu0 %v2459_v0  ;;  %2251 = vmatprep.mubr.bf16.mxu1 %v2461_v1 }
  0x7d   : > { %979 = vmatmul.mubr.bf16.gmra.mrb[40].mxu0 %v2462_v2  ;;  %2252 = vmatmul.mubr.bf16.gmra.mrb[40].mxu1 %v2463_v3  ;;  %v325_v3 = vld [vmem:[#allocation2 + $0x18] sm:$0xff] }
  0x7e   : > { %986 = vmatprep.mubr.bf16.mxu0 %v2464_v4  ;;  %2255 = vmatprep.mubr.bf16.mxu1 %v2466_v5 }
  0x85   : > { %987 = vmatmul.mubr.bf16.gmra.mrb[44].mxu0 %v2467_v6  ;;  %2256 = vmatmul.mubr.bf16.gmra.mrb[44].mxu1 %v2468_v7 }
 0x100   : > { %v2091_v9 = vpop.f32.mrb[0].mxu0  ;;  %v2163_v10 = vpop.f32.mrb[0].mxu1 }
 0x101   : > { %v2092_v11 = vpop.f32.mrb[1].mxu0  ;;  %v2164_v12 = vpop.f32.mrb[1].mxu1 }
 0x102   : > { %v2093_v13 = vadd.f32 %v2092_v11, %v2091_v9  ;;  %v2799_v14 = vadd.f32 %v2164_v12, %v2163_v10  ;;  %v2094_v15 = vpop.f32.mrb[2].mxu0  ;;  %v2166_v16 = vpop.f32.mrb[2].mxu1 }
 0x103   : > { %v2095_v17 = vpop.f32.mrb[3].mxu0  ;;  %v2167_v18 = vpop.f32.mrb[3].mxu1 }
 0x104   : > { %v2096_v19 = vadd.f32 %v2095_v17, %v2094_v15  ;;  %v2801_v20 = vadd.f32 %v2167_v18, %v2166_v16  ;;  %v328_v17 = vld [vmem:[#allocation2 + $0x30] sm:$0xff] }
 0x108   : > { %v2097_v21 = vpop.f32.mrb[4].mxu0  ;;  %v2169_v22 = vpop.f32.mrb[4].mxu1 }
 0x109   : > { %v2098_v23 = vpop.f32.mrb[5].mxu0  ;;  %v2170_v24 = vpop.f32.mrb[5].mxu1 }
 0x10a   : > { %v2099_v25 = vadd.f32 %v2098_v23, %v2097_v21  ;;  %v2803_v26 = vadd.f32 %v2170_v24, %v2169_v22  ;;  %v2100_v27 = vpop.f32.mrb[6].mxu0  ;;  %v2172_v28 = vpop.f32.mrb[6].mxu1  ;;  %v326_v23 = vld [vmem:[#allocation2 + $0x20] sm:$0xff] }
 0x10b   : > { %v2101_v29 = vpop.f32.mrb[7].mxu0  ;;  %v2173_v30 = vpop.f32.mrb[7].mxu1 }
 0x10c   : > { %v2102_v31 = vadd.f32 %v2101_v29, %v2100_v27  ;;  %v2805_v32 = vadd.f32 %v2173_v30, %v2172_v28  ;;  %v329_v29 = vld [vmem:[#allocation2 + $0x38] sm:$0xff] }
 0x110   : > { %v2103_v33 = vpop.f32.mrb[8].mxu0  ;;  %v2175_v34 = vpop.f32.mrb[8].mxu1 }
 0x111   : > { %v2104_v35 = vpop.f32.mrb[9].mxu0  ;;  %v2176_v36 = vpop.f32.mrb[9].mxu1 }
 0x112   : > { %v2105_v37 = vadd.f32 %v2104_v35, %v2103_v33  ;;  %v2807_v38 = vadd.f32 %v2176_v36, %v2175_v34  ;;  %v2106_v39 = vpop.f32.mrb[10].mxu0  ;;  %v2178_v40 = vpop.f32.mrb[10].mxu1  ;;  %v327_v35 = vld [vmem:[#allocation2 + $0x28] sm:$0xff] }
 0x113   : > { %v2107_v41 = vpop.f32.mrb[11].mxu0  ;;  %v2179_v42 = vpop.f32.mrb[11].mxu1 }
 0x114   : > { %v2108_v43 = vadd.f32 %v2107_v41, %v2106_v39  ;;  %v2809_v44 = vadd.f32 %v2179_v42, %v2178_v40 }
 0x118   : > { %v2109_v45 = vpop.f32.mrb[12].mxu0  ;;  %v2181_v46 = vpop.f32.mrb[12].mxu1 }
 0x119   : > { %v2110_v47 = vpop.f32.mrb[13].mxu0  ;;  %v2182_v48 = vpop.f32.mrb[13].mxu1 }
 0x11a   : > { %v2111_v49 = vadd.f32 %v2110_v47, %v2109_v45  ;;  %v2811_v50 = vadd.f32 %v2182_v48, %v2181_v46  ;;  %v2112_v51 = vpop.f32.mrb[14].mxu0  ;;  %v2184_v52 = vpop.f32.mrb[14].mxu1 }
 0x11b   : > { %v2113_v53 = vpop.f32.mrb[15].mxu0  ;;  %v2185_v54 = vpop.f32.mrb[15].mxu1 }
 0x11c   : > { %v2114_v55 = vadd.f32 %v2113_v53, %v2112_v51  ;;  %v2813_v56 = vadd.f32 %v2185_v54, %v2184_v52 }
 0x120   : > { %v2115_v57 = vpop.f32.mrb[16].mxu0  ;;  %v2229_v59 = vpop.f32.mrb[16].mxu1 }
 0x121   : > { %v1070_v60 = vadd.f32 %v2229_v59, %v2099_v25  ;;  %v2116_v61 = vpop.f32.mrb[17].mxu0  ;;  %v1061_v63 = vpop.f32.mrb[17].mxu1 }
 0x122   : > { %v2815_v0 = vadd.f32 %v2116_v61, %v2115_v57  ;;  %v1062_v1 = vadd.f32 %v2093_v13, %v1061_v63  ;;  %v2118_v2 = vpop.f32.mrb[18].mxu0  ;;  %v2230_v4 = vpop.f32.mrb[18].mxu1  ;;  %v332_v57 = vld [vmem:[#allocation2 + $0x50] sm:$0xff]  ;;  %v330_v63 = vld [vmem:[#allocation2 + $0x40] sm:$0xff] }
 0x123   : > { %v1190_v5 = vadd.f32 %v1070_v60, %v324_v58  ;;  %v1073_v6 = vadd.f32 %v2230_v4, %v2102_v31  ;;  %v2119_v7 = vpop.f32.mrb[19].mxu0  ;;  %v1064_v9 = vpop.f32.mrb[19].mxu1 }
 0x124   : > { %v1188_v10 = vadd.f32 %v1062_v1, %v322_v62  ;;  %v2817_v11 = vadd.f32 %v2119_v7, %v2118_v2  ;;  %v1065_v12 = vadd.f32 %v2096_v19, %v1064_v9  ;;  %v2827_v19 = vld [vmem:[%s3116_s2] ss:$0 sm:$0xff]  ;;  %v333_v7 = vld [vmem:[#allocation2 + $0x58] sm:$0xff] }
 0x125   : > { %1223 = vst.msk [vmem:[#allocation2 + $0x10] sm:$0xff] %vm289_vm0, %v1190_v5  ;;  %v1191_v15 = vadd.f32 %v1073_v6, %v325_v3 }
 0x126   : > { %1221 = vst.msk [vmem:[#allocation2] sm:$0xff] %vm289_vm0, %v1188_v10  ;;  %v1189_v16 = vadd.f32 %v1065_v12, %v323_v8 }
 0x127   : > { %1224 = vst.msk [vmem:[#allocation2 + $0x18] sm:$0xff] %vm289_vm0, %v1191_v15 }
 0x128   : > { %1222 = vst.msk [vmem:[#allocation2 + $0x8] sm:$0xff] %vm289_vm0, %v1189_v16  ;;  %v2121_v13 = vpop.f32.mrb[20].mxu0  ;;  %v2233_v18 = vpop.f32.mrb[20].mxu1  ;;  %v331_v16 = vld [vmem:[#allocation2 + $0x48] sm:$0xff] }
 0x129   : > { %v1086_v21 = vadd.f32 %v2233_v18, %v2111_v49  ;;  %v2122_v22 = vpop.f32.mrb[21].mxu0  ;;  %v1077_v24 = vpop.f32.mrb[21].mxu1 }
 0x12a   : > { %v2123_v25 = vadd.f32 %v2122_v22, %v2121_v13  ;;  %v1078_v27 = vadd.f32 %v2105_v37, %v1077_v24  ;;  %v2124_v28 = vpop.f32.mrb[22].mxu0  ;;  %v2234_v30 = vpop.f32.mrb[22].mxu1 }
 0x12b   : > { %v1194_v31 = vadd.f32 %v1086_v21, %v328_v17  ;;  %v1089_v33 = vadd.f32 %v2234_v30, %v2114_v55  ;;  %v2125_v34 = vpop.f32.mrb[23].mxu0  ;;  %v1080_v36 = vpop.f32.mrb[23].mxu1 }
 0x12c   : > { %v1258_v39 = vld [vmem:[#allocation2 + $0x10] sm:$0xff]  ;;  %v1192_v40 = vadd.f32 %v1078_v27, %v326_v23  ;;  %v2126_v41 = vadd.f32 %v2125_v34, %v2124_v28  ;;  %v1081_v42 = vadd.f32 %v2108_v43, %v1080_v36 }
 0x12d   : > { %v1297_v45 = vadd.f32 %v2827_v19, %v1258_v39  ;;  %v1256_v46 = vld [vmem:[#allocation2] sm:$0xff]  ;;  %1227 = vst.msk [vmem:[#allocation2 + $0x30] sm:$0xff] %vm289_vm0, %v1194_v31  ;;  %v1195_v37 = vadd.f32 %v1089_v33, %v329_v29 }
 0x12e   : > { %v1295_v47 = vadd.f32 %v2827_v19, %v1256_v46  ;;  %v1259_v48 = vld [vmem:[#allocation2 + $0x18] sm:$0xff]  ;;  %1225 = vst.msk [vmem:[#allocation2 + $0x20] sm:$0xff] %vm289_vm0, %v1192_v40  ;;  %v1193_v49 = vadd.f32 %v1081_v42, %v327_v35  ;;  %v334_v42 = vld [vmem:[#allocation2 + $0x60] sm:$0xff] }
 0x12f   : > { %v1329_v51 = vmax.f32 %v1297_v45, 0.0  ;;  %v1298_v52 = vadd.f32 %v2827_v19, %v1259_v48  ;;  %v1257_v53 = vld [vmem:[#allocation2 + $0x8] sm:$0xff]  ;;  %1228 = vst.msk [vmem:[#allocation2 + $0x38] sm:$0xff] %vm289_vm0, %v1195_v37 }
 0x130   : > { %v1327_v43 = vmax.f32 %v1295_v47, 0.0  ;;  %v1296_v54 = vadd.f32 %v2827_v19, %v1257_v53  ;;  %1226 = vst.msk [vmem:[#allocation2 + $0x28] sm:$0xff] %vm289_vm0, %v1193_v49  ;;  %v2127_v55 = vpop.f32.mrb[24].mxu0  ;;  %v2237_v58 = vpop.f32.mrb[24].mxu1  ;;  %v336_v53 = vld [vmem:[#allocation2 + $0x70] sm:$0xff] }
 0x131   : > { %v2042_v59 = vpack.c.bf16 %v1329_v51, %v1329_v51  ;;  %v1330_v60 = vmax.f32 %v1298_v52, 0.0  ;;  %v1102_v61 = vadd.f32 %v2237_v58, %v2123_v25  ;;  %v2128_v62 = vpop.f32.mrb[25].mxu0  ;;  %v1093_v1 = vpop.f32.mrb[25].mxu1 }
 0x132   : > { %v2040_v2 = vpack.c.bf16 %v1327_v43, %v1327_v43  ;;  %v1328_v3 = vmax.f32 %v1296_v54, 0.0  ;;  %v2129_v4 = vadd.f32 %v2128_v62, %v2127_v55  ;;  %v1094_v5 = vadd.f32 %v2815_v0, %v1093_v1  ;;  %v2130_v6 = vpop.f32.mrb[26].mxu0  ;;  %v2238_v8 = vpop.f32.mrb[26].mxu1  ;;  %v337_v1 = vld [vmem:[#allocation2 + $0x78] sm:$0xff] }
 0x133   : > { %1490 = vst.msk [vmem:[%s2841_s26 + $0x8] sm:$0xf] %vm1487_vm1, %v2042_v59  ;;  %v2043_v9 = vpack.c.bf16 %v1330_v60, %v1330_v60  ;;  %v1198_v10 = vadd.f32 %v1102_v61, %v332_v57  ;;  %v1105_v12 = vadd.f32 %v2238_v8, %v2126_v41  ;;  %v2131_v15 = vpop.f32.mrb[27].mxu0  ;;  %v1096_v13 = vpop.f32.mrb[27].mxu1  ;;  %v335_v61 = vld [vmem:[#allocation2 + $0x68] sm:$0xff] }
 0x134   : > { %1488 = vst.msk [vmem:[%s2841_s26] sm:$0xf] %vm1487_vm1, %v2040_v2  ;;  %v2041_v0 = vpack.c.bf16 %v1328_v3, %v1328_v3  ;;  %v1262_v17 = vld [vmem:[#allocation2 + $0x30] sm:$0xff]  ;;  %v1196_v18 = vadd.f32 %v1094_v5, %v330_v63  ;;  %v2132_v21 = vadd.f32 %v2131_v15, %v2130_v6  ;;  %v1097_v22 = vadd.f32 %v2817_v11, %v1096_v13 }
 0x135   : > { %1491 = vst.msk [vmem:[%s2841_s26 + $0xc] sm:$0xf] %vm1487_vm1, %v2043_v9  ;;  %v1301_v23 = vadd.f32 %v2827_v19, %v1262_v17  ;;  %v1260_v24 = vld [vmem:[#allocation2 + $0x20] sm:$0xff]  ;;  %v1199_v25 = vadd.f32 %v1105_v12, %v333_v7 }
 0x136   : > { %1231 = vst.msk [vmem:[#allocation2 + $0x50] sm:$0xff] %vm289_vm0, %v1198_v10  ;;  %v1299_v27 = vadd.f32 %v2827_v19, %v1260_v24  ;;  %v1263_v28 = vld [vmem:[#allocation2 + $0x38] sm:$0xff]  ;;  %1229 = vst.msk [vmem:[#allocation2 + $0x40] sm:$0xff] %vm289_vm0, %v1196_v18  ;;  %v1197_v29 = vadd.f32 %v1097_v22, %v331_v16 }
 0x137   : > { %1489 = vst.msk [vmem:[%s2841_s26 + $0x4] sm:$0xf] %vm1487_vm1, %v2041_v0  ;;  %v1333_v30 = vmax.f32 %v1301_v23, 0.0  ;;  %v1302_v31 = vadd.f32 %v2827_v19, %v1263_v28  ;;  %v1261_v11 = vld [vmem:[#allocation2 + $0x28] sm:$0xff] }
 0x138   : > { %1232 = vst.msk [vmem:[#allocation2 + $0x58] sm:$0xff] %vm289_vm0, %v1199_v25  ;;  %v1331_v33 = vmax.f32 %v1299_v27, 0.0  ;;  %v1300_v34 = vadd.f32 %v2827_v19, %v1261_v11  ;;  %1230 = vst.msk [vmem:[#allocation2 + $0x48] sm:$0xff] %vm289_vm0, %v1197_v29  ;;  %v2133_v35 = vpop.f32.mrb[28].mxu0  ;;  %v2241_v36 = vpop.f32.mrb[28].mxu1 }
 0x139   : > { %v2046_v39 = vpack.c.bf16 %v1333_v30, %v1333_v30  ;;  %v1334_v40 = vmax.f32 %v1302_v31, 0.0  ;;  %v2134_v41 = vpop.f32.mrb[29].mxu0  ;;  %v1109_v45 = vpop.f32.mrb[29].mxu1  ;;  %v338_v30 = vld [vmem:[#allocation2 + $0x80] sm:$0xff] }
 0x13a   : > { %v2044_v46 = vpack.c.bf16 %v1331_v33, %v1331_v33  ;;  %v1332_v37 = vmax.f32 %v1300_v34, 0.0  ;;  %v2135_v47 = vadd.f32 %v2134_v41, %v2133_v35  ;;  %v1110_v48 = vadd.f32 %v2129_v4, %v1109_v45  ;;  %v2136_v49 = vpop.f32.mrb[30].mxu0  ;;  %v2242_v51 = vpop.f32.mrb[30].mxu1 }
 0x13b   : > { %1494 = vst.msk [vmem:[%s2841_s26 + $0x18] sm:$0xf] %vm1487_vm1, %v2046_v39  ;;  %v2047_v52 = vpack.c.bf16 %v1334_v40, %v1334_v40  ;;  %v2137_v43 = vpop.f32.mrb[31].mxu0  ;;  %v1112_v54 = vpop.f32.mrb[31].mxu1  ;;  %v339_v39 = vld [vmem:[#allocation2 + $0x88] sm:$0xff] }
 0x13c   : > { %1492 = vst.msk [vmem:[%s2841_s26 + $0x10] sm:$0xf] %vm1487_vm1, %v2044_v46  ;;  %v2045_v55 = vpack.c.bf16 %v1332_v37, %v1332_v37  ;;  %v1118_v58 = vadd.f32 %v2241_v36, %v2135_v47  ;;  %v1200_v59 = vadd.f32 %v1110_v48, %v334_v42  ;;  %v2138_v60 = vadd.f32 %v2137_v43, %v2136_v49 }
 0x13d   : > { %v1266_v57 = vld [vmem:[#allocation2 + $0x50] sm:$0xff]  ;;  %1495 = vst.msk [vmem:[%s2841_s26 + $0x1c] sm:$0xf] %vm1487_vm1, %v2047_v52  ;;  %v1264_v63 = vld [vmem:[#allocation2 + $0x40] sm:$0xff]  ;;  %v1113_v2 = vadd.f32 %v2132_v21, %v1112_v54 }
 0x13e   : > { %v1305_v62 = vadd.f32 %v2827_v19, %v1266_v57  ;;  %1493 = vst.msk [vmem:[%s2841_s26 + $0x14] sm:$0xf] %vm1487_vm1, %v2045_v55  ;;  %v1303_v3 = vadd.f32 %v2827_v19, %v1264_v63  ;;  %v1202_v5 = vadd.f32 %v1118_v58, %v336_v53  ;;  %v1121_v6 = vadd.f32 %v2242_v51, %v2138_v60  ;;  %v340_v63 = vld [vmem:[#allocation2 + $0x90] sm:$0xff] }
 0x13f   : > { %v1267_v4 = vld [vmem:[#allocation2 + $0x58] sm:$0xff]  ;;  %1233 = vst.msk [vmem:[#allocation2 + $0x60] sm:$0xff] %vm289_vm0, %v1200_v59  ;;  %v1265_v9 = vld [vmem:[#allocation2 + $0x48] sm:$0xff]  ;;  %v1201_v10 = vadd.f32 %v1113_v2, %v335_v61 }
 0x140   : > { %v1337_v7 = vmax.f32 %v1305_v62, 0.0  ;;  %v1306_v8 = vadd.f32 %v2827_v19, %v1267_v4  ;;  %v1335_v12 = vmax.f32 %v1303_v3, 0.0  ;;  %v1304_v15 = vadd.f32 %v2827_v19, %v1265_v9  ;;  %1235 = vst.msk [vmem:[#allocation2 + $0x70] sm:$0xff] %vm289_vm0, %v1202_v5  ;;  %v2139_v13 = vpop.f32.mrb[32].mxu0  ;;  %v2245_v0 = vpop.f32.mrb[32].mxu1 }
 0x141   : > { %v1203_v16 = vadd.f32 %v1121_v6, %v337_v1  ;;  %1234 = vst.msk [vmem:[#allocation2 + $0x68] sm:$0xff] %vm289_vm0, %v1201_v10  ;;  %v2140_v21 = vpop.f32.mrb[33].mxu0  ;;  %v1125_v22 = vpop.f32.mrb[33].mxu1 }
 0x142   : > { %v2050_v17 = vpack.c.bf16 %v1337_v7, %v1337_v7  ;;  %v1338_v18 = vmax.f32 %v1306_v8, 0.0  ;;  %v2048_v23 = vpack.c.bf16 %v1335_v12, %v1335_v12  ;;  %v1336_v24 = vmax.f32 %v1304_v15, 0.0  ;;  %v2142_v27 = vpop.f32.mrb[34].mxu0  ;;  %v2246_v28 = vpop.f32.mrb[34].mxu1  ;;  %v341_v8 = vld [vmem:[#allocation2 + $0x98] sm:$0xff] }
 0x143   : > { %1236 = vst.msk [vmem:[#allocation2 + $0x78] sm:$0xff] %vm289_vm0, %v1203_v16  ;;  %v2141_v25 = vadd.f32 %v2140_v21, %v2139_v13  ;;  %v2143_v31 = vpop.f32.mrb[35].mxu0  ;;  %v1128_v11 = vpop.f32.mrb[35].mxu1 }
 0x144   : > { %1498 = vst.msk [vmem:[%s2841_s26 + $0x28] sm:$0xf] %vm1487_vm1, %v2050_v17  ;;  %v2051_v29 = vpack.c.bf16 %v1338_v18, %v1338_v18  ;;  %1496 = vst.msk [vmem:[%s2841_s26 + $0x20] sm:$0xf] %vm1487_vm1, %v2048_v23  ;;  %v2049_v33 = vpack.c.bf16 %v1336_v24, %v1336_v24  ;;  %v2144_v35 = vadd.f32 %v2143_v31, %v2142_v27  ;;  %v346_v24 = vld [vmem:[#allocation2 + $0xc0] sm:$0xff] }
 0x145   : > { %v1126_v34 = vadd.f32 %v2141_v25, %v1125_v22 }
 0x146   : > { %1499 = vst.msk [vmem:[%s2841_s26 + $0x2c] sm:$0xf] %vm1487_vm1, %v2051_v29  ;;  %v1268_v36 = vld [vmem:[#allocation2 + $0x60] sm:$0xff]  ;;  %1497 = vst.msk [vmem:[%s2841_s26 + $0x24] sm:$0xf] %vm1487_vm1, %v2049_v33  ;;  %v1129_v42 = vadd.f32 %v2144_v35, %v1128_v11  ;;  %v349_v11 = vld [vmem:[#allocation2 + $0xd8] sm:$0xff] }
 0x147   : > { %v1307_v40 = vadd.f32 %v2827_v19, %v1268_v36  ;;  %v1204_v41 = vadd.f32 %v1126_v34, %v338_v30  ;;  %v1270_v45 = vld [vmem:[#allocation2 + $0x70] sm:$0xff]  ;;  %v342_v35 = vld [vmem:[#allocation2 + $0xa0] sm:$0xff] }
 0x148   : > { %v1309_v46 = vadd.f32 %v2827_v19, %v1270_v45  ;;  %v1269_v47 = vld [vmem:[#allocation2 + $0x68] sm:$0xff]  ;;  %v1205_v48 = vadd.f32 %v1129_v42, %v339_v39  ;;  %v2145_v49 = vpop.f32.mrb[36].mxu0  ;;  %v2887_v51 = vpop.f32.mrb[36].mxu1 }
 0x149   : > { %v1339_v37 = vmax.f32 %v1307_v40, 0.0  ;;  %1237 = vst.msk [vmem:[#allocation2 + $0x80] sm:$0xff] %vm289_vm0, %v1204_v41  ;;  %v1308_v53 = vadd.f32 %v2827_v19, %v1269_v47  ;;  %v2146_v43 = vpop.f32.mrb[37].mxu0  ;;  %v1141_v54 = vpop.f32.mrb[37].mxu1 }
 0x14a   : > { %v1271_v52 = vld [vmem:[#allocation2 + $0x78] sm:$0xff]  ;;  %v1341_v55 = vmax.f32 %v1309_v46, 0.0  ;;  %1238 = vst.msk [vmem:[#allocation2 + $0x88] sm:$0xff] %vm289_vm0, %v1205_v48  ;;  %v2147_v59 = vadd.f32 %v2146_v43, %v2145_v49  ;;  %v2148_v60 = vpop.f32.mrb[38].mxu0  ;;  %v2892_v61 = vpop.f32.mrb[38].mxu1  ;;  %v347_v46 = vld [vmem:[#allocation2 + $0xc8] sm:$0xff] }
 0x14b   : > { %v2052_v57 = vpack.c.bf16 %v1339_v37, %v1339_v37  ;;  %v1310_v58 = vadd.f32 %v2827_v19, %v1271_v52  ;;  %v1340_v62 = vmax.f32 %v1308_v53, 0.0  ;;  %v2149_v1 = vpop.f32.mrb[39].mxu0  ;;  %v1144_v2 = vpop.f32.mrb[39].mxu1 }
 0x14c   : > { %v2054_v3 = vpack.c.bf16 %v1341_v55, %v1341_v55  ;;  %v1134_v5 = vadd.f32 %v2245_v0, %v2147_v59  ;;  %v2150_v6 = vadd.f32 %v2149_v1, %v2148_v60  ;;  %v348_v0 = vld [vmem:[#allocation2 + $0xd0] sm:$0xff] }
 0x14d   : > { %1500 = vst.msk [vmem:[%s2841_s26 + $0x30] sm:$0xf] %vm1487_vm1, %v2052_v57  ;;  %v1342_v4 = vmax.f32 %v1310_v58, 0.0  ;;  %v2053_v7 = vpack.c.bf16 %v1340_v62, %v1340_v62 }
 0x14e   : > { %1502 = vst.msk [vmem:[%s2841_s26 + $0x38] sm:$0xf] %vm1487_vm1, %v2054_v3  ;;  %v1206_v10 = vadd.f32 %v1134_v5, %v340_v63  ;;  %v1137_v12 = vadd.f32 %v2246_v28, %v2150_v6  ;;  %v350_v63 = vld [vmem:[#allocation2 + $0xe0] sm:$0xff] }
 0x14f   : > { %v2055_v9 = vpack.c.bf16 %v1342_v4, %v1342_v4  ;;  %1501 = vst.msk [vmem:[%s2841_s26 + $0x34] sm:$0xf] %vm1487_vm1, %v2053_v7  ;;  %v353_v7 = vld [vmem:[#allocation2 + $0xf8] sm:$0xff] }
 0x150   : > { %v1272_v15 = vld [vmem:[#allocation2 + $0x80] sm:$0xff]  ;;  %1239 = vst.msk [vmem:[#allocation2 + $0x90] sm:$0xff] %vm289_vm0, %v1206_v10  ;;  %v1207_v13 = vadd.f32 %v1137_v12, %v341_v8  ;;  %v2151_v17 = vpop.f32.mrb[40].mxu0  ;;  %v2253_v18 = vpop.f32.mrb[40].mxu1  ;;  %v344_v10 = vld [vmem:[#allocation2 + $0xb0] sm:$0xff] }
 0x151   : > { %1503 = vst.msk [vmem:[%s2841_s26 + $0x3c] sm:$0xf] %vm1487_vm1, %v2055_v9  ;;  %v1311_v16 = vadd.f32 %v2827_v19, %v1272_v15  ;;  %v1273_v21 = vld [vmem:[#allocation2 + $0x88] sm:$0xff]  ;;  %v1166_v22 = vadd.f32 %v2253_v18, %v2803_v26  ;;  %v2152_v23 = vpop.f32.mrb[41].mxu0  ;;  %v1157_v25 = vpop.f32.mrb[41].mxu1 }
 0x152   : > { %v1312_v28 = vadd.f32 %v2827_v19, %v1273_v21  ;;  %1240 = vst.msk [vmem:[#allocation2 + $0x98] sm:$0xff] %vm289_vm0, %v1207_v13  ;;  %v2153_v29 = vadd.f32 %v2152_v23, %v2151_v17  ;;  %v1158_v30 = vadd.f32 %v2799_v14, %v1157_v25  ;;  %v2154_v31 = vpop.f32.mrb[42].mxu0  ;;  %v2254_v33 = vpop.f32.mrb[42].mxu1  ;;  %v351_v21 = vld [vmem:[#allocation2 + $0xe8] sm:$0xff] }
 0x153   : > { %v1343_v27 = vmax.f32 %v1311_v16, 0.0  ;;  %v1214_v34 = vadd.f32 %v1166_v22, %v348_v0  ;;  %v1169_v36 = vadd.f32 %v2254_v33, %v2805_v32  ;;  %v2155_v26 = vpop.f32.mrb[43].mxu0  ;;  %v1160_v39 = vpop.f32.mrb[43].mxu1  ;;  %v343_v32 = vld [vmem:[#allocation2 + $0xa8] sm:$0xff] }
 0x154   : > { %v1344_v41 = vmax.f32 %v1312_v28, 0.0  ;;  %v1142_v42 = vadd.f32 %v2153_v29, %v1141_v54  ;;  %v1212_v45 = vadd.f32 %v1158_v30, %v346_v24  ;;  %v2156_v14 = vadd.f32 %v2155_v26, %v2154_v31 }
 0x155   : > { %v2056_v40 = vpack.c.bf16 %v1343_v27, %v1343_v27  ;;  %1247 = vst.msk [vmem:[#allocation2 + $0xd0] sm:$0xff] %vm289_vm0, %v1214_v34  ;;  %v1215_v37 = vadd.f32 %v1169_v36, %v349_v11  ;;  %v1161_v47 = vadd.f32 %v2801_v20, %v1160_v39  ;;  %v352_v20 = vld [vmem:[#allocation2 + $0xf0] sm:$0xff] }
 0x156   : > { %v2057_v48 = vpack.c.bf16 %v1344_v41, %v1344_v41  ;;  %v1208_v49 = vadd.f32 %v1142_v42, %v342_v35  ;;  %1245 = vst.msk [vmem:[#allocation2 + $0xc0] sm:$0xff] %vm289_vm0, %v1212_v45  ;;  %v1145_v53 = vadd.f32 %v2156_v14, %v1144_v2 }
 0x157   : > { %1504 = vst.msk [vmem:[%s2841_s26 + $0x40] sm:$0xf] %vm1487_vm1, %v2056_v40  ;;  %v1274_v52 = vld [vmem:[#allocation2 + $0x90] sm:$0xff]  ;;  %v1213_v43 = vadd.f32 %v1161_v47, %v347_v46 }
 0x158   : > { %1248 = vst.msk [vmem:[#allocation2 + $0xd8] sm:$0xff] %vm289_vm0, %v1215_v37  ;;  %v1313_v54 = vadd.f32 %v2827_v19, %v1274_v52  ;;  %1241 = vst.msk [vmem:[#allocation2 + $0xa0] sm:$0xff] %vm289_vm0, %v1208_v49  ;;  %v2157_v55 = vpop.f32.mrb[44].mxu0  ;;  %v2257_v57 = vpop.f32.mrb[44].mxu1  ;;  %v1209_v59 = vadd.f32 %v1145_v53, %v343_v32 }
 0x159   : > { %1505 = vst.msk [vmem:[%s2841_s26 + $0x44] sm:$0xf] %vm1487_vm1, %v2057_v48  ;;  %v1275_v58 = vld [vmem:[#allocation2 + $0x98] sm:$0xff]  ;;  %v1182_v60 = vadd.f32 %v2257_v57, %v2811_v50  ;;  %v2158_v62 = vpop.f32.mrb[45].mxu0  ;;  %v1173_v1 = vpop.f32.mrb[45].mxu1 }
 0x15a   : > { %1246 = vst.msk [vmem:[#allocation2 + $0xc8] sm:$0xff] %vm289_vm0, %v1213_v43  ;;  %v1345_v2 = vmax.f32 %v1313_v54, 0.0  ;;  %v1314_v3 = vadd.f32 %v2827_v19, %v1275_v58  ;;  %v2159_v4 = vadd.f32 %v2158_v62, %v2157_v55  ;;  %v1174_v5 = vadd.f32 %v2807_v38, %v1173_v1  ;;  %v2160_v6 = vpop.f32.mrb[46].mxu0  ;;  %v2258_v8 = vpop.f32.mrb[46].mxu1  ;;  %1242 = vst.msk [vmem:[#allocation2 + $0xa8] sm:$0xff] %vm289_vm0, %v1209_v59 }
 0x15b   : > { %v1218_v9 = vadd.f32 %v1182_v60, %v352_v20  ;;  %v1185_v12 = vadd.f32 %v2258_v8, %v2813_v56  ;;  %v2161_v50 = vpop.f32.mrb[47].mxu0  ;;  %v1176_v15 = vpop.f32.mrb[47].mxu1 }
 0x15c   : > { %v2058_v16 = vpack.c.bf16 %v1345_v2, %v1345_v2  ;;  %v1346_v13 = vmax.f32 %v1314_v3, 0.0  ;;  %v1282_v17 = vld [vmem:[#allocation2 + $0xd0] sm:$0xff]  ;;  %v1150_v0 = vadd.f32 %v2887_v51, %v2159_v4  ;;  %v1216_v18 = vadd.f32 %v1174_v5, %v350_v63  ;;  %v345_v51 = vld [vmem:[#allocation2 + $0xb8] sm:$0xff] }
 0x15d   : > { %v1321_v38 = vadd.f32 %v2827_v19, %v1282_v17  ;;  %v1280_v22 = vld [vmem:[#allocation2 + $0xc0] sm:$0xff]  ;;  %1251 = vst.msk [vmem:[#allocation2 + $0xf0] sm:$0xff] %vm289_vm0, %v1218_v9  ;;  %v1219_v23 = vadd.f32 %v1185_v12, %v353_v7  ;;  %v2162_v24 = vadd.f32 %v2161_v50, %v2160_v6  ;;  %v1177_v25 = vadd.f32 %v2809_v44, %v1176_v15 }
 0x15e   : > { %1506 = vst.msk [vmem:[%s2841_s26 + $0x48] sm:$0xf] %vm1487_vm1, %v2058_v16  ;;  %v2059_v56 = vpack.c.bf16 %v1346_v13, %v1346_v13  ;;  %v1319_v27 = vadd.f32 %v2827_v19, %v1280_v22  ;;  %v1210_v29 = vadd.f32 %v1150_v0, %v344_v10 }
 0x15f   : > { %v1283_v28 = vld [vmem:[#allocation2 + $0xd8] sm:$0xff]  ;;  %1249 = vst.msk [vmem:[#allocation2 + $0xe0] sm:$0xff] %vm289_vm0, %v1216_v18  ;;  %v1353_v30 = vmax.f32 %v1321_v38, 0.0  ;;  %v1276_v31 = vld [vmem:[#allocation2 + $0xa0] sm:$0xff]  ;;  %1252 = vst.msk [vmem:[#allocation2 + $0xf8] sm:$0xff] %vm289_vm0, %v1219_v23  ;;  %v1153_v33 = vadd.f32 %v2892_v61, %v2162_v24  ;;  %v1217_v44 = vadd.f32 %v1177_v25, %v351_v21 }
 0x160   : > { %v1322_v11 = vadd.f32 %v2827_v19, %v1283_v28  ;;  %1507 = vst.msk [vmem:[%s2841_s26 + $0x4c] sm:$0xf] %vm1487_vm1, %v2059_v56  ;;  %v1315_v34 = vadd.f32 %v2827_v19, %v1276_v31  ;;  %v1351_v35 = vmax.f32 %v1319_v27, 0.0 }
 0x161   : > { %v1281_v36 = vld [vmem:[#allocation2 + $0xc8] sm:$0xff]  ;;  %1243 = vst.msk [vmem:[#allocation2 + $0xb0] sm:$0xff] %vm289_vm0, %v1210_v29  ;;  %v2066_v26 = vpack.c.bf16 %v1353_v30, %v1353_v30  ;;  %v1211_v41 = vadd.f32 %v1153_v33, %v345_v51  ;;  %1250 = vst.msk [vmem:[#allocation2 + $0xe8] sm:$0xff] %vm289_vm0, %v1217_v44 }
 0x162   : > { %v1354_v39 = vmax.f32 %v1322_v11, 0.0  ;;  %v1320_v40 = vadd.f32 %v2827_v19, %v1281_v36  ;;  %v1347_v42 = vmax.f32 %v1315_v34, 0.0  ;;  %v2064_v61 = vpack.c.bf16 %v1351_v35, %v1351_v35  ;;  %v1277_v45 = vld [vmem:[#allocation2 + $0xa8] sm:$0xff] }
 0x163   : > { %1514 = vst.msk [vmem:[%s2841_s26 + $0x68] sm:$0xf] %vm1487_vm1, %v2066_v26  ;;  %v1316_v37 = vadd.f32 %v2827_v19, %v1277_v45 }
 0x164   : > { %v2067_v46 = vpack.c.bf16 %v1354_v39, %v1354_v39  ;;  %v1352_v14 = vmax.f32 %v1320_v40, 0.0  ;;  %1244 = vst.msk [vmem:[#allocation2 + $0xb8] sm:$0xff] %vm289_vm0, %v1211_v41  ;;  %v2060_v47 = vpack.c.bf16 %v1347_v42, %v1347_v42  ;;  %v1286_v48 = vld [vmem:[#allocation2 + $0xf0] sm:$0xff] }
 0x165   : > { %1512 = vst.msk [vmem:[%s2841_s26 + $0x60] sm:$0xf] %vm1487_vm1, %v2064_v61  ;;  %v1348_v49 = vmax.f32 %v1316_v37, 0.0  ;;  %v1325_v52 = vadd.f32 %v2827_v19, %v1286_v48 }
 0x166   : > { %1515 = vst.msk [vmem:[%s2841_s26 + $0x6c] sm:$0xf] %vm1487_vm1, %v2067_v46  ;;  %v2065_v32 = vpack.c.bf16 %v1352_v14, %v1352_v14  ;;  %v1284_v53 = vld [vmem:[#allocation2 + $0xe0] sm:$0xff]  ;;  %1508 = vst.msk [vmem:[%s2841_s26 + $0x50] sm:$0xf] %vm1487_vm1, %v2060_v47  ;;  %v1287_v54 = vld [vmem:[#allocation2 + $0xf8] sm:$0xff] }
 0x167   : > { %v1323_v43 = vadd.f32 %v2827_v19, %v1284_v53  ;;  %v2061_v55 = vpack.c.bf16 %v1348_v49, %v1348_v49  ;;  %v1357_v20 = vmax.f32 %v1325_v52, 0.0  ;;  %v1326_v58 = vadd.f32 %v2827_v19, %v1287_v54 }
 0x168   : > { %1513 = vst.msk [vmem:[%s2841_s26 + $0x64] sm:$0xf] %vm1487_vm1, %v2065_v32  ;;  %v1278_v57 = vld [vmem:[#allocation2 + $0xb0] sm:$0xff]  ;;  %v1285_v62 = vld [vmem:[#allocation2 + $0xe8] sm:$0xff] }
 0x169   : > { %v1317_v59 = vadd.f32 %v2827_v19, %v1278_v57  ;;  %v1355_v60 = vmax.f32 %v1323_v43, 0.0  ;;  %1509 = vst.msk [vmem:[%s2841_s26 + $0x54] sm:$0xf] %vm1487_vm1, %v2061_v55  ;;  %v2070_v63 = vpack.c.bf16 %v1357_v20, %v1357_v20  ;;  %v1358_v1 = vmax.f32 %v1326_v58, 0.0 }
 0x16a   : > { %v1324_v2 = vadd.f32 %v2827_v19, %v1285_v62 }
 0x16b   : > { %v1349_v3 = vmax.f32 %v1317_v59, 0.0  ;;  %v2068_v4 = vpack.c.bf16 %v1355_v60, %v1355_v60  ;;  %v1279_v5 = vld [vmem:[#allocation2 + $0xb8] sm:$0xff]  ;;  %1518 = vst.msk [vmem:[%s2841_s26 + $0x78] sm:$0xf] %vm1487_vm1, %v2070_v63  ;;  %v2071_v6 = vpack.c.bf16 %v1358_v1, %v1358_v1 }
 0x16c   : > { %v1318_v7 = vadd.f32 %v2827_v19, %v1279_v5  ;;  %v1356_v8 = vmax.f32 %v1324_v2, 0.0  ;;  %1526 = sbr.rel (!%p2626_p3) target bundleno = 441 (0x1b9), region = 44 }
 0x16d   : > { %v2062_v9 = vpack.c.bf16 %v1349_v3, %v1349_v3  ;;  %1516 = vst.msk [vmem:[%s2841_s26 + $0x70] sm:$0xf] %vm1487_vm1, %v2068_v4  ;;  %1519 = vst.msk [vmem:[%s2841_s26 + $0x7c] sm:$0xf] %vm1487_vm1, %v2071_v6 }
 0x16e   : > { %v1350_v10 = vmax.f32 %v1318_v7, 0.0  ;;  %v2069_v12 = vpack.c.bf16 %v1356_v8, %v1356_v8 }
 0x16f   : > { %1510 = vst.msk [vmem:[%s2841_s26 + $0x58] sm:$0xf] %vm1487_vm1, %v2062_v9 }
 0x170   : > { %v2063_v50 = vpack.c.bf16 %v1350_v10, %v1350_v10  ;;  %1517 = vst.msk [vmem:[%s2841_s26 + $0x74] sm:$0xf] %vm1487_vm1, %v2069_v12 }
 0x172   : > { %1511 = vst.msk [vmem:[%s2841_s26 + $0x5c] sm:$0xf] %vm1487_vm1, %v2063_v50 }
 0x173   : > { %s3129_s27 = smov (!%p1529_p9, %s1528_s27), 32 }
 0x174   : > { %s2025_s6 = sshll.u32 %s3129_s27, 6 }
 0x175   : > { %p2028_p10 = scmp.eq.s32.totalorder %s2025_s6, 0 }
 0x176   : > { %s2987_s7 = sshrl.u32 (!%p2028_p10), %s3129_s27, 5 }
 0x177   : > { %1538 = sbr.rel (%p2028_p10) target bundleno = 441 (0x1b9), region = 48  ;;  %p2029_p11 = scmp.le.s32.totalorder (!%p2028_p10), %s2987_s7, 0 }
 0x17e   : > { %1835 = sbr.rel (%p2029_p11) target bundleno = 420 (0x1a4), region = 126  ;;  %s3119_s14 = smov (!%p2029_p11), %s2981_s5 }
 0x17f   : > { %s3120_s20 = smov (!%p2029_p11), %s2841_s26  ;;  %s2996_s25 = smov (!%p2029_p11), 0  }
 0x180   : > { %s2998_s8 = smov (!%p2029_p11), 0  }
 0x185 LB: >> { %v1554_v19 = vld [vmem:[%s2547_s20] sm:$0xf]  ;;  %v1556_v15 = vld [vmem:[%s2547_s20 + $0x4] sm:$0xf]  ;;  %v1558_v16 = vld [vmem:[%s2547_s20 + $0x8] sm:$0xf]  ;;  %s2555_s8 = sphi %s2998_s8, %s1548_s8   ;;  %s2551_s25 = sphi %s2996_s25, %s3121_s25   ;;  %s2547_s20 = sphi %s3120_s20, %s1623_s20   ;;  %s2543_s14 = sphi %s3119_s14, %s1624_s14  }
 0x186   : >> { %1555 = vst [vmem:[%s2543_s14] sm:$0xf] %v1554_v19  ;;  %1557 = vst [vmem:[%s2543_s14 + $0x4] sm:$0xf] %v1556_v15  ;;  %v1560_v13 = vld [vmem:[%s2547_s20 + $0xc] sm:$0xf]  ;;  %s1618_s9 = sadd.s32 1, %s2551_s25 }
 0x187   : >> { %1559 = vst [vmem:[%s2543_s14 + $0x8] sm:$0xf] %v1558_v16  ;;  %v1562_v17 = vld [vmem:[%s2547_s20 + $0x10] sm:$0xf]  ;;  %v1564_v0 = vld [vmem:[%s2547_s20 + $0x14] sm:$0xf]  ;;  %p1619_p12 = scmp.ge.s32.totalorder %s1618_s9, %s2987_s7 }
 0x188   : >> { %1561 = vst [vmem:[%s2543_s14 + $0xc] sm:$0xf] %v1560_v13  ;;  %1563 = vst [vmem:[%s2543_s14 + $0x10] sm:$0xf] %v1562_v17  ;;  %v1566_v18 = vld [vmem:[%s2547_s20 + $0x18] sm:$0xf] }
 0x189   : >> { %1565 = vst [vmem:[%s2543_s14 + $0x14] sm:$0xf] %v1564_v0  ;;  %v1568_v21 = vld [vmem:[%s2547_s20 + $0x1c] sm:$0xf]  ;;  %v1570_v38 = vld [vmem:[%s2547_s20 + $0x20] sm:$0xf] }
 0x18a   : >> { %1567 = vst [vmem:[%s2543_s14 + $0x18] sm:$0xf] %v1566_v18  ;;  %1569 = vst [vmem:[%s2543_s14 + $0x1c] sm:$0xf] %v1568_v21  ;;  %v1572_v22 = vld [vmem:[%s2547_s20 + $0x24] sm:$0xf] }
 0x18b   : >> { %1571 = vst [vmem:[%s2543_s14 + $0x20] sm:$0xf] %v1570_v38  ;;  %v1574_v23 = vld [vmem:[%s2547_s20 + $0x28] sm:$0xf]  ;;  %v1576_v24 = vld [vmem:[%s2547_s20 + $0x2c] sm:$0xf] }
 0x18c   : >> { %1573 = vst [vmem:[%s2543_s14 + $0x24] sm:$0xf] %v1572_v22  ;;  %1575 = vst [vmem:[%s2543_s14 + $0x28] sm:$0xf] %v1574_v23  ;;  %v1578_v25 = vld [vmem:[%s2547_s20 + $0x30] sm:$0xf] }
 0x18d   : >> { %1577 = vst [vmem:[%s2543_s14 + $0x2c] sm:$0xf] %v1576_v24  ;;  %v1580_v56 = vld [vmem:[%s2547_s20 + $0x34] sm:$0xf]  ;;  %v1582_v27 = vld [vmem:[%s2547_s20 + $0x38] sm:$0xf] }
 0x18e   : >> { %1579 = vst [vmem:[%s2543_s14 + $0x30] sm:$0xf] %v1578_v25  ;;  %1581 = vst [vmem:[%s2543_s14 + $0x34] sm:$0xf] %v1580_v56  ;;  %v1584_v28 = vld [vmem:[%s2547_s20 + $0x3c] sm:$0xf] }
 0x18f   : >> { %1583 = vst [vmem:[%s2543_s14 + $0x38] sm:$0xf] %v1582_v27  ;;  %v1586_v29 = vld [vmem:[%s2547_s20 + $0x40] sm:$0xf]  ;;  %v1588_v51 = vld [vmem:[%s2547_s20 + $0x44] sm:$0xf] }
 0x190   : >> { %1585 = vst [vmem:[%s2543_s14 + $0x3c] sm:$0xf] %v1584_v28  ;;  %1587 = vst [vmem:[%s2543_s14 + $0x40] sm:$0xf] %v1586_v29  ;;  %v1590_v30 = vld [vmem:[%s2547_s20 + $0x48] sm:$0xf] }
 0x191   : >> { %1589 = vst [vmem:[%s2543_s14 + $0x44] sm:$0xf] %v1588_v51  ;;  %v1592_v31 = vld [vmem:[%s2547_s20 + $0x4c] sm:$0xf]  ;;  %v1594_v11 = vld [vmem:[%s2547_s20 + $0x50] sm:$0xf] }
 0x192   : >> { %1591 = vst [vmem:[%s2543_s14 + $0x48] sm:$0xf] %v1590_v30  ;;  %1593 = vst [vmem:[%s2543_s14 + $0x4c] sm:$0xf] %v1592_v31  ;;  %v1596_v33 = vld [vmem:[%s2547_s20 + $0x54] sm:$0xf] }
 0x193   : >> { %1595 = vst [vmem:[%s2543_s14 + $0x50] sm:$0xf] %v1594_v11  ;;  %v1598_v44 = vld [vmem:[%s2547_s20 + $0x58] sm:$0xf]  ;;  %v1600_v34 = vld [vmem:[%s2547_s20 + $0x5c] sm:$0xf] }
 0x194   : >> { %1597 = vst [vmem:[%s2543_s14 + $0x54] sm:$0xf] %v1596_v33  ;;  %1599 = vst [vmem:[%s2543_s14 + $0x58] sm:$0xf] %v1598_v44  ;;  %v1602_v35 = vld [vmem:[%s2547_s20 + $0x60] sm:$0xf] }
 0x195   : >> { %1601 = vst [vmem:[%s2543_s14 + $0x5c] sm:$0xf] %v1600_v34  ;;  %v1604_v36 = vld [vmem:[%s2547_s20 + $0x64] sm:$0xf]  ;;  %v1606_v26 = vld [vmem:[%s2547_s20 + $0x68] sm:$0xf] }
 0x196   : >> { %1603 = vst [vmem:[%s2543_s14 + $0x60] sm:$0xf] %v1602_v35  ;;  %1605 = vst [vmem:[%s2543_s14 + $0x64] sm:$0xf] %v1604_v36  ;;  %v1608_v39 = vld [vmem:[%s2547_s20 + $0x6c] sm:$0xf] }
 0x197   : >> { %1607 = vst [vmem:[%s2543_s14 + $0x68] sm:$0xf] %v1606_v26  ;;  %v1610_v40 = vld [vmem:[%s2547_s20 + $0x70] sm:$0xf]  ;;  %v1612_v41 = vld [vmem:[%s2547_s20 + $0x74] sm:$0xf] }
 0x198   : >> { %1609 = vst [vmem:[%s2543_s14 + $0x6c] sm:$0xf] %v1608_v39  ;;  %1611 = vst [vmem:[%s2543_s14 + $0x70] sm:$0xf] %v1610_v40  ;;  %v1614_v42 = vld [vmem:[%s2547_s20 + $0x78] sm:$0xf] }
 0x199   : >> { %1613 = vst [vmem:[%s2543_s14 + $0x74] sm:$0xf] %v1612_v41  ;;  %v1616_v61 = vld [vmem:[%s2547_s20 + $0x7c] sm:$0xf]  ;;  %1615 = vst [vmem:[%s2543_s14 + $0x78] sm:$0xf] %v1614_v42 }
 0x19a   : >> { %1617 = vst [vmem:[%s2543_s14 + $0x7c] sm:$0xf] %v1616_v61  ;;  %s3131_s9 = smov (%p1619_p12, %s1618_s9), 0  ;;  %s1548_s8 = sadd.s32 1, %s2555_s8  }
 0x19b   : >> { %s2030_s10 = sshll.u32 %s3131_s9, 7  ;;  %p1547_p13 = scmp.ge.s32.totalorder %s1548_s8, %s2987_s7 }
 0x19c   : >> { %s1623_s20 = scalar_lea.vmem %s2841_s26, %s2030_s10 [#allocation3]   ;;  %s1624_s14 = scalar_lea.vmem %s2981_s5, %s2030_s10  }
 0x19d   : >> { %s3121_s25 = smov %s3131_s9  ;;  %1550 = sbr.rel (!%p1547_p13) target bundleno = 389 (0x185), region = 132 }
 0x1a4 PF: > { %s3091_s11 = sand.u32 31, %s3129_s27   ;;  %s2073_s17 = sshll.u32 %s2987_s7, 7 }
 0x1a5   : > { %s1629_s19 = scalar_lea.vmem %s2841_s26, %s2073_s17 [#allocation3]   ;;  %s1631_s21 = scalar_lea.vmem %s2981_s5, %s2073_s17  }
 0x1a6   : > { %p2035_p0 = scmp.le.s32.totalorder %s3091_s11, 0 }
 0x1a7   : > { %s2557_s28 = smov (!%p2035_p0), %s1631_s21   ;;  %s2561_s23 = smov (!%p2035_p0), %s1629_s19  }
 0x1a8   : > { %1849 = sbr.rel (%p2035_p0) target bundleno = 441 (0x1b9), region = 137  ;;  %s2565_s24 = smov (!%p2035_p0), 0  }
 0x1a9   : > { %s2569_s12 = smov (!%p2035_p0), 0  }
 0x1af LB: >> { %v1641_v45 = vld [vmem:[%s2563_s23] sm:$0xf]  ;;  %s1643_s27 = sadd.s32 1, %s2567_s24  ;;  %s1635_s12 = sadd.s32 1, %s2571_s12   ;;  %s2571_s12 = sphi %s2569_s12, %s1635_s12   ;;  %s2567_s24 = sphi %s2565_s24, %s2566_s24   ;;  %s2563_s23 = sphi %s2561_s23, %s1648_s23   ;;  %s2559_s28 = sphi %s2557_s28, %s1649_s28  }
 0x1b0   : >> { %1642 = vst [vmem:[%s2559_s28] sm:$0xf] %v1641_v45  ;;  %p1644_p1 = scmp.ge.s32.totalorder %s1643_s27, %s3091_s11  ;;  %p1634_p2 = scmp.ge.s32.totalorder %s1635_s12, %s3091_s11 }
 0x1b2   : >> { %s3133_s27 = smov (%p1644_p1, %s1643_s27), 0  ;;  %1637 = sbr.rel (!%p1634_p2) target bundleno = 431 (0x1af), region = 143 }
 0x1b3   : >> { %s2036_s26 = sshll.u32 %s3133_s27, 2  ;;  %s2566_s24 = smov %s3133_s27  }
 0x1b4   : >> { %s1648_s23 = scalar_lea.vmem %s1629_s19, %s2036_s26 [#allocation3]   ;;  %s1649_s28 = scalar_lea.vmem %s1631_s21, %s2036_s26  }
 0x1b9 PF: > { %s13_s16 = sadd.s32 1, %s2539_s16   ;;  %s3122_s12 = smov %s2527_s13 }
 0x1ba   : > { %p10_p3 = scmp.ge.s32.totalorder %s13_s16, 4   ;;  %s3123_s13 = smov %s2635_s22 }
 0x1bb   : > { %s3124_s14 = smov %s2535_s15  ;;  %s3125_s15 = smov %s3127_s18 }
 0x1bc   :  { %12 = sbr.rel (!%p10_p3) target bundleno = 3 (0x3), region = 154 }

// kernel: alexnet_conv4_forward.8
= control target key start
LH: loop header
LB: loop body
LE: loop exit
PB: predicated region body
PF: predicated region fallthrough
CT: control target
= control target key end

     0   :  { %s1667_s12 = smov 0   ;;  %s1669_s13 = smov 0   ;;  %s1949_s0 = inlined_call_operand.vmem [shape: bf16[98,1664], index: 0, kind: input, shape index: {}]   ;;  %s1950_s1 = inlined_call_operand.vmem [shape: bf16[1664,192], index: 1, kind: input, shape index: {}]   ;;  %s1951_s2 = inlined_call_operand.vmem [shape: f32[1,192], index: 2, kind: input, shape index: {}]   ;;  %s1952_s3 = inlined_call_operand.vmem [shape: bf16[98,192], index: 3, kind: output, shape index: {}]  }
   0x1   :  { %s1671_s14 = smov 0   ;;  %s1673_s15 = smov 0  }
   0x2   :  { %s1675_s16 = smov 0  }
   0x3 LB: > { %s1335_s17 = sadd.s32 4294967295, %s1635_s16   ;;  %s25_s18 = sadd.s32 1, %s1631_s15  ;;  %s1635_s16 = sphi %s1675_s16, %s13_s16   ;;  %s1631_s15 = sphi %s1673_s15, %s1958_s15   ;;  %s1627_s14 = sphi %s1671_s14, %s1957_s14   ;;  %s1623_s13 = sphi %s1669_s13, %s1956_s13   ;;  %s1619_s12 = sphi %s1667_s12, %s1955_s12  }
   0x4   : > { %p26_p0 = scmp.ge.s32.totalorder %s25_s18, 13  ;;  %p48_p1 = scmp.ne.s32.totalorder %s1623_s13, %s1619_s12 }
   0x5   : > { %p49_p2 = scmp.eq.s32.totalorder %s1635_s16, 0  ;;  %s41_s20 = sadd.s32 1, %s1623_s13 }
   0x6   : > { %s1960_s18 = smov (%p26_p0, %s25_s18), 0  ;;  %p1338_p5 = scmp.ge.s32.totalorder %s1635_s16, 13 }
   0x7   : > { %p50_p3 = por %p49_p2, %p48_p1  ;;  %s37_s19 = ssub.s32 %s1631_s15, %s1960_s18 }
   0x8   : > { %p39_p4 = scmp.eq.s32.totalorder %s37_s19, 0  ;;  %164 = sbr.rel (%p1338_p5) target bundleno = 39 (0x27), region = 20 }
   0xa   : > { %s1703_s21 = scalar_select %p39_p4, %s1623_s13, %s41_s20  }
   0xf   : > { %167 = sbr.rel (!%p50_p3) target bundleno = 39 (0x27), region = 24  ;;  %s169_s22 = sand.u32 (%p50_p3), 1, %s1623_s13  }
  0x10   : > { %s1339_s23 = sshll.u32 (%p50_p3), %s1631_s15, 2  ;;  %s1426_s24 = smul.u32 (%p50_p3), 56, %s169_s22 }
  0x11   : > { %s1711_s27 = scalar_lea.vmem (%p50_p3), %s1949_s0, %s1339_s23   ;;  %s1715_s29 = smov (%p50_p3), 0  }
  0x12   : > { %s1713_s28 = scalar_lea.vmem (%p50_p3), [#allocation3], %s1426_s24  }
  0x16 LB: >> { %v199_v0 = vld [vmem:[%s1711_s27] sm:$0xf]  ;;  %v201_v1 = vld [vmem:[%s1711_s27 + $0x34] sm:$0xf]  ;;  %v203_v2 = vld [vmem:[%s1711_s27 + $0x68] sm:$0xf]  ;;  %s1639_s29 = sphi %s1715_s29, %s193_s29  }
  0x17   : >> { %200 = vst [vmem:[%s1713_s28] sm:$0xf] %v199_v0  ;;  %202 = vst [vmem:[%s1713_s28 + $0x4] sm:$0xf] %v201_v1  ;;  %v205_v3 = vld [vmem:[%s1711_s27 + $0x9c] sm:$0xf]  ;;  %s193_s29 = sadd.s32 1, %s1639_s29  }
  0x18   : >> { %204 = vst [vmem:[%s1713_s28 + $0x8] sm:$0xf] %v203_v2  ;;  %v207_v4 = vld [vmem:[%s1711_s27 + $0xd0] sm:$0xf]  ;;  %v209_v5 = vld [vmem:[%s1711_s27 + $0x104] sm:$0xf] }
  0x19   : >> { %206 = vst [vmem:[%s1713_s28 + $0xc] sm:$0xf] %v205_v3  ;;  %208 = vst [vmem:[%s1713_s28 + $0x10] sm:$0xf] %v207_v4  ;;  %v211_v6 = vld [vmem:[%s1711_s27 + $0x138] sm:$0xf] }
  0x1a   : >> { %210 = vst [vmem:[%s1713_s28 + $0x14] sm:$0xf] %v209_v5  ;;  %v213_v7 = vld [vmem:[%s1711_s27 + $0x16c] sm:$0xf]  ;;  %v215_v8 = vld [vmem:[%s1711_s27 + $0x1a0] sm:$0xf] }
  0x1b   : >> { %212 = vst [vmem:[%s1713_s28 + $0x18] sm:$0xf] %v211_v6  ;;  %214 = vst [vmem:[%s1713_s28 + $0x1c] sm:$0xf] %v213_v7  ;;  %v217_v9 = vld [vmem:[%s1711_s27 + $0x1d4] sm:$0xf] }
  0x1c   : >> { %216 = vst [vmem:[%s1713_s28 + $0x20] sm:$0xf] %v215_v8  ;;  %v219_v10 = vld [vmem:[%s1711_s27 + $0x208] sm:$0xf]  ;;  %v221_v11 = vld [vmem:[%s1711_s27 + $0x23c] sm:$0xf] }
  0x1d   : >> { %218 = vst [vmem:[%s1713_s28 + $0x24] sm:$0xf] %v217_v9  ;;  %220 = vst [vmem:[%s1713_s28 + $0x28] sm:$0xf] %v219_v10  ;;  %v223_v12 = vld [vmem:[%s1711_s27 + $0x270] sm:$0xf] }
  0x1e   : >> { %222 = vst [vmem:[%s1713_s28 + $0x2c] sm:$0xf] %v221_v11  ;;  %224 = vst [vmem:[%s1713_s28 + $0x30] sm:$0xf] %v223_v12  ;;  %p192_p6 = scmp.ge.s32.totalorder %s193_s29, 1 }
  0x20   : > { %195 = sbr.rel (!%p192_p6) target bundleno = 22 (0x16), region = 194 }
  0x27 PF: > { %p1345_p7 = scmp.ge.s32.totalorder %s1635_s16, 1  ;;  %p346_p8 = scmp.lt.s32.totalorder %s1635_s16, 14 }
  0x29   : > { %p347_p9 = pnand %p1345_p7, %p346_p8 }
  0x2a   : > { %s353_s30 = sand.u32 (!%p347_p9), 1, %s1619_s12   ;;  %s1346_s4 = sshll.u32 (!%p347_p9), %s1627_s14, 4 }
  0x2b   : > { %350 = sbr.rel (%p347_p9) target bundleno = 375 (0x177), region = 76  ;;  %p390_p10 = scmp.lt.s32.totalorder (!%p347_p9), %s1346_s4, 207 }
  0x2c   : > { %s1427_s5 = smul.u32 (!%p347_p9), 56, %s353_s30  ;;  %p1349_p11 = scmp.ne.s32.totalorder (!%p347_p9), %s1627_s14, 0 }
  0x2e   : > { %s1758_s10 = scalar_lea.vmem (!%p347_p9), [#allocation3], %s1427_s5 }
  0x32   : > { %s1962_s4 = smov (!%p390_p10, %s1346_s4), 207  ;;  %414 = sbr.rel (%p1349_p11) target bundleno = 66 (0x42), region = 84 }
  0x33   : > { %s1395_s6 = sshll.u32 %s1962_s4, 3  ;;  %vm416_vm0 = vcmask (!%p1349_p11), 523264   ;;  %v1645_v13 = vmov (!%p1349_p11), 0.0  }
  0x34   : > { %s1756_s9 = scalar_lea.vmem %s1950_s1, %s1395_s6  ;;  %415 = vst [vmem:[#allocation2] sm:$0xff] (!%p1349_p11), %v1645_v13  ;;  %418 = vst [vmem:[#allocation2 + $0x10] sm:$0xff] (!%p1349_p11), %v1645_v13 }
  0x35   : > { %420 = vst [vmem:[#allocation2 + $0x20] sm:$0xff] (!%p1349_p11), %v1645_v13  ;;  %422 = vst [vmem:[#allocation2 + $0x30] sm:$0xff] (!%p1349_p11), %v1645_v13 }
  0x36   : > { %424 = vst [vmem:[#allocation2 + $0x40] sm:$0xff] (!%p1349_p11), %v1645_v13  ;;  %426 = vst [vmem:[#allocation2 + $0x50] sm:$0xff] (!%p1349_p11), %v1645_v13 }
  0x37   : > { %428 = vst [vmem:[#allocation2 + $0x60] sm:$0xff] (!%p1349_p11), %v1645_v13  ;;  %430 = vst [vmem:[#allocation2 + $0x70] sm:$0xff] (!%p1349_p11), %v1645_v13 }
  0x38   : > { %432 = vst [vmem:[#allocation2 + $0x80] sm:$0xff] (!%p1349_p11), %v1645_v13  ;;  %434 = vst [vmem:[#allocation2 + $0x90] sm:$0xff] (!%p1349_p11), %v1645_v13 }
  0x39   : > { %436 = vst [vmem:[#allocation2 + $0xa0] sm:$0xff] %v1645_v13  ;;  %438 = vst [vmem:[#allocation2 + $0xb0] sm:$0xff] %v1645_v13 }
  0x3a   : > { %440 = vst [vmem:[#allocation2 + $0xc0] sm:$0xff] %v1645_v13  ;;  %442 = vst [vmem:[#allocation2 + $0xd0] sm:$0xff] %v1645_v13 }
  0x3b   : > { %417 = vst.msk [vmem:[#allocation2 + $0x8] sm:$0xff] %vm416_vm0, %v1645_v13  ;;  %419 = vst.msk [vmem:[#allocation2 + $0x18] sm:$0xff] %vm416_vm0, %v1645_v13 }
  0x3c   : > { %421 = vst.msk [vmem:[#allocation2 + $0x28] sm:$0xff] %vm416_vm0, %v1645_v13  ;;  %423 = vst.msk [vmem:[#allocation2 + $0x38] sm:$0xff] %vm416_vm0, %v1645_v13 }
  0x3d   : > { %425 = vst.msk [vmem:[#allocation2 + $0x48] sm:$0xff] %vm416_vm0, %v1645_v13  ;;  %427 = vst.msk [vmem:[#allocation2 + $0x58] sm:$0xff] %vm416_vm0, %v1645_v13 }
  0x3e   : > { %429 = vst.msk [vmem:[#allocation2 + $0x68] sm:$0xff] %vm416_vm0, %v1645_v13  ;;  %431 = vst.msk [vmem:[#allocation2 + $0x78] sm:$0xff] %vm416_vm0, %v1645_v13 }
  0x3f   : > { %433 = vst.msk [vmem:[#allocation2 + $0x88] sm:$0xff] %vm416_vm0, %v1645_v13  ;;  %435 = vst.msk [vmem:[#allocation2 + $0x98] sm:$0xff] %vm416_vm0, %v1645_v13 }
  0x40   : > { %437 = vst.msk [vmem:[#allocation2 + $0xa8] sm:$0xff] %vm416_vm0, %v1645_v13  ;;  %439 = vst.msk [vmem:[#allocation2 + $0xb8] sm:$0xff] %vm416_vm0, %v1645_v13 }
  0x41   : > { %441 = vst.msk [vmem:[#allocation2 + $0xc8] sm:$0xff] %vm416_vm0, %v1645_v13  ;;  %443 = vst.msk [vmem:[#allocation2 + $0xd8] sm:$0xff] %vm416_vm0, %v1645_v13 }
  0x42 PF: > { %v1534_v14 = vld [vmem:[%s1756_s9 + $0x4] ss:$8 sps:$4 sm:$0xff]   ;;  %v1536_v15 = vld [vmem:[%s1756_s9] ss:$8 sps:$4 sm:$0xff]   ;;  %v1646_v16 = vmov 0   ;;  %v1564_v37 = vld [vmem:[%s1758_s10 + $0x18] sm:$0xff]  }
  0x43   : > { %656 = vmatprep.mubr.bf16.mxu0 %v1646_v16  ;;  %696 = vmatprep.mubr.bf16.mxu1 %v1646_v16  ;;  %v1537_v17 = vld [vmem:[%s1756_s9 + $0x14] ss:$8 sps:$4 sm:$0xff]   ;;  %v1539_v18 = vld [vmem:[%s1756_s9 + $0x10] ss:$8 sps:$4 sm:$0xff]   ;;  %v1540_v19 = vld [vmem:[%s1756_s9 + $0x24] ss:$8 sps:$4 sm:$0xff]  }
  0x44   : > { %624 = vmatprep.subr.bf16.mxu0 %v1534_v14  ;;  %1410 = vmatprep.subr.bf16.mxu1 %v1534_v14  ;;  %v1542_v20 = vld [vmem:[%s1756_s9 + $0x20] ss:$8 sps:$4 sm:$0xff]   ;;  %v1543_v21 = vld [vmem:[%s1756_s9 + $0x34] ss:$8 sps:$4 sm:$0xff]   ;;  %v1545_v22 = vld [vmem:[%s1756_s9 + $0x30] ss:$8 sps:$4 sm:$0xff]  }
  0x45   : > { %625 = vmatpush1.bf16.msra.mxu0 %v1536_v15  ;;  %1418 = vmatpush1.bf16.msra.mxu1 %v1536_v15  ;;  %v1546_v23 = vld [vmem:[%s1756_s9 + $0x44] ss:$8 sps:$4 sm:$0xff]   ;;  %v1548_v24 = vld [vmem:[%s1756_s9 + $0x40] ss:$8 sps:$4 sm:$0xff]   ;;  %v1549_v25 = vld [vmem:[%s1756_s9 + $0x54] ss:$8 sps:$4 sm:$0xff]  }
  0x46   : > { %626 = vmatprep.subr.bf16.mxu0 %v1537_v17  ;;  %1411 = vmatprep.subr.bf16.mxu1 %v1537_v17  ;;  %v1551_v26 = vld [vmem:[%s1756_s9 + $0x50] ss:$8 sps:$4 sm:$0xff]   ;;  %v1552_v27 = vld [vmem:[%s1756_s9 + $0x64] ss:$8 sps:$4 sm:$0xff]   ;;  %v1554_v28 = vld [vmem:[%s1756_s9 + $0x60] ss:$8 sps:$4 sm:$0xff]  }
  0x47   : > { %v1555_v29 = vld [vmem:[%s1756_s9 + $0x74] ss:$8 sps:$4 sm:$0xff]   ;;  %v1557_v30 = vld [vmem:[%s1756_s9 + $0x70] ss:$8 sps:$4 sm:$0xff]   ;;  %v1560_v33 = vld [vmem:[%s1758_s10 + $0x8] sm:$0xff]   ;;  %vm756_vm1 = vcmask 523264  }
  0x48   : > { %v1558_v31 = vld [vmem:[%s1758_s10] sm:$0xff]   ;;  %v1561_v34 = vld [vmem:[%s1758_s10 + $0x28] sm:$0xff]   ;;  %v1562_v35 = vld [vmem:[%s1758_s10 + $0x10] sm:$0xff]   ;;  %p1373_p12 = scmp.ne.s32.totalorder %s1627_s14, 12 }
  0x49   : > { %627 = vmatpush1.bf16.msra.mxu0 %v1539_v18  ;;  %1419 = vmatpush1.bf16.msra.mxu1 %v1539_v18  ;;  %v1559_v32 = vld [vmem:[%s1758_s10 + $0x20] sm:$0xff]   ;;  %v1563_v36 = vld [vmem:[%s1758_s10 + $0x30] sm:$0xff]   ;;  %vm968_vm2 = vcmask (!%p1373_p12), 1043456   ;;  %vm969_vm3 = vcmask (!%p1373_p12), 523268  }
  0x4a   : > { %628 = vmatprep.subr.bf16.mxu0 %v1540_v19  ;;  %1412 = vmatprep.subr.bf16.mxu1 %v1540_v19  ;;  %v444_v38 = vld [vmem:[#allocation2] sm:$0xff]  ;;  %v445_v40 = vld [vmem:[#allocation2 + $0x8] sm:$0xff]  ;;  %v446_v43 = vld [vmem:[#allocation2 + $0x10] sm:$0xff] }
  0x4b   : > { %v460_v39 = vld [vmem:[#allocation2 + $0x80] sm:$0xff]  ;;  %v461_v41 = vld [vmem:[#allocation2 + $0x88] sm:$0xff]  ;;  %v462_v45 = vld [vmem:[#allocation2 + $0x90] sm:$0xff] }
  0x4c   : > { %v447_v48 = vld [vmem:[#allocation2 + $0x18] sm:$0xff]  ;;  %v448_v62 = vld [vmem:[#allocation2 + $0x20] sm:$0xff]  ;;  %v449_v0 = vld [vmem:[#allocation2 + $0x28] sm:$0xff] }
  0x4d   : > { %629 = vmatpush1.bf16.msra.mxu0 %v1542_v20  ;;  %1420 = vmatpush1.bf16.msra.mxu1 %v1542_v20  ;;  %v463_v51 = vld [vmem:[#allocation2 + $0x98] sm:$0xff]  ;;  %v464_v63 = vld [vmem:[#allocation2 + $0xa0] sm:$0xff]  ;;  %v465_v1 = vld [vmem:[#allocation2 + $0xa8] sm:$0xff] }
  0x4e   : > { %630 = vmatprep.subr.bf16.mxu0 %v1543_v21  ;;  %1413 = vmatprep.subr.bf16.mxu1 %v1543_v21  ;;  %v450_v3 = vld [vmem:[#allocation2 + $0x30] sm:$0xff]  ;;  %v451_v8 = vld [vmem:[#allocation2 + $0x38] sm:$0xff]  ;;  %vm1837_vm4 = vmor (!%p1373_p12), %vm969_vm3, %vm968_vm2 }
  0x4f   : > { %v466_v5 = vld [vmem:[#allocation2 + $0xb0] sm:$0xff]  ;;  %v467_v11 = vld [vmem:[#allocation2 + $0xb8] sm:$0xff] }
  0x51   : > { %631 = vmatpush1.bf16.msra.mxu0 %v1545_v22  ;;  %1421 = vmatpush1.bf16.msra.mxu1 %v1545_v22  ;;  %v452_v22 = vld [vmem:[#allocation2 + $0x40] sm:$0xff] }
  0x52   : > { %632 = vmatprep.subr.bf16.mxu0 %v1546_v23  ;;  %1414 = vmatprep.subr.bf16.mxu1 %v1546_v23  ;;  %v468_v23 = vld [vmem:[#allocation2 + $0xc0] sm:$0xff] }
  0x55   : > { %633 = vmatpush1.bf16.msra.mxu0 %v1548_v24  ;;  %1422 = vmatpush1.bf16.msra.mxu1 %v1548_v24  ;;  %v453_v24 = vld [vmem:[#allocation2 + $0x48] sm:$0xff] }
  0x56   : > { %634 = vmatprep.subr.bf16.mxu0 %v1549_v25  ;;  %1415 = vmatprep.subr.bf16.mxu1 %v1549_v25  ;;  %v469_v25 = vld [vmem:[#allocation2 + $0xc8] sm:$0xff] }
  0x59   : > { %635 = vmatpush1.bf16.msra.mxu0 %v1551_v26  ;;  %1423 = vmatpush1.bf16.msra.mxu1 %v1551_v26 }
  0x5a   : > { %636 = vmatprep.subr.bf16.mxu0 %v1552_v27  ;;  %1416 = vmatprep.subr.bf16.mxu1 %v1552_v27  ;;  %v454_v27 = vld [vmem:[#allocation2 + $0x50] sm:$0xff] }
  0x5d   : > { %637 = vmatpush1.bf16.msra.mxu0 %v1554_v28  ;;  %1424 = vmatpush1.bf16.msra.mxu1 %v1554_v28 }
  0x5e   : > { %638 = vmatprep.subr.bf16.mxu0 %v1555_v29  ;;  %1417 = vmatprep.subr.bf16.mxu1 %v1555_v29  ;;  %v470_v29 = vld [vmem:[#allocation2 + $0xd0] sm:$0xff] }
  0x61   : > { %639 = vmatpush1.bf16.msra.mxu0 %v1557_v30  ;;  %1425 = vmatpush1.bf16.msra.mxu1 %v1557_v30 }
  0x64   : > { %657 = vmatmul.mubr.bf16.vlgmr.msra.gmra.mrb[0].mxu0 %v1558_v31  ;;  %697 = vmatmul.mubr.bf16.vlgmr.msra.gmra.mrb[0].mxu1 %v1559_v32  ;;  %v455_v32 = vld [vmem:[#allocation2 + $0x58] sm:$0xff] }
  0x65   : > { %666 = vmatprep.mubr.bf16.mxu0 %v1646_v16  ;;  %706 = vmatprep.mubr.bf16.mxu1 %v1646_v16 }
  0x6c   : > { %667 = vmatmul.mubr.bf16.gmra.mrb[4].mxu0 %v1560_v33  ;;  %707 = vmatmul.mubr.bf16.gmra.mrb[4].mxu1 %v1561_v34 }
  0x6d   : > { %676 = vmatprep.mubr.bf16.mxu0 %v1646_v16  ;;  %716 = vmatprep.mubr.bf16.mxu1 %v1646_v16 }
  0x74   : > { %677 = vmatmul.mubr.bf16.gmra.mrb[8].mxu0 %v1562_v35  ;;  %717 = vmatmul.mubr.bf16.gmra.mrb[8].mxu1 %v1563_v36  ;;  %v471_v35 = vld [vmem:[#allocation2 + $0xd8] sm:$0xff] }
  0x75   : > { %686 = vmatprep.mubr.bf16.mxu0 %v1646_v16 }
  0x7c   : > { %687 = vmatmul.mubr.bf16.gmra.mrb[12].mxu0 %v1564_v37 }
 0x137   : > { %v658_v42 = vpop.f32.mrb[0].mxu0  ;;  %v698_v44 = vpop.f32.mrb[0].mxu1 }
 0x138   : > { %v727_v46 = vadd.f32 %v658_v42, %v444_v38  ;;  %v660_v47 = vpop.f32.mrb[1].mxu0  ;;  %v743_v49 = vadd.f32 %v698_v44, %v460_v39  ;;  %v700_v50 = vpop.f32.mrb[1].mxu1 }
 0x139   : > { %v728_v52 = vadd.f32 %v660_v47, %v445_v40  ;;  %v662_v53 = vpop.f32.mrb[2].mxu0  ;;  %v744_v54 = vadd.f32 %v700_v50, %v461_v41  ;;  %v702_v55 = vpop.f32.mrb[2].mxu1  ;;  %v457_v47 = vld [vmem:[#allocation2 + $0x68] sm:$0xff] }
 0x13a   : > { %755 = vst [vmem:[#allocation2] sm:$0xff] %v727_v46  ;;  %v729_v56 = vadd.f32 %v662_v53, %v446_v43  ;;  %v664_v57 = vpop.f32.mrb[3].mxu0  ;;  %772 = vst [vmem:[#allocation2 + $0x80] sm:$0xff] %v743_v49  ;;  %v745_v58 = vadd.f32 %v702_v55, %v462_v45  ;;  %v704_v59 = vpop.f32.mrb[3].mxu1  ;;  %v456_v46 = vld [vmem:[#allocation2 + $0x60] sm:$0xff]  ;;  %v458_v49 = vld [vmem:[#allocation2 + $0x70] sm:$0xff] }
 0x13b   : > { %757 = vst.msk [vmem:[#allocation2 + $0x8] sm:$0xff] %vm756_vm1, %v728_v52  ;;  %v730_v60 = vadd.f32 %v664_v57, %v447_v48  ;;  %773 = vst.msk [vmem:[#allocation2 + $0x88] sm:$0xff] %vm756_vm1, %v744_v54  ;;  %v746_v61 = vadd.f32 %v704_v59, %v463_v51  ;;  %v459_v52 = vld [vmem:[#allocation2 + $0x78] sm:$0xff] }
 0x13c   : > { %758 = vst [vmem:[#allocation2 + $0x10] sm:$0xff] %v729_v56  ;;  %774 = vst [vmem:[#allocation2 + $0x90] sm:$0xff] %v745_v58  ;;  %v818_v58 = vlaneseq (!%p1373_p12) }
 0x13d   : > { %759 = vst.msk [vmem:[#allocation2 + $0x18] sm:$0xff] %vm756_vm1, %v730_v60  ;;  %775 = vst.msk [vmem:[#allocation2 + $0x98] sm:$0xff] %vm756_vm1, %v746_v61  ;;  %v816_v60 = vld [vmem:[%s1951_s2] sm:$0x3] (!%p1373_p12) }
 0x13e   : > { %v819_v59 = vshrl.u32 (!%p1373_p12), %v818_v58, 7 }
 0x13f   : > { %v668_v2 = vpop.f32.mrb[4].mxu0  ;;  %v708_v4 = vpop.f32.mrb[4].mxu1 }
 0x140   : > { %v731_v6 = vadd.f32 %v668_v2, %v448_v62  ;;  %v670_v7 = vpop.f32.mrb[5].mxu0  ;;  %v747_v9 = vadd.f32 %v708_v4, %v464_v63  ;;  %v710_v10 = vpop.f32.mrb[5].mxu1  ;;  %v820_v63 = vsub.s32 (!%p1373_p12), 0, %v819_v59 }
 0x141   : > { %v732_v12 = vadd.f32 %v670_v7, %v449_v0  ;;  %v672_v13 = vpop.f32.mrb[6].mxu0  ;;  %v748_v14 = vadd.f32 %v710_v10, %v465_v1  ;;  %v712_v15 = vpop.f32.mrb[6].mxu1  ;;  %v788_v61 = vld [vmem:[#allocation2] sm:$0xff] (!%p1373_p12)  ;;  %v824_v0 = vsub.s32 (!%p1373_p12), 1, %v819_v59 }
 0x142   : > { %760 = vst [vmem:[#allocation2 + $0x20] sm:$0xff] %v731_v6  ;;  %v733_v16 = vadd.f32 %v672_v13, %v450_v3  ;;  %v674_v17 = vpop.f32.mrb[7].mxu0  ;;  %776 = vst [vmem:[#allocation2 + $0xa0] sm:$0xff] %v747_v9  ;;  %v749_v18 = vadd.f32 %v712_v15, %v466_v5  ;;  %v714_v19 = vpop.f32.mrb[7].mxu1  ;;  %v789_v62 = vld [vmem:[#allocation2 + $0x8] sm:$0xff] (!%p1373_p12)  ;;  %v1823_v4 = vrot.slane (!%p1373_p12), %v816_v60, %v820_v63 }
 0x143   : > { %761 = vst.msk [vmem:[#allocation2 + $0x28] sm:$0xff] %vm756_vm1, %v732_v12  ;;  %v734_v20 = vadd.f32 %v674_v17, %v451_v8  ;;  %777 = vst.msk [vmem:[#allocation2 + $0xa8] sm:$0xff] %vm756_vm1, %v748_v14  ;;  %v750_v21 = vadd.f32 %v714_v19, %v467_v11  ;;  %v790_v1 = vld [vmem:[#allocation2 + $0x10] sm:$0xff] (!%p1373_p12)  ;;  %v1825_v5 = vrot.slane (!%p1373_p12), %v816_v60, %v824_v0 }
 0x144   : > { %762 = vst [vmem:[#allocation2 + $0x30] sm:$0xff] %v733_v16  ;;  %778 = vst [vmem:[#allocation2 + $0xb0] sm:$0xff] %v749_v18  ;;  %v791_v2 = vld [vmem:[#allocation2 + $0x18] sm:$0xff] (!%p1373_p12)  ;;  %v828_v9 = vadd.f32 (!%p1373_p12), %v1823_v4, %v788_v61  ;;  %v830_v11 = vadd.f32 (!%p1373_p12), %v1823_v4, %v790_v1 }
 0x145   : > { %763 = vst.msk [vmem:[#allocation2 + $0x38] sm:$0xff] %vm756_vm1, %v734_v20  ;;  %779 = vst.msk [vmem:[#allocation2 + $0xb8] sm:$0xff] %vm756_vm1, %v750_v21  ;;  %v829_v10 = vadd.f32 (!%p1373_p12), %v1825_v5, %v789_v62  ;;  %v831_v12 = vadd.f32 (!%p1373_p12), %v1825_v5, %v791_v2 }
 0x146   : > { %v856_v19 = vmax.f32 (!%p1373_p12), %v828_v9, 0.0  ;;  %v858_v21 = vmax.f32 (!%p1373_p12), %v830_v11, 0.0 }
 0x147   : > { %v678_v26 = vpop.f32.mrb[8].mxu0  ;;  %v718_v28 = vpop.f32.mrb[8].mxu1  ;;  %v857_v20 = vmax.f32 (!%p1373_p12), %v829_v10, 0.0 }
 0x148   : > { %v735_v30 = vadd.f32 %v678_v26, %v452_v22  ;;  %v680_v31 = vpop.f32.mrb[9].mxu0  ;;  %v751_v33 = vadd.f32 %v718_v28, %v468_v23  ;;  %v720_v34 = vpop.f32.mrb[9].mxu1  ;;  %v859_v22 = vmax.f32 (!%p1373_p12), %v831_v12, 0.0 }
 0x149   : > { %v736_v36 = vadd.f32 %v680_v31, %v453_v24  ;;  %v682_v37 = vpop.f32.mrb[10].mxu0  ;;  %v752_v38 = vadd.f32 %v720_v34, %v469_v25  ;;  %v722_v39 = vpop.f32.mrb[10].mxu1  ;;  %v792_v3 = vld [vmem:[#allocation2 + $0x20] sm:$0xff] (!%p1373_p12) }
 0x14a   : > { %764 = vst [vmem:[#allocation2 + $0x40] sm:$0xff] %v735_v30  ;;  %v737_v40 = vadd.f32 %v682_v37, %v454_v27  ;;  %v684_v41 = vpop.f32.mrb[11].mxu0  ;;  %780 = vst [vmem:[#allocation2 + $0xc0] sm:$0xff] %v751_v33  ;;  %v753_v42 = vadd.f32 %v722_v39, %v470_v29  ;;  %v724_v43 = vpop.f32.mrb[11].mxu1  ;;  %v793_v6 = vld [vmem:[#allocation2 + $0x28] sm:$0xff] (!%p1373_p12)  ;;  %v832_v13 = vadd.f32 (!%p1373_p12), %v1823_v4, %v792_v3  ;;  %v808_v58 = vld [vmem:[#allocation2 + $0xa0] sm:$0xff] (!%p1373_p12) }
 0x14b   : > { %765 = vst.msk [vmem:[#allocation2 + $0x48] sm:$0xff] %vm756_vm1, %v736_v36  ;;  %v738_v44 = vadd.f32 %v684_v41, %v455_v32  ;;  %781 = vst.msk [vmem:[#allocation2 + $0xc8] sm:$0xff] %vm756_vm1, %v752_v38  ;;  %v754_v45 = vadd.f32 %v724_v43, %v471_v35  ;;  %v794_v7 = vld [vmem:[#allocation2 + $0x30] sm:$0xff] (!%p1373_p12)  ;;  %v833_v14 = vadd.f32 (!%p1373_p12), %v1825_v5, %v793_v6  ;;  %v809_v59 = vld [vmem:[#allocation2 + $0xa8] sm:$0xff] (!%p1373_p12) }
 0x14c   : > { %766 = vst [vmem:[#allocation2 + $0x50] sm:$0xff] %v737_v40  ;;  %782 = vst [vmem:[#allocation2 + $0xd0] sm:$0xff] %v753_v42  ;;  %v795_v8 = vld [vmem:[#allocation2 + $0x38] sm:$0xff] (!%p1373_p12)  ;;  %v834_v15 = vadd.f32 (!%p1373_p12), %v1823_v4, %v794_v7  ;;  %v860_v26 = vmax.f32 (!%p1373_p12), %v832_v13, 0.0  ;;  %v1396_v32 = vpack.c.bf16 (!%p1373_p12), %v857_v20, %v856_v19  ;;  %v1397_v33 = vpack.c.bf16 (!%p1373_p12), %v859_v22, %v858_v21  ;;  %v804_v42 = vld [vmem:[#allocation2 + $0x80] sm:$0xff] (!%p1373_p12) }
 0x14d   : > { %767 = vst.msk [vmem:[#allocation2 + $0x58] sm:$0xff] %vm756_vm1, %v738_v44  ;;  %783 = vst.msk [vmem:[#allocation2 + $0xd8] sm:$0xff] %vm756_vm1, %v754_v45  ;;  %v835_v16 = vadd.f32 (!%p1373_p12), %v1825_v5, %v795_v8  ;;  %v861_v27 = vmax.f32 (!%p1373_p12), %v833_v14, 0.0  ;;  %v810_v0 = vld [vmem:[#allocation2 + $0xb0] sm:$0xff] (!%p1373_p12)  ;;  %v811_v1 = vld [vmem:[#allocation2 + $0xb8] sm:$0xff] (!%p1373_p12)  ;;  %v848_v11 = vadd.f32 (!%p1373_p12), %v1823_v4, %v808_v58  ;;  %v849_v12 = vadd.f32 (!%p1373_p12), %v1825_v5, %v809_v59 }
 0x14e   : > { %v862_v28 = vmax.f32 (!%p1373_p12), %v834_v15, 0.0  ;;  %971 = vst.msk [vmem:[#allocation4] sm:$0xff] (!%p1373_p12), %vm1837_vm4, %v1396_v32  ;;  %972 = vst.msk [vmem:[#allocation4 + $0x8] sm:$0xff] (!%p1373_p12), %vm1837_vm4, %v1397_v33 }
 0x14f   : > { %v688_v48 = vpop.f32.mrb[12].mxu0  ;;  %787 = sbr.rel (%p1373_p12) target bundleno = 356 (0x164), region = 88  ;;  %v863_v29 = vmax.f32 (!%p1373_p12), %v835_v16, 0.0  ;;  %v1398_v38 = vpack.c.bf16 (!%p1373_p12), %v861_v27, %v860_v26  ;;  %v850_v16 = vadd.f32 (!%p1373_p12), %v1823_v4, %v810_v0  ;;  %v876_v19 = vmax.f32 (!%p1373_p12), %v848_v11, 0.0 }
 0x150   : > { %v739_v50 = vadd.f32 %v688_v48, %v456_v46  ;;  %v690_v51 = vpop.f32.mrb[13].mxu0  ;;  %v877_v20 = vmax.f32 (!%p1373_p12), %v849_v12, 0.0 }
 0x151   : > { %v740_v53 = vadd.f32 %v690_v51, %v457_v47  ;;  %v692_v54 = vpop.f32.mrb[14].mxu0  ;;  %v796_v17 = vld [vmem:[#allocation2 + $0x40] sm:$0xff] (!%p1373_p12)  ;;  %v1399_v39 = vpack.c.bf16 (!%p1373_p12), %v863_v29, %v862_v28  ;;  %v805_v47 = vld [vmem:[#allocation2 + $0x88] sm:$0xff] (!%p1373_p12)  ;;  %973 = vst.msk [vmem:[#allocation4 + $0x10] sm:$0xff] (!%p1373_p12), %vm1837_vm4, %v1398_v38 }
 0x152   : > { %768 = vst [vmem:[#allocation2 + $0x60] sm:$0xff] %v739_v50  ;;  %v741_v55 = vadd.f32 %v692_v54, %v458_v49  ;;  %v694_v56 = vpop.f32.mrb[15].mxu0  ;;  %v797_v18 = vld [vmem:[#allocation2 + $0x48] sm:$0xff] (!%p1373_p12)  ;;  %v836_v34 = vadd.f32 (!%p1373_p12), %v1823_v4, %v796_v17  ;;  %v845_v63 = vadd.f32 (!%p1373_p12), %v1825_v5, %v805_v47  ;;  %v812_v8 = vld [vmem:[#allocation2 + $0xc0] sm:$0xff] (!%p1373_p12)  ;;  %v851_v17 = vadd.f32 (!%p1373_p12), %v1825_v5, %v811_v1 }
 0x153   : > { %769 = vst.msk [vmem:[#allocation2 + $0x68] sm:$0xff] %vm756_vm1, %v740_v53  ;;  %v742_v57 = vadd.f32 %v694_v56, %v459_v52  ;;  %v798_v23 = vld [vmem:[#allocation2 + $0x50] sm:$0xff] (!%p1373_p12)  ;;  %v837_v35 = vadd.f32 (!%p1373_p12), %v1825_v5, %v797_v18  ;;  %v807_v53 = vld [vmem:[#allocation2 + $0x98] sm:$0xff] (!%p1373_p12)  ;;  %v813_v13 = vld [vmem:[#allocation2 + $0xc8] sm:$0xff] (!%p1373_p12)  ;;  %v852_v21 = vadd.f32 (!%p1373_p12), %v1823_v4, %v812_v8  ;;  %v1406_v27 = vpack.c.bf16 (!%p1373_p12), %v877_v20, %v876_v19 }
 0x154   : > { %770 = vst [vmem:[#allocation2 + $0x70] sm:$0xff] %v741_v55  ;;  %v799_v24 = vld [vmem:[#allocation2 + $0x58] sm:$0xff] (!%p1373_p12)  ;;  %v838_v40 = vadd.f32 (!%p1373_p12), %v1823_v4, %v798_v23  ;;  %v864_v43 = vmax.f32 (!%p1373_p12), %v836_v34, 0.0  ;;  %974 = vst.msk [vmem:[#allocation4 + $0x18] sm:$0xff] (!%p1373_p12), %vm1837_vm4, %v1399_v39  ;;  %v806_v52 = vld [vmem:[#allocation2 + $0x90] sm:$0xff] (!%p1373_p12)  ;;  %v847_v7 = vadd.f32 (!%p1373_p12), %v1825_v5, %v807_v53  ;;  %v873_v10 = vmax.f32 (!%p1373_p12), %v845_v63, 0.0 }
 0x155   : > { %771 = vst.msk [vmem:[#allocation2 + $0x78] sm:$0xff] %vm756_vm1, %v742_v57  ;;  %v839_v41 = vadd.f32 (!%p1373_p12), %v1825_v5, %v799_v24  ;;  %v865_v44 = vmax.f32 (!%p1373_p12), %v837_v35, 0.0  ;;  %v844_v57 = vadd.f32 (!%p1373_p12), %v1823_v4, %v804_v42  ;;  %v846_v6 = vadd.f32 (!%p1373_p12), %v1823_v4, %v806_v52 }
 0x156   : > { %v866_v48 = vmax.f32 %v838_v40, 0.0  ;;  %v875_v15 = vmax.f32 %v847_v7, 0.0  ;;  %v878_v23 = vmax.f32 %v850_v16, 0.0  ;;  %v879_v24 = vmax.f32 %v851_v17, 0.0  ;;  %981 = vst.msk [vmem:[#allocation4 + $0x50] sm:$0xff] %vm1837_vm4, %v1406_v27 }
 0x157   : > { %v867_v49 = vmax.f32 %v839_v41, 0.0  ;;  %v1400_v54 = vpack.c.bf16 %v865_v44, %v864_v43  ;;  %v872_v3 = vmax.f32 %v844_v57, 0.0  ;;  %v874_v14 = vmax.f32 %v846_v6, 0.0 }
 0x158   : > { %v853_v26 = vadd.f32 %v1825_v5, %v813_v13  ;;  %v880_v28 = vmax.f32 %v852_v21, 0.0  ;;  %v1407_v29 = vpack.c.bf16 %v879_v24, %v878_v23 }
 0x159   : > { %v800_v30 = vld [vmem:[#allocation2 + $0x60] sm:$0xff]  ;;  %v1401_v60 = vpack.c.bf16 %v867_v49, %v866_v48  ;;  %975 = vst.msk [vmem:[#allocation4 + $0x20] sm:$0xff] %vm1837_vm4, %v1400_v54  ;;  %v1404_v18 = vpack.c.bf16 %v873_v10, %v872_v3  ;;  %v1405_v22 = vpack.c.bf16 %v875_v15, %v874_v14 }
 0x15a   : > { %v801_v31 = vld [vmem:[#allocation2 + $0x68] sm:$0xff]  ;;  %v840_v45 = vadd.f32 %v1823_v4, %v800_v30  ;;  %v881_v30 = vmax.f32 %v853_v26, 0.0  ;;  %982 = vst.msk [vmem:[#allocation4 + $0x58] sm:$0xff] %vm1837_vm4, %v1407_v29 }
 0x15b   : > { %v802_v36 = vld [vmem:[#allocation2 + $0x70] sm:$0xff]  ;;  %v841_v46 = vadd.f32 %v1825_v5, %v801_v31  ;;  %976 = vst.msk [vmem:[#allocation4 + $0x28] sm:$0xff] %vm1837_vm4, %v1401_v60  ;;  %979 = vst.msk [vmem:[#allocation4 + $0x40] sm:$0xff] %vm1837_vm4, %v1404_v18 }
 0x15c   : > { %v803_v37 = vld [vmem:[#allocation2 + $0x78] sm:$0xff]  ;;  %v842_v50 = vadd.f32 %v1823_v4, %v802_v36  ;;  %v868_v55 = vmax.f32 %v840_v45, 0.0  ;;  %980 = vst.msk [vmem:[#allocation4 + $0x48] sm:$0xff] %vm1837_vm4, %v1405_v22  ;;  %v1408_v4 = vpack.c.bf16 %v881_v30, %v880_v28 }
 0x15d   : > { %v843_v51 = vadd.f32 %v1825_v5, %v803_v37  ;;  %v869_v56 = vmax.f32 %v841_v46, 0.0 }
 0x15e   : > { %v870_v61 = vmax.f32 %v842_v50, 0.0  ;;  %983 = vst.msk [vmem:[#allocation4 + $0x60] sm:$0xff] %vm1837_vm4, %v1408_v4 }
 0x15f   : > { %v871_v62 = vmax.f32 %v843_v51, 0.0  ;;  %v1402_v2 = vpack.c.bf16 %v869_v56, %v868_v55 }
 0x161   : > { %v1403_v9 = vpack.c.bf16 %v871_v62, %v870_v61  ;;  %977 = vst.msk [vmem:[#allocation4 + $0x30] sm:$0xff] %vm1837_vm4, %v1402_v2 }
 0x163   : > { %978 = vst.msk [vmem:[#allocation4 + $0x38] sm:$0xff] %vm1837_vm4, %v1403_v9 }
 0x164 PF: > { %p1388_p13 = scmp.ne.s32.totalorder %s1335_s17, 12 }
 0x165   : > { %s1887_s14 = smov (!%p1388_p13), 0  }
 0x166   : > { %987 = sbr.rel (%p1388_p13) target bundleno = 375 (0x177), region = 92 }
 0x16d LB: >> { %v1088_v5 = vld [vmem:[#allocation4] sm:$0xff]  ;;  %v1090_v31 = vld [vmem:[#allocation4 + $0x8] sm:$0xff]  ;;  %v1092_v32 = vld [vmem:[#allocation4 + $0x10] sm:$0xff]  ;;  %s1082_s14 = sadd.s32 1, %s1643_s14   ;;  %s1643_s14 = sphi %s1887_s14, %s1082_s14  }
 0x16e   : >> { %1089 = vst [vmem:[%s1952_s3] sm:$0xff] %v1088_v5  ;;  %1091 = vst [vmem:[%s1952_s3 + $0x8] sm:$0xff] %v1090_v31  ;;  %v1094_v25 = vld [vmem:[#allocation4 + $0x18] sm:$0xff]  ;;  %v1096_v33 = vld [vmem:[#allocation4 + $0x20] sm:$0xff]  ;;  %p1081_p0 = scmp.ge.s32.totalorder %s1082_s14, 1 }
 0x16f   : >> { %1093 = vst [vmem:[%s1952_s3 + $0x10] sm:$0xff] %v1092_v32  ;;  %v1098_v34 = vld [vmem:[#allocation4 + $0x28] sm:$0xff]  ;;  %1095 = vst [vmem:[%s1952_s3 + $0x18] sm:$0xff] %v1094_v25  ;;  %v1100_v35 = vld [vmem:[#allocation4 + $0x30] sm:$0xff] }
 0x170   : >> { %1097 = vst [vmem:[%s1952_s3 + $0x20] sm:$0xff] %v1096_v33  ;;  %1099 = vst [vmem:[%s1952_s3 + $0x28] sm:$0xff] %v1098_v34  ;;  %v1102_v36 = vld [vmem:[#allocation4 + $0x38] sm:$0xff]  ;;  %v1104_v37 = vld [vmem:[#allocation4 + $0x40] sm:$0xff]  ;;  %1084 = sbr.rel (!%p1081_p0) target bundleno = 365 (0x16d), region = 216 }
 0x171   : >> { %1101 = vst [vmem:[%s1952_s3 + $0x30] sm:$0xff] %v1100_v35  ;;  %1103 = vst [vmem:[%s1952_s3 + $0x38] sm:$0xff] %v1102_v36  ;;  %v1106_v38 = vld [vmem:[#allocation4 + $0x48] sm:$0xff]  ;;  %v1108_v39 = vld [vmem:[#allocation4 + $0x50] sm:$0xff] }
 0x172   : >> { %1105 = vst [vmem:[%s1952_s3 + $0x40] sm:$0xff] %v1104_v37  ;;  %v1110_v40 = vld [vmem:[#allocation4 + $0x58] sm:$0xff]  ;;  %1107 = vst [vmem:[%s1952_s3 + $0x48] sm:$0xff] %v1106_v38  ;;  %v1112_v41 = vld [vmem:[#allocation4 + $0x60] sm:$0xff] }
 0x173   : >> { %1109 = vst [vmem:[%s1952_s3 + $0x50] sm:$0xff] %v1108_v39  ;;  %1111 = vst [vmem:[%s1952_s3 + $0x58] sm:$0xff] %v1110_v40 }
 0x174   : >> { %1113 = vst [vmem:[%s1952_s3 + $0x60] sm:$0xff] %v1112_v41 }
 0x177 PF: > { %s13_s16 = sadd.s32 1, %s1635_s16   ;;  %s1955_s12 = smov %s1623_s13 }
 0x178   : > { %p10_p1 = scmp.ge.s32.totalorder %s13_s16, 15   ;;  %s1956_s13 = smov %s1703_s21 }
 0x179   : > { %s1957_s14 = smov %s1631_s15  ;;  %s1958_s15 = smov %s1960_s18 }
 0x17a   :  { %12 = sbr.rel (!%p10_p1) target bundleno = 3 (0x3), region = 238 }

// kernel: alexnet_conv4_forward.9
= control target key start
LH: loop header
LB: loop body
LE: loop exit
PB: predicated region body
PF: predicated region fallthrough
CT: control target
= control target key end

     0   :  { %s413_s6 = smov 0   ;;  %s415_s7 = smov 0   ;;  %s467_s0 = inlined_call_operand.vmem [shape: bf16[2,7,7,192], index: 0, kind: input, shape index: {}]   ;;  %s468_s1 = inlined_call_operand.vmem [shape: bf16[2,3,3,192], index: 1, kind: output, shape index: {}]  }
   0x1   :  { %s417_s8 = smov 0   ;;  %s419_s9 = smov 0  }
   0x2   :  { %s421_s10 = smov 0  }
   0x3 LB: > { %s20_s11 = sadd.s32 1, %s392_s8  ;;  %s23_s12 = sadd.s32 1, %s396_s9  ;;  %s400_s10 = sphi %s421_s10, %s11_s10   ;;  %s396_s9 = sphi %s419_s9, %s472_s9   ;;  %s392_s8 = sphi %s417_s8, %s471_s8   ;;  %s388_s7 = sphi %s415_s7, %s470_s7   ;;  %s384_s6 = sphi %s413_s6, %s469_s6  }
   0x4   : > { %p21_p0 = scmp.ge.s32.totalorder %s20_s11, 3  ;;  %p304_p1 = scmp.ge.s32.totalorder %s400_s10, 1 }
   0x5   : > { %p101_p2 = scmp.lt.s32.totalorder %s400_s10, 7 }
   0x6   : > { %s474_s11 = smov (%p21_p0, %s20_s11), 0  ;;  %s476_s12 = smov (!%p21_p0, %s23_s12), %s396_s9 }
   0x7   : > { %p102_p3 = pnand %p304_p1, %p101_p2  ;;  %p25_p4 = scmp.ge.s32.totalorder %s476_s12, 2 }
   0x8   : > { %p125_p5 = scmp.lt.s32.totalorder (!%p102_p3), %s388_s7, 1  ;;  %s318_s14 = sshll.u32 (!%p102_p3), %s384_s6, 4  ;;  %v402_v9 = vmov (!%p102_p3), 1983009808   ;;  %v197_v11 = vlaneseq (!%p102_p3)  ;;  %vm179_vm0 = vcmask (!%p102_p3), 1040384   ;;  %vm202_vm2 = vcmask (!%p102_p3), 1041408  }
   0x9   : > { %s478_s12 = smov (%p25_p4, %s476_s12), 0  ;;  %105 = sbr.rel (%p102_p3) target bundleno = 46 (0x2e), region = 24 }
   0xa   : > { %p132_p6 = scmp.lt.s32.totalorder (!%p102_p3), %s384_s6, 2  ;;  %v195_v10 = vunpack.c.l.s4 (!%p102_p3), %v402_v9  ;;  %vm180_vm1 = vsmask.f32 (!%p102_p3), 256  ;;  %vm203_vm3 = vsmask.f32 (!%p102_p3), 1280  ;;  %v198_v17 = vshrl.u32 (!%p102_p3), %v197_v11, 7 }
   0xb   : > { %vm181_vm4 = vmand (!%p102_p3), %vm179_vm0, %vm180_vm1  ;;  %vm205_vm5 = vcmask (!%p102_p3), 519170   ;;  %vm206_vm6 = vsmask.f32 (!%p102_p3), 3328 }
   0xc   : > { %v196_v16 = vunpack.c.0.s8 (!%p102_p3), %v195_v10  ;;  %vm204_vm7 = vmand (!%p102_p3), %vm202_vm2, %vm203_vm3 }
   0xd   : > { %vm207_vm8 = vmand (!%p102_p3), %vm205_vm5, %vm206_vm6 }
   0xe   : > { %v199_v24 = vsub.s32 (!%p102_p3), %v196_v16, %v198_v17  ;;  %vm208_vm9 = vmor (!%p102_p3), %vm207_vm8, %vm204_vm7 }
  0x10   : > { %s480_s7 = smov (!%p125_p5, %s388_s7), 1  ;;  %s482_s6 = smov (!%p132_p6, %s384_s6), 2 }
  0x11   : > { %s319_s13 = smul.u32 56, %s480_s7  ;;  %s306_s20 = sshll.u32 %s482_s6, 1 }
  0x12   : > { %s320_s19 = smul.u32 6, %s480_s7 }
  0x13   : > { %s129_s17 = scalar_lea.vmem %s467_s0, %s319_s13 }
  0x14   : > { %s142_s18 = scalar_lea.vmem %s129_s17, %s318_s14  ;;  %s136_s21 = sadd.s32 %s320_s19, %s306_s20 }
  0x15   : > { %v143_v0 = vld [vmem:[%s142_s18] sm:$0xff]  ;;  %v144_v1 = vld [vmem:[%s142_s18 + $0x8] sm:$0xff]  ;;  %v145_v2 = vld [vmem:[%s142_s18 + $0x10] sm:$0xff]  ;;  %s307_s22 = sshll.u32 %s136_s21, 1 }
  0x16   : > { %v146_v3 = vmax.bf16 %v144_v1, %v143_v0  ;;  %s138_s25 = scalar_lea.vmem %s468_s1, %s307_s22 }
  0x17   : > { %v209_v28 = vld [vmem:[%s138_s25] sm:$0xf] }
  0x18   : > { %v147_v4 = vmax.bf16 %v146_v3, %v145_v2 }
  0x1a   : > { %v149_v5 = vshrl.u32 %v147_v4, 16  ;;  %v312_v6 = vrot.slane %v147_v4, 9 }
  0x1c   : > { %v154_v7 = vmax.bf16 %v149_v5, %v147_v4 }
  0x1e   : > { %v159_v8 = vmax.bf16 %v312_v6, %v154_v7 }
  0x20   : > { %v313_v12 = vcombine.low %v159_v8, %v159_v8  ;;  %v314_v13 = vcombine.high %v159_v8, %v159_v8 }
  0x22   : > { %v168_v14 = vshll.u32 %v313_v12, 16  ;;  %v172_v15 = vshll.u32 %v314_v13, 16  ;;  %v177_v18 = vrot.slane %v313_v12, 1  ;;  %v178_v19 = vrot.slane %v314_v13, 1 }
  0x24   : > { %v170_v20 = vrot.slane %v168_v14, 1  ;;  %v174_v21 = vrot.slane %v172_v15, 1 }
  0x26   : > { %v182_v22 = vsel %vm181_vm4, %v313_v12, %v170_v20  ;;  %v183_v23 = vsel %vm181_vm4, %v314_v13, %v174_v21 }
  0x27   : > { %v187_v25 = vsel %vm179_vm0, %v182_v22, %v177_v18  ;;  %v190_v26 = vsel %vm179_vm0, %v183_v23, %v178_v19 }
  0x28   : > { %v193_v27 = vcombine.low %v187_v25, %v190_v26 }
  0x2a   : > { %v200_v29 = vrot.slane %v193_v27, %v199_v24 }
  0x2c   : > { %v210_v30 = vsel %vm208_vm9, %v200_v29, %v209_v28 }
  0x2d   : > { %211 = vst [vmem:[%s138_s25] sm:$0xf] %v210_v30 }
  0x2e PF: > { %s11_s10 = sadd.s32 1, %s400_s10   ;;  %s469_s6 = smov %s392_s8 }
  0x2f   : > { %p8_p7 = scmp.ge.s32.totalorder %s11_s10, 8   ;;  %s470_s7 = smov %s396_s9 }
  0x30   : > { %s471_s8 = smov %s474_s11  ;;  %s472_s9 = smov %s478_s12 }
  0x31   :  { %10 = sbr.rel (!%p8_p7) target bundleno = 3 (0x3), region = 55 }

// kernel: alexnet_conv4_forward.10
= control target key start
LH: loop header
LB: loop body
LE: loop exit
PB: predicated region body
PF: predicated region fallthrough
CT: control target
= control target key end

     0   :  { %s1783_s12 = smov 0   ;;  %s1785_s13 = smov 0   ;;  %s1932_s0 = inlined_call_operand.vmem [shape: bf16[18,1792], index: 0, kind: input, shape index: {}]   ;;  %s1933_s1 = inlined_call_operand.vmem [shape: bf16[1792,384], index: 1, kind: input, shape index: {}]   ;;  %s1934_s2 = inlined_call_operand.vmem [shape: f32[1,384], index: 2, kind: input, shape index: {}]   ;;  %s1935_s3 = inlined_call_operand.vmem [shape: bf16[18,384], index: 3, kind: output, shape index: {}]  }
   0x1   :  { %s1787_s14 = smov 0   ;;  %s1789_s15 = smov 0  }
   0x2   :  { %s1791_s16 = smov 0  }
   0x3 LB: > { %s1320_s17 = sadd.s32 4294967295, %s1739_s16   ;;  %s25_s18 = sadd.s32 1, %s1735_s15  ;;  %s1739_s16 = sphi %s1791_s16, %s13_s16   ;;  %s1735_s15 = sphi %s1789_s15, %s1939_s15   ;;  %s1731_s14 = sphi %s1787_s14, %s1938_s14   ;;  %s1727_s13 = sphi %s1785_s13, %s1937_s13   ;;  %s1723_s12 = sphi %s1783_s12, %s1936_s12  }
   0x4   : > { %p26_p0 = scmp.ge.s32.totalorder %s25_s18, 7  ;;  %p48_p1 = scmp.ne.s32.totalorder %s1727_s13, %s1723_s12 }
   0x5   : > { %p49_p2 = scmp.eq.s32.totalorder %s1739_s16, 0  ;;  %s41_s20 = sadd.s32 1, %s1727_s13 }
   0x6   : > { %s1941_s18 = smov (%p26_p0, %s25_s18), 0  ;;  %p1323_p5 = scmp.ge.s32.totalorder %s1739_s16, 7 }
   0x7   : > { %p50_p3 = por %p49_p2, %p48_p1  ;;  %s37_s19 = ssub.s32 %s1735_s15, %s1941_s18 }
   0x8   : > { %p39_p4 = scmp.eq.s32.totalorder %s37_s19, 0  ;;  %164 = sbr.rel (%p1323_p5) target bundleno = 32 (0x20), region = 20 }
   0xa   : > { %s1819_s21 = scalar_select %p39_p4, %s1727_s13, %s41_s20  }
   0xf   : > { %167 = sbr.rel (!%p50_p3) target bundleno = 32 (0x20), region = 24  ;;  %s169_s22 = sand.u32 (%p50_p3), 1, %s1727_s13  }
  0x10   : > { %s1408_s23 = sshll.u32 (%p50_p3), %s1735_s15, 3  ;;  %s1324_s24 = sshll.u32 (%p50_p3), %s169_s22, 5 }
  0x11   : > { %s181_s27 = scalar_lea.vmem (%p50_p3), %s1932_s0, %s1408_s23   ;;  %s171_s28 = scalar_lea.vmem (%p50_p3), [#allocation3], %s1324_s24  }
  0x12   : > { %s1741_s29 = smov (%p50_p3), 0  }
  0x16 LB: >> { %v252_v0 = vld [vmem:[%s181_s27] sm:$0xff]  ;;  %v254_v1 = vld [vmem:[%s181_s27 + $0x38] sm:$0xff]  ;;  %v256_v2 = vld [vmem:[%s181_s27 + $0x70] sm:$0xff]  ;;  %s246_s29 = sadd.s32 1, %s1743_s29   ;;  %s1743_s29 = sphi %s1741_s29, %s246_s29  }
  0x17   : >> { %253 = vst [vmem:[%s171_s28] sm:$0xff] %v252_v0  ;;  %255 = vst [vmem:[%s171_s28 + $0x8] sm:$0xff] %v254_v1  ;;  %p245_p6 = scmp.ge.s32.totalorder %s246_s29, 1 }
  0x18   : >> { %257 = vst [vmem:[%s171_s28 + $0x10] sm:$0xff] %v256_v2 }
  0x19   : > { %248 = sbr.rel (!%p245_p6) target bundleno = 22 (0x16), region = 188 }
  0x20 PF: > { %p1332_p7 = scmp.ge.s32.totalorder %s1739_s16, 1  ;;  %p309_p8 = scmp.lt.s32.totalorder %s1739_s16, 8 }
  0x22   : > { %p310_p9 = pnand %p1332_p7, %p309_p8 }
  0x23   : > { %s316_s30 = sand.u32 (!%p310_p9), 1, %s1723_s12   ;;  %s1334_s4 = sshll.u32 (!%p310_p9), %s1731_s14, 5 }
  0x24   : > { %313 = sbr.rel (%p310_p9) target bundleno = 386 (0x182), region = 80  ;;  %s1333_s5 = sshll.u32 (!%p310_p9), %s316_s30, 5 }
  0x25   : > { %p355_p10 = scmp.lt.s32.totalorder (!%p310_p9), %s1334_s4, 223  ;;  %s1836_s10 = scalar_lea.vmem (!%p310_p9), [#allocation3], %s1333_s5 }
  0x26   : > { %p1336_p11 = scmp.ne.s32.totalorder (!%p310_p9), %s1731_s14, 0 }
  0x2b   : > { %s1943_s4 = smov (!%p355_p10, %s1334_s4), 223  ;;  %379 = sbr.rel (%p1336_p11) target bundleno = 51 (0x33), region = 88 }
  0x2c   : > { %s1445_s6 = smul.u32 12, %s1943_s4  ;;  %v1761_v3 = vmov (!%p1336_p11), 0.0  }
  0x2d   : > { %380 = vst [vmem:[#allocation2] sm:$0xff] (!%p1336_p11), %v1761_v3  ;;  %381 = vst [vmem:[#allocation2 + $0x8] sm:$0xff] (!%p1336_p11), %v1761_v3 }
  0x2e   : > { %s1834_s9 = scalar_lea.vmem %s1933_s1, %s1445_s6  ;;  %382 = vst [vmem:[#allocation2 + $0x10] sm:$0xff] (!%p1336_p11), %v1761_v3  ;;  %383 = vst [vmem:[#allocation2 + $0x18] sm:$0xff] (!%p1336_p11), %v1761_v3 }
  0x2f   : > { %384 = vst [vmem:[#allocation2 + $0x20] sm:$0xff] (!%p1336_p11), %v1761_v3  ;;  %385 = vst [vmem:[#allocation2 + $0x28] sm:$0xff] (!%p1336_p11), %v1761_v3 }
  0x30   : > { %386 = vst [vmem:[#allocation2 + $0x30] sm:$0xff] (!%p1336_p11), %v1761_v3  ;;  %387 = vst [vmem:[#allocation2 + $0x38] sm:$0xff] (!%p1336_p11), %v1761_v3 }
  0x31   : > { %388 = vst [vmem:[#allocation2 + $0x40] sm:$0xff] (!%p1336_p11), %v1761_v3  ;;  %389 = vst [vmem:[#allocation2 + $0x48] sm:$0xff] (!%p1336_p11), %v1761_v3 }
  0x32   : > { %390 = vst [vmem:[#allocation2 + $0x50] sm:$0xff] %v1761_v3  ;;  %391 = vst [vmem:[#allocation2 + $0x58] sm:$0xff] %v1761_v3 }
  0x33 PF: > { %v1583_v4 = vld [vmem:[%s1834_s9 + $0x4] ss:$12 sps:$4 sm:$0xff]   ;;  %v1585_v5 = vld [vmem:[%s1834_s9] ss:$12 sps:$4 sm:$0xff]   ;;  %v1586_v6 = vld [vmem:[%s1834_s9 + $0x1c] ss:$12 sps:$4 sm:$0xff]  }
  0x34   : > { %748 = vmatprep.subr.bf16.mxu0 %v1583_v4  ;;  %v1588_v7 = vld [vmem:[%s1834_s9 + $0x18] ss:$12 sps:$4 sm:$0xff]   ;;  %v1589_v8 = vld [vmem:[%s1834_s9 + $0x34] ss:$12 sps:$4 sm:$0xff]   ;;  %v1591_v9 = vld [vmem:[%s1834_s9 + $0x30] ss:$12 sps:$4 sm:$0xff]  }
  0x35   : > { %749 = vmatpush1.bf16.msra.mxu0 %v1585_v5  ;;  %v1592_v10 = vld [vmem:[%s1834_s9 + $0x4c] ss:$12 sps:$4 sm:$0xff]   ;;  %v1604_v11 = vld [vmem:[%s1834_s9 + $0xc8] ss:$12 sps:$4 sm:$0xff]   ;;  %v1595_v13 = vld [vmem:[%s1834_s9 + $0x64] ss:$12 sps:$4 sm:$0xff]  }
  0x36   : > { %750 = vmatprep.subr.bf16.mxu0 %v1586_v6  ;;  %v1594_v12 = vld [vmem:[%s1834_s9 + $0x48] ss:$12 sps:$4 sm:$0xff]   ;;  %1417 = vmatprep.subr.bf16.mxu1 %v1604_v11  ;;  %v1609_v15 = vld [vmem:[%s1834_s9 + $0xe0] ss:$12 sps:$4 sm:$0xff]   ;;  %v1614_v19 = vld [vmem:[%s1834_s9 + $0xf8] ss:$12 sps:$4 sm:$0xff]  }
  0x37   : > { %v1607_v14 = vld [vmem:[%s1834_s9 + $0x8] ss:$12 sps:$4 sm:$0xff]   ;;  %v1597_v16 = vld [vmem:[%s1834_s9 + $0x60] ss:$12 sps:$4 sm:$0xff]   ;;  %v1600_v20 = vld [vmem:[%s1834_s9 + $0x78] ss:$12 sps:$4 sm:$0xff]  }
  0x38   : > { %1418 = vmatpush3.bf16.msra.mxu1 %v1607_v14  ;;  %v1598_v17 = vld [vmem:[%s1834_s9 + $0x7c] ss:$12 sps:$4 sm:$0xff]   ;;  %v1612_v18 = vld [vmem:[%s1834_s9 + $0x20] ss:$12 sps:$4 sm:$0xff]   ;;  %v1617_v21 = vld [vmem:[%s1834_s9 + $0x38] ss:$12 sps:$4 sm:$0xff]  }
  0x39   : > { %751 = vmatpush1.bf16.msra.mxu0 %v1588_v7  ;;  %1419 = vmatprep.subr.bf16.mxu1 %v1609_v15  ;;  %v1601_v22 = vld [vmem:[%s1834_s9 + $0x94] ss:$12 sps:$4 sm:$0xff]   ;;  %v1619_v23 = vld [vmem:[%s1834_s9 + $0x110] ss:$12 sps:$4 sm:$0xff]   ;;  %v1605_v27 = vld [vmem:[%s1834_s9 + $0xac] ss:$12 sps:$4 sm:$0xff]  }
  0x3a   : > { %752 = vmatprep.subr.bf16.mxu0 %v1589_v8  ;;  %v1603_v24 = vld [vmem:[%s1834_s9 + $0x90] ss:$12 sps:$4 sm:$0xff]   ;;  %v1624_v26 = vld [vmem:[%s1834_s9 + $0x128] ss:$12 sps:$4 sm:$0xff]   ;;  %v1629_v30 = vld [vmem:[%s1834_s9 + $0x140] ss:$12 sps:$4 sm:$0xff]  }
  0x3b   : > { %v1622_v25 = vld [vmem:[%s1834_s9 + $0x50] ss:$12 sps:$4 sm:$0xff]   ;;  %v1608_v28 = vld [vmem:[%s1834_s9 + $0xa8] ss:$12 sps:$4 sm:$0xff]   ;;  %v1613_v32 = vld [vmem:[%s1834_s9 + $0xc0] ss:$12 sps:$4 sm:$0xff]  }
  0x3c   : > { %1420 = vmatpush3.bf16.msra.mxu1 %v1612_v18  ;;  %v1627_v29 = vld [vmem:[%s1834_s9 + $0x68] ss:$12 sps:$4 sm:$0xff]   ;;  %v1610_v31 = vld [vmem:[%s1834_s9 + $0xc4] ss:$12 sps:$4 sm:$0xff]   ;;  %v1632_v33 = vld [vmem:[%s1834_s9 + $0x80] ss:$12 sps:$4 sm:$0xff]  }
  0x3d   : > { %753 = vmatpush1.bf16.msra.mxu0 %v1591_v9  ;;  %1421 = vmatprep.subr.bf16.mxu1 %v1614_v19  ;;  %v1634_v34 = vld [vmem:[%s1834_s9 + $0x158] ss:$12 sps:$4 sm:$0xff]   ;;  %v1615_v35 = vld [vmem:[%s1834_s9 + $0xdc] ss:$12 sps:$4 sm:$0xff]   ;;  %v1620_v39 = vld [vmem:[%s1834_s9 + $0xf4] ss:$12 sps:$4 sm:$0xff]  }
  0x3e   : > { %754 = vmatprep.subr.bf16.mxu0 %v1592_v10  ;;  %v1637_v36 = vld [vmem:[%s1834_s9 + $0x98] ss:$12 sps:$4 sm:$0xff]   ;;  %v1639_v38 = vld [vmem:[%s1834_s9 + $0x170] ss:$12 sps:$4 sm:$0xff]   ;;  %v1644_v44 = vld [vmem:[%s1836_s10] ss:$8 sps:$4 sm:$0xff]  }
  0x3f   : > { %v1618_v37 = vld [vmem:[%s1834_s9 + $0xd8] ss:$12 sps:$4 sm:$0xff]   ;;  %v1642_v41 = vld [vmem:[%s1834_s9 + $0xb0] ss:$12 sps:$4 sm:$0xff]   ;;  %v1628_v46 = vld [vmem:[%s1834_s9 + $0x108] ss:$12 sps:$4 sm:$0xff]  }
  0x40   : > { %1422 = vmatpush3.bf16.msra.mxu1 %v1617_v21  ;;  %v1646_v40 = vld [vmem:[%s1836_s10 + $0x4] ss:$8 sps:$4 sm:$0xff]   ;;  %v1623_v42 = vld [vmem:[%s1834_s9 + $0xf0] ss:$12 sps:$4 sm:$0xff]   ;;  %v1640_v52 = vld [vmem:[%s1834_s9 + $0x154] ss:$12 sps:$4 sm:$0xff]  }
  0x41   : > { %755 = vmatpush1.bf16.msra.mxu0 %v1594_v12  ;;  %1423 = vmatprep.subr.bf16.mxu1 %v1619_v23  ;;  %v1625_v43 = vld [vmem:[%s1834_s9 + $0x10c] ss:$12 sps:$4 sm:$0xff]   ;;  %v1650_v45 = vld [vmem:[%s1836_s10 + $0x14] ss:$8 sps:$4 sm:$0xff]   ;;  %v1630_v47 = vld [vmem:[%s1834_s9 + $0x124] ss:$12 sps:$4 sm:$0xff]  }
  0x42   : > { %756 = vmatprep.subr.bf16.mxu0 %v1595_v13  ;;  %833 = vmatprep.mubr.bf16.mxu1 %v1646_v40  ;;  %v1633_v48 = vld [vmem:[%s1834_s9 + $0x120] ss:$12 sps:$4 sm:$0xff]   ;;  %v1635_v49 = vld [vmem:[%s1834_s9 + $0x13c] ss:$12 sps:$4 sm:$0xff]   ;;  %v1652_v50 = vld [vmem:[%s1836_s10 + $0x10] ss:$8 sps:$4 sm:$0xff]  }
  0x43   : > { %780 = vmatprep.mubr.bf16.mxu0 %v1646_v40  ;;  %v1638_v51 = vld [vmem:[%s1834_s9 + $0x138] ss:$12 sps:$4 sm:$0xff]   ;;  %v1643_v53 = vld [vmem:[%s1834_s9 + $0x150] ss:$12 sps:$4 sm:$0xff]   ;;  %v1649_v55 = vld [vmem:[%s1834_s9 + $0x168] ss:$12 sps:$4 sm:$0xff]  }
  0x44   : > { %1424 = vmatpush3.bf16.msra.mxu1 %v1622_v25  ;;  %v1647_v54 = vld [vmem:[%s1834_s9 + $0x16c] ss:$12 sps:$4 sm:$0xff]   ;;  %v394_v57 = vld [vmem:[#allocation2 + $0x10] sm:$0xff]  ;;  %v400_v3 = vld [vmem:[#allocation2 + $0x40] sm:$0xff]  ;;  %p1389_p12 = scmp.ne.s32.totalorder %s1731_s14, 6 }
  0x45   : > { %757 = vmatpush1.bf16.msra.mxu0 %v1597_v16  ;;  %1425 = vmatprep.subr.bf16.mxu1 %v1624_v26  ;;  %v397_v61 = vld [vmem:[#allocation2 + $0x28] sm:$0xff]  ;;  %v403_v7 = vld [vmem:[#allocation2 + $0x58] sm:$0xff]  ;;  %v392_v12 = vld [vmem:[#allocation2] sm:$0xff] }
  0x46   : > { %758 = vmatprep.subr.bf16.mxu0 %v1598_v17  ;;  %v393_v13 = vld [vmem:[#allocation2 + $0x8] sm:$0xff]  ;;  %v395_v15 = vld [vmem:[#allocation2 + $0x18] sm:$0xff]  ;;  %v396_v18 = vld [vmem:[#allocation2 + $0x20] sm:$0xff] }
  0x47   : > { %v399_v25 = vld [vmem:[#allocation2 + $0x38] sm:$0xff] }
  0x48   : > { %1426 = vmatpush3.bf16.msra.mxu1 %v1627_v29 }
  0x49   : > { %759 = vmatpush1.bf16.msra.mxu0 %v1600_v20  ;;  %1427 = vmatprep.subr.bf16.mxu1 %v1629_v30  ;;  %v402_v30 = vld [vmem:[#allocation2 + $0x50] sm:$0xff] }
  0x4a   : > { %760 = vmatprep.subr.bf16.mxu0 %v1601_v22 }
  0x4c   : > { %1428 = vmatpush3.bf16.msra.mxu1 %v1632_v33 }
  0x4d   : > { %761 = vmatpush1.bf16.msra.mxu0 %v1603_v24  ;;  %1429 = vmatprep.subr.bf16.mxu1 %v1634_v34  ;;  %v398_v24 = vld [vmem:[#allocation2 + $0x30] sm:$0xff] }
  0x4e   : > { %762 = vmatprep.subr.bf16.mxu0 %v1605_v27  ;;  %v401_v27 = vld [vmem:[#allocation2 + $0x48] sm:$0xff] }
  0x50   : > { %1430 = vmatpush3.bf16.msra.mxu1 %v1637_v36  ;;  %v892_v36 = vlaneseq (!%p1389_p12) }
  0x51   : > { %763 = vmatpush1.bf16.msra.mxu0 %v1608_v28  ;;  %1431 = vmatprep.subr.bf16.mxu1 %v1639_v38  ;;  %v890_v38 = vld [vmem:[%s1934_s2] sm:$0x7] (!%p1389_p12) }
  0x52   : > { %764 = vmatprep.subr.bf16.mxu0 %v1610_v31 }
  0x54   : > { %1432 = vmatpush3.bf16.msra.mxu1 %v1642_v41 }
  0x55   : > { %765 = vmatpush1.bf16.msra.mxu0 %v1613_v32 }
  0x56   : > { %766 = vmatprep.subr.bf16.mxu0 %v1615_v35 }
  0x57   : > { %834 = vmatmul.mubr.bf16.vlgmr.msra.gmra.mrb[0].mxu1 %v1644_v44 }
  0x58   : > { %841 = vmatprep.mubr.bf16.mxu1 %v1650_v45 }
  0x59   : > { %767 = vmatpush1.bf16.msra.mxu0 %v1618_v37  ;;  %v893_v37 = vshrl.u32 (!%p1389_p12), %v892_v36, 7 }
  0x5a   : > { %768 = vmatprep.subr.bf16.mxu0 %v1620_v39 }
  0x5b   : > { %v894_v41 = vsub.s32 (!%p1389_p12), 0, %v893_v37 }
  0x5d   : > { %769 = vmatpush1.bf16.msra.mxu0 %v1623_v42  ;;  %v898_v42 = vsub.s32 (!%p1389_p12), 1, %v893_v37 }
  0x5e   : > { %770 = vmatprep.subr.bf16.mxu0 %v1625_v43  ;;  %v902_v43 = vsub.s32 (!%p1389_p12), 2, %v893_v37 }
  0x5f   : > { %842 = vmatmul.mubr.bf16.gmra.mrb[4].mxu1 %v1652_v50 }
  0x61   : > { %771 = vmatpush1.bf16.msra.mxu0 %v1628_v46 }
  0x62   : > { %772 = vmatprep.subr.bf16.mxu0 %v1630_v47  ;;  %v895_v47 = vrot.slane (!%p1389_p12), %v890_v38, %v894_v41 }
  0x65   : > { %773 = vmatpush1.bf16.msra.mxu0 %v1633_v48  ;;  %v899_v48 = vrot.slane (!%p1389_p12), %v890_v38, %v898_v42 }
  0x66   : > { %774 = vmatprep.subr.bf16.mxu0 %v1635_v49  ;;  %v903_v49 = vrot.slane (!%p1389_p12), %v890_v38, %v902_v43 }
  0x69   : > { %775 = vmatpush1.bf16.msra.mxu0 %v1638_v51 }
  0x6a   : > { %776 = vmatprep.subr.bf16.mxu0 %v1640_v52 }
  0x6d   : > { %777 = vmatpush1.bf16.msra.mxu0 %v1643_v53 }
  0x6e   : > { %778 = vmatprep.subr.bf16.mxu0 %v1647_v54 }
  0x71   : > { %779 = vmatpush1.bf16.msra.mxu0 %v1649_v55 }
  0x74   : > { %781 = vmatmul.mubr.bf16.vlgmr.msra.gmra.mrb[0].mxu0 %v1644_v44 }
  0x75   : > { %790 = vmatprep.mubr.bf16.mxu0 %v1650_v45 }
  0x7c   : > { %791 = vmatmul.mubr.bf16.gmra.mrb[4].mxu0 %v1652_v50 }
 0x12a   : > { %v1433_v56 = vpop.f32.mrb[0].mxu1 }
 0x12b   : > { %v1434_v58 = vpop.f32.mrb[1].mxu1 }
 0x12c   : > { %v1435_v59 = vadd.f32 %v1434_v58, %v1433_v56  ;;  %v1436_v60 = vpop.f32.mrb[2].mxu1 }
 0x12d   : > { %v1437_v62 = vpop.f32.mrb[3].mxu1 }
 0x12e   : > { %v852_v63 = vadd.f32 %v1435_v59, %v394_v57  ;;  %v1438_v0 = vadd.f32 %v1437_v62, %v1436_v60 }
 0x130   : > { %864 = vst [vmem:[#allocation2 + $0x10] sm:$0xff] %v852_v63  ;;  %v855_v1 = vadd.f32 %v1438_v0, %v397_v61 }
 0x132   : > { %867 = vst [vmem:[#allocation2 + $0x28] sm:$0xff] %v855_v1  ;;  %v1439_v2 = vpop.f32.mrb[4].mxu1 }
 0x133   : > { %v1440_v4 = vpop.f32.mrb[5].mxu1 }
 0x134   : > { %v1441_v5 = vadd.f32 %v1440_v4, %v1439_v2  ;;  %v1442_v6 = vpop.f32.mrb[6].mxu1 }
 0x135   : > { %v1443_v8 = vpop.f32.mrb[7].mxu1 }
 0x136   : > { %v858_v9 = vadd.f32 %v1441_v5, %v400_v3  ;;  %v1444_v10 = vadd.f32 %v1443_v8, %v1442_v6 }
 0x137   : > { %v880_v44 = vld [vmem:[#allocation2 + $0x10] sm:$0xff] (!%p1389_p12) }
 0x138   : > { %870 = vst [vmem:[#allocation2 + $0x40] sm:$0xff] %v858_v9  ;;  %v861_v11 = vadd.f32 %v1444_v10, %v403_v7  ;;  %v909_v55 = vadd.f32 (!%p1389_p12), %v903_v49, %v880_v44 }
 0x139   : > { %v883_v50 = vld [vmem:[#allocation2 + $0x28] sm:$0xff] (!%p1389_p12) }
 0x13a   : > { %873 = vst [vmem:[#allocation2 + $0x58] sm:$0xff] %v861_v11  ;;  %v912_v58 = vadd.f32 (!%p1389_p12), %v903_v49, %v883_v50  ;;  %v921_v1 = vmax.f32 (!%p1389_p12), %v909_v55, 0.0 }
 0x13c   : > { %v924_v5 = vmax.f32 (!%p1389_p12), %v912_v58, 0.0  ;;  %v1410_v10 = vpack.c.bf16 (!%p1389_p12), %v921_v1, %v921_v1 }
 0x13e   : > { %972 = vst [vmem:[#allocation4 + $0x8] sm:$0xf] (!%p1389_p12), %v1410_v10 }
 0x13f   : > { %v886_v61 = vld [vmem:[#allocation2 + $0x40] sm:$0xff] (!%p1389_p12) }
 0x140   : > { %v915_v11 = vadd.f32 (!%p1389_p12), %v903_v49, %v886_v61 }
 0x141   : > { %v889_v8 = vld [vmem:[#allocation2 + $0x58] sm:$0xff] (!%p1389_p12) }
 0x147   : > { %v782_v14 = vpop.f32.mrb[0].mxu0 }
 0x148   : > { %v850_v16 = vadd.f32 %v782_v14, %v392_v12  ;;  %v784_v17 = vpop.f32.mrb[1].mxu0  ;;  %v1412_v14 = vpack.c.bf16 (!%p1389_p12), %v924_v5, %v924_v5 }
 0x149   : > { %v851_v19 = vadd.f32 %v784_v17, %v393_v13  ;;  %v786_v20 = vpop.f32.mrb[2].mxu0  ;;  %v927_v17 = vmax.f32 (!%p1389_p12), %v915_v11, 0.0 }
 0x14a   : > { %862 = vst [vmem:[#allocation2] sm:$0xff] %v850_v16  ;;  %v853_v21 = vadd.f32 %v786_v20, %v395_v15  ;;  %v788_v22 = vpop.f32.mrb[3].mxu0  ;;  %974 = vst [vmem:[#allocation4 + $0x14] sm:$0xf] (!%p1389_p12), %v1412_v14 }
 0x14b   : > { %863 = vst [vmem:[#allocation2 + $0x8] sm:$0xff] %v851_v19  ;;  %v854_v23 = vadd.f32 %v788_v22, %v396_v18  ;;  %v918_v19 = vadd.f32 (!%p1389_p12), %v903_v49, %v889_v8 }
 0x14c   : > { %865 = vst [vmem:[#allocation2 + $0x18] sm:$0xff] %v853_v21  ;;  %v1414_v21 = vpack.c.bf16 (!%p1389_p12), %v927_v17, %v927_v17 }
 0x14d   : > { %866 = vst [vmem:[#allocation2 + $0x20] sm:$0xff] %v854_v23  ;;  %v930_v22 = vmax.f32 (!%p1389_p12), %v918_v19, 0.0 }
 0x14e   : > { %976 = vst [vmem:[#allocation4 + $0x20] sm:$0xf] (!%p1389_p12), %v1414_v21 }
 0x14f   : > { %v792_v26 = vpop.f32.mrb[4].mxu0  ;;  %877 = sbr.rel (%p1389_p12) target bundleno = 356 (0x164), region = 92 }
 0x150   : > { %v856_v28 = vadd.f32 %v792_v26, %v398_v24  ;;  %v794_v29 = vpop.f32.mrb[5].mxu0  ;;  %v1416_v24 = vpack.c.bf16 (!%p1389_p12), %v930_v22, %v930_v22 }
 0x151   : > { %v857_v31 = vadd.f32 %v794_v29, %v399_v25  ;;  %v796_v32 = vpop.f32.mrb[6].mxu0  ;;  %v878_v39 = vld [vmem:[#allocation2] sm:$0xff] (!%p1389_p12) }
 0x152   : > { %868 = vst [vmem:[#allocation2 + $0x30] sm:$0xff] %v856_v28  ;;  %v859_v33 = vadd.f32 %v796_v32, %v401_v27  ;;  %v798_v34 = vpop.f32.mrb[7].mxu0  ;;  %v879_v40 = vld [vmem:[#allocation2 + $0x8] sm:$0xff] (!%p1389_p12)  ;;  %v907_v53 = vadd.f32 (!%p1389_p12), %v895_v47, %v878_v39  ;;  %978 = vst [vmem:[#allocation4 + $0x2c] sm:$0xf] (!%p1389_p12), %v1416_v24 }
 0x153   : > { %869 = vst [vmem:[#allocation2 + $0x38] sm:$0xff] %v857_v31  ;;  %v860_v35 = vadd.f32 %v798_v34, %v402_v30  ;;  %v881_v45 = vld [vmem:[#allocation2 + $0x18] sm:$0xff] (!%p1389_p12)  ;;  %v908_v54 = vadd.f32 (!%p1389_p12), %v899_v48, %v879_v40 }
 0x154   : > { %871 = vst [vmem:[#allocation2 + $0x48] sm:$0xff] %v859_v33  ;;  %v882_v46 = vld [vmem:[#allocation2 + $0x20] sm:$0xff] (!%p1389_p12)  ;;  %v910_v56 = vadd.f32 (!%p1389_p12), %v895_v47, %v881_v45  ;;  %v919_v63 = vmax.f32 (!%p1389_p12), %v907_v53, 0.0 }
 0x155   : > { %872 = vst [vmem:[#allocation2 + $0x50] sm:$0xff] %v860_v35  ;;  %v911_v57 = vadd.f32 (!%p1389_p12), %v899_v48, %v882_v46  ;;  %v920_v0 = vmax.f32 (!%p1389_p12), %v908_v54, 0.0 }
 0x156   : > { %v922_v2 = vmax.f32 %v910_v56, 0.0 }
 0x157   : > { %v923_v4 = vmax.f32 %v911_v57, 0.0  ;;  %v1409_v9 = vpack.c.bf16 %v920_v0, %v919_v63 }
 0x159   : > { %v884_v51 = vld [vmem:[#allocation2 + $0x30] sm:$0xff]  ;;  %v1411_v13 = vpack.c.bf16 %v923_v4, %v922_v2  ;;  %971 = vst [vmem:[#allocation4] sm:$0xff] %v1409_v9 }
 0x15a   : > { %v885_v52 = vld [vmem:[#allocation2 + $0x38] sm:$0xff]  ;;  %v913_v59 = vadd.f32 %v895_v47, %v884_v51 }
 0x15b   : > { %v914_v60 = vadd.f32 %v899_v48, %v885_v52  ;;  %v887_v62 = vld [vmem:[#allocation2 + $0x48] sm:$0xff]  ;;  %973 = vst [vmem:[#allocation4 + $0xc] sm:$0xff] %v1411_v13 }
 0x15c   : > { %v888_v3 = vld [vmem:[#allocation2 + $0x50] sm:$0xff]  ;;  %v925_v6 = vmax.f32 %v913_v59, 0.0  ;;  %v916_v12 = vadd.f32 %v895_v47, %v887_v62 }
 0x15d   : > { %v926_v7 = vmax.f32 %v914_v60, 0.0  ;;  %v917_v16 = vadd.f32 %v899_v48, %v888_v3 }
 0x15e   : > { %v928_v18 = vmax.f32 %v916_v12, 0.0 }
 0x15f   : > { %v1413_v15 = vpack.c.bf16 %v926_v7, %v925_v6  ;;  %v929_v20 = vmax.f32 %v917_v16, 0.0 }
 0x161   : > { %975 = vst [vmem:[#allocation4 + $0x18] sm:$0xff] %v1413_v15  ;;  %v1415_v23 = vpack.c.bf16 %v929_v20, %v928_v18 }
 0x163   : > { %977 = vst [vmem:[#allocation4 + $0x24] sm:$0xff] %v1415_v23 }
 0x164 PF: > { %p1398_p13 = scmp.ne.s32.totalorder %s1320_s17, 6 }
 0x165   : > { %s998_s20 = scalar_lea.vmem (!%p1398_p13), %s1935_s3, 8   ;;  %s1745_s22 = smov (!%p1398_p13), 0  }
 0x166   : > { %981 = sbr.rel (%p1398_p13) target bundleno = 386 (0x182), region = 96 }
 0x16d LB: >> { %v1010_v25 = vld [vmem:[#allocation4] sm:$0xff]  ;;  %v1012_v26 = vld [vmem:[#allocation4 + $0xc] sm:$0xff]  ;;  %v1014_v27 = vld [vmem:[#allocation4 + $0x18] sm:$0xff]  ;;  %s1004_s22 = sadd.s32 1, %s1747_s22   ;;  %s1747_s22 = sphi %s1745_s22, %s1004_s22  }
 0x16e   : >> { %1011 = vst [vmem:[%s1935_s3] sm:$0xff] %v1010_v25  ;;  %1013 = vst [vmem:[%s1935_s3 + $0xc] sm:$0xff] %v1012_v26  ;;  %p1003_p0 = scmp.ge.s32.totalorder %s1004_s22, 1 }
 0x16f   : >> { %1015 = vst [vmem:[%s1935_s3 + $0x18] sm:$0xff] %v1014_v27  ;;  %s1749_s30 = smov (%p1003_p0), %s998_s20   ;;  %s1753_s4 = smov (%p1003_p0), [#allocation4 + $0x8]  }
 0x170   : > { %1006 = sbr.rel (!%p1003_p0) target bundleno = 365 (0x16d), region = 210  ;;  %s1757_s5 = smov (%p1003_p0), 0  }
 0x177 LB: >> { %v1060_v28 = vld [vmem:[%s1755_s4] sm:$0xf]  ;;  %v1062_v29 = vld [vmem:[%s1755_s4 + $0xc] sm:$0xf]  ;;  %v1064_v30 = vld [vmem:[%s1755_s4 + $0x18] sm:$0xf]  ;;  %s1759_s5 = sphi %s1757_s5, %s1054_s5   ;;  %s1755_s4 = sphi %s1753_s4, %s1176_s4   ;;  %s1751_s30 = sphi %s1749_s30, %s1750_s30  }
 0x178   : >> { %1061 = vst [vmem:[%s1751_s30] sm:$0xf] %v1060_v28  ;;  %1063 = vst [vmem:[%s1751_s30 + $0xc] sm:$0xf] %v1062_v29  ;;  %s1762_s6 = smov [#allocation4]   ;;  %s1054_s5 = sadd.s32 1, %s1759_s5  }
 0x179   : >> { %1065 = vst [vmem:[%s1751_s30 + $0x18] sm:$0xf] %v1064_v30  ;;  %s1176_s4 = scalar_lea.vmem %s1762_s6, 8   ;;  %p1053_p1 = scmp.ge.s32.totalorder %s1054_s5, 1 }
 0x17a   : >> { %s1750_s30 = smov %s998_s20  }
 0x17b   : > { %1056 = sbr.rel (!%p1053_p1) target bundleno = 375 (0x177), region = 232 }
 0x182 PF: > { %s13_s16 = sadd.s32 1, %s1739_s16   ;;  %s1936_s12 = smov %s1727_s13 }
 0x183   : > { %p10_p2 = scmp.ge.s32.totalorder %s13_s16, 9   ;;  %s1937_s13 = smov %s1819_s21 }
 0x184   : > { %s1938_s14 = smov %s1735_s15  ;;  %s1939_s15 = smov %s1941_s18 }
 0x185   :  { %12 = sbr.rel (!%p10_p2) target bundleno = 3 (0x3), region = 254 }

// kernel: alexnet_conv4_forward.11
= control target key start
LH: loop header
LB: loop body
LE: loop exit
PB: predicated region body
PF: predicated region fallthrough
CT: control target
= control target key end

     0   :  { %s1620_s12 = smov 0   ;;  %s1622_s13 = smov 0   ;;  %s1791_s0 = inlined_call_operand.vmem [shape: bf16[18,3456], index: 0, kind: input, shape index: {}]   ;;  %s1792_s1 = inlined_call_operand.vmem [shape: bf16[3456,256], index: 1, kind: input, shape index: {}]   ;;  %s1793_s2 = inlined_call_operand.vmem [shape: f32[1,256], index: 2, kind: input, shape index: {}]   ;;  %s1794_s3 = inlined_call_operand.vmem [shape: f32[18,256], index: 3, kind: output, shape index: {}]  }
   0x1   :  { %s1624_s14 = smov 0   ;;  %s1626_s15 = smov 0  }
   0x2   :  { %s1628_s16 = smov 0  }
   0x3 LB: > { %s1177_s17 = sadd.s32 4294967295, %s1576_s16   ;;  %s25_s18 = sadd.s32 1, %s1572_s15  ;;  %s1576_s16 = sphi %s1628_s16, %s13_s16   ;;  %s1572_s15 = sphi %s1626_s15, %s1798_s15   ;;  %s1568_s14 = sphi %s1624_s14, %s1797_s14   ;;  %s1564_s13 = sphi %s1622_s13, %s1796_s13   ;;  %s1560_s12 = sphi %s1620_s12, %s1795_s12  }
   0x4   : > { %p26_p0 = scmp.ge.s32.totalorder %s25_s18, 9  ;;  %p48_p1 = scmp.ne.s32.totalorder %s1564_s13, %s1560_s12 }
   0x5   : > { %p49_p2 = scmp.eq.s32.totalorder %s1576_s16, 0  ;;  %s41_s20 = sadd.s32 1, %s1564_s13 }
   0x6   : > { %s1800_s18 = smov (%p26_p0, %s25_s18), 0  ;;  %p1180_p5 = scmp.ge.s32.totalorder %s1576_s16, 9 }
   0x7   : > { %p50_p3 = por %p49_p2, %p48_p1  ;;  %s37_s19 = ssub.s32 %s1572_s15, %s1800_s18 }
   0x8   : > { %p39_p4 = scmp.eq.s32.totalorder %s37_s19, 0  ;;  %164 = sbr.rel (%p1180_p5) target bundleno = 43 (0x2b), region = 20 }
   0xa   : > { %s1656_s21 = scalar_select %p39_p4, %s1564_s13, %s41_s20  }
   0xf   : > { %167 = sbr.rel (!%p50_p3) target bundleno = 43 (0x2b), region = 24  ;;  %s169_s22 = sand.u32 (%p50_p3), 1, %s1564_s13  }
  0x10   : > { %s1260_s23 = smul.u32 (%p50_p3), 12, %s1572_s15  ;;  %s1578_s4 = smov (%p50_p3), 0  }
  0x11   : > { %s1270_s24 = smul.u32 (%p50_p3), 48, %s169_s22 }
  0x12   : > { %s1664_s27 = scalar_lea.vmem (%p50_p3), %s1791_s0, %s1260_s23  }
  0x13   : > { %s187_s28 = scalar_lea.vmem (%p50_p3), %s1664_s27, 8   ;;  %s1667_s29 = scalar_lea.vmem (%p50_p3), [#allocation3], %s1270_s24  }
  0x14   : > { %s188_s30 = scalar_lea.vmem (%p50_p3), %s1667_s29, 8 [#allocation3]  }
  0x16 LB: >> { %v200_v0 = vld [vmem:[%s1664_s27] sm:$0xff]  ;;  %v202_v1 = vld [vmem:[%s1664_s27 + $0x6c] sm:$0xff]  ;;  %v204_v2 = vld [vmem:[%s1664_s27 + $0xd8] sm:$0xff]  ;;  %s194_s4 = sadd.s32 1, %s1580_s4   ;;  %s1580_s4 = sphi %s1578_s4, %s194_s4  }
  0x17   : >> { %201 = vst [vmem:[%s1667_s29] sm:$0xff] %v200_v0  ;;  %203 = vst [vmem:[%s1667_s29 + $0xc] sm:$0xff] %v202_v1  ;;  %p193_p6 = scmp.ge.s32.totalorder %s194_s4, 1 }
  0x18   : >> { %205 = vst [vmem:[%s1667_s29 + $0x18] sm:$0xff] %v204_v2  ;;  %s1582_s5 = smov (%p193_p6), %s188_s30   ;;  %s1586_s6 = smov (%p193_p6), %s187_s28  }
  0x19   : > { %196 = sbr.rel (!%p193_p6) target bundleno = 22 (0x16), region = 160  ;;  %s1590_s7 = smov (%p193_p6), 0  }
  0x20 LB: >> { %v250_v3 = vld [vmem:[%s1588_s6] sm:$0xf]  ;;  %v252_v4 = vld [vmem:[%s1588_s6 + $0x6c] sm:$0xf]  ;;  %v254_v5 = vld [vmem:[%s1588_s6 + $0xd8] sm:$0xf]  ;;  %s1587_s6 = smov %s187_s28   ;;  %s1592_s7 = sphi %s1590_s7, %s244_s7   ;;  %s1588_s6 = sphi %s1586_s6, %s1587_s6   ;;  %s1584_s5 = sphi %s1582_s5, %s1583_s5  }
  0x21   : >> { %251 = vst [vmem:[%s1584_s5] sm:$0xf] %v250_v3  ;;  %253 = vst [vmem:[%s1584_s5 + $0xc] sm:$0xf] %v252_v4  ;;  %s244_s7 = sadd.s32 1, %s1592_s7  }
  0x22   : >> { %255 = vst [vmem:[%s1584_s5 + $0x18] sm:$0xf] %v254_v5  ;;  %p243_p7 = scmp.ge.s32.totalorder %s244_s7, 1  ;;  %s1583_s5 = smov %s188_s30  }
  0x24   : > { %246 = sbr.rel (!%p243_p7) target bundleno = 32 (0x20), region = 182 }
  0x2b PF: > { %p1194_p8 = scmp.ge.s32.totalorder %s1576_s16, 1  ;;  %p305_p9 = scmp.lt.s32.totalorder %s1576_s16, 10 }
  0x2d   : > { %p306_p10 = pnand %p1194_p8, %p305_p9 }
  0x2e   : > { %s312_s8 = sand.u32 (!%p306_p10), 1, %s1560_s12   ;;  %s349_s9 = smul.u32 (!%p306_p10), 48, %s1568_s14 }
  0x2f   : > { %309 = sbr.rel (%p306_p10) target bundleno = 383 (0x17f), region = 68  ;;  %p1197_p12 = scmp.ne.s32.totalorder (!%p306_p10), %s1568_s14, 0 }
  0x30   : > { %s1271_s10 = smul.u32 (!%p306_p10), 48, %s312_s8  ;;  %p351_p11 = scmp.lt.s32.totalorder (!%p306_p10), %s349_s9, 431 }
  0x32   : > { %s1693_s23 = scalar_lea.vmem (!%p306_p10), [#allocation3], %s1271_s10 }
  0x36   : > { %s1802_s9 = smov (!%p351_p11, %s349_s9), 431  ;;  %375 = sbr.rel (%p1197_p12) target bundleno = 61 (0x3d), region = 76 }
  0x37   : > { %s1261_s11 = sshll.u32 %s1802_s9, 3  ;;  %v1598_v6 = vmov (!%p1197_p12), 0.0  }
  0x38   : > { %s1691_s22 = scalar_lea.vmem %s1792_s1, %s1261_s11  ;;  %376 = vst [vmem:[#allocation2] sm:$0xff] (!%p1197_p12), %v1598_v6  ;;  %377 = vst [vmem:[#allocation2 + $0x8] sm:$0xff] (!%p1197_p12), %v1598_v6 }
  0x39   : > { %378 = vst [vmem:[#allocation2 + $0x10] sm:$0xff] (!%p1197_p12), %v1598_v6  ;;  %379 = vst [vmem:[#allocation2 + $0x18] sm:$0xff] (!%p1197_p12), %v1598_v6 }
  0x3a   : > { %380 = vst [vmem:[#allocation2 + $0x20] sm:$0xff] (!%p1197_p12), %v1598_v6  ;;  %381 = vst [vmem:[#allocation2 + $0x28] sm:$0xff] (!%p1197_p12), %v1598_v6 }
  0x3b   : > { %382 = vst [vmem:[#allocation2 + $0x30] sm:$0xff] (!%p1197_p12), %v1598_v6  ;;  %383 = vst [vmem:[#allocation2 + $0x38] sm:$0xff] (!%p1197_p12), %v1598_v6 }
  0x3d PF: > { %v1410_v7 = vld [vmem:[%s1691_s22 + $0x4] ss:$8 sps:$4 sm:$0xff]   ;;  %v1412_v8 = vld [vmem:[%s1691_s22] ss:$8 sps:$4 sm:$0xff]   ;;  %v1599_v9 = vmov 0   ;;  %p1252_p13 = scmp.ne.s32.totalorder %s1568_s14, 8 }
  0x3e   : > { %805 = vmatprep.mubr.bf16.mxu0 %v1599_v9  ;;  %720 = vmatprep.subr.bf16.mxu1 %v1410_v7  ;;  %v1413_v10 = vld [vmem:[%s1691_s22 + $0x14] ss:$8 sps:$4 sm:$0xff]   ;;  %v1415_v11 = vld [vmem:[%s1691_s22 + $0x10] ss:$8 sps:$4 sm:$0xff]   ;;  %v1416_v12 = vld [vmem:[%s1691_s22 + $0x24] ss:$8 sps:$4 sm:$0xff]  }
  0x3f   : > { %721 = vmatpush1.bf16.msra.mxu1 %v1412_v8  ;;  %v1418_v13 = vld [vmem:[%s1691_s22 + $0x20] ss:$8 sps:$4 sm:$0xff]   ;;  %v1419_v14 = vld [vmem:[%s1691_s22 + $0x34] ss:$8 sps:$4 sm:$0xff]   ;;  %v1421_v15 = vld [vmem:[%s1691_s22 + $0x30] ss:$8 sps:$4 sm:$0xff]  }
  0x40   : > { %722 = vmatprep.subr.bf16.mxu1 %v1413_v10  ;;  %v1434_v16 = vld [vmem:[%s1691_s22 + $0x104] ss:$8 sps:$4 sm:$0xff]   ;;  %v1436_v17 = vld [vmem:[%s1691_s22 + $0x100] ss:$8 sps:$4 sm:$0xff]   ;;  %v1440_v19 = vld [vmem:[%s1691_s22 + $0x114] ss:$8 sps:$4 sm:$0xff]  }
  0x41   : > { %v1422_v18 = vld [vmem:[%s1691_s22 + $0x44] ss:$8 sps:$4 sm:$0xff]   ;;  %773 = vmatprep.subr.bf16.mxu0 %v1434_v16  ;;  %v1442_v20 = vld [vmem:[%s1691_s22 + $0x110] ss:$8 sps:$4 sm:$0xff]   ;;  %v1424_v21 = vld [vmem:[%s1691_s22 + $0x40] ss:$8 sps:$4 sm:$0xff]  }
  0x42   : > { %774 = vmatpush1.bf16.msra.mxu0 %v1436_v17  ;;  %v1425_v22 = vld [vmem:[%s1691_s22 + $0x54] ss:$8 sps:$4 sm:$0xff]   ;;  %v1446_v23 = vld [vmem:[%s1691_s22 + $0x124] ss:$8 sps:$4 sm:$0xff]   ;;  %v1448_v24 = vld [vmem:[%s1691_s22 + $0x120] ss:$8 sps:$4 sm:$0xff]  }
  0x43   : > { %723 = vmatpush1.bf16.msra.mxu1 %v1415_v11  ;;  %775 = vmatprep.subr.bf16.mxu0 %v1440_v19  ;;  %v1427_v25 = vld [vmem:[%s1691_s22 + $0x50] ss:$8 sps:$4 sm:$0xff]   ;;  %v1452_v26 = vld [vmem:[%s1691_s22 + $0x134] ss:$8 sps:$4 sm:$0xff]   ;;  %v1428_v27 = vld [vmem:[%s1691_s22 + $0x64] ss:$8 sps:$4 sm:$0xff]  }
  0x44   : > { %724 = vmatprep.subr.bf16.mxu1 %v1416_v12  ;;  %v1454_v28 = vld [vmem:[%s1691_s22 + $0x130] ss:$8 sps:$4 sm:$0xff]   ;;  %v1430_v29 = vld [vmem:[%s1691_s22 + $0x60] ss:$8 sps:$4 sm:$0xff]   ;;  %v1458_v30 = vld [vmem:[%s1691_s22 + $0x144] ss:$8 sps:$4 sm:$0xff]  }
  0x45   : > { %v1431_v31 = vld [vmem:[%s1691_s22 + $0x74] ss:$8 sps:$4 sm:$0xff]   ;;  %v1460_v32 = vld [vmem:[%s1691_s22 + $0x140] ss:$8 sps:$4 sm:$0xff]   ;;  %v1433_v33 = vld [vmem:[%s1691_s22 + $0x70] ss:$8 sps:$4 sm:$0xff]  }
  0x46   : > { %776 = vmatpush1.bf16.msra.mxu0 %v1442_v20  ;;  %v1464_v34 = vld [vmem:[%s1691_s22 + $0x154] ss:$8 sps:$4 sm:$0xff]   ;;  %v1437_v35 = vld [vmem:[%s1691_s22 + $0x84] ss:$8 sps:$4 sm:$0xff]   ;;  %v1466_v36 = vld [vmem:[%s1691_s22 + $0x150] ss:$8 sps:$4 sm:$0xff]  }
  0x47   : > { %725 = vmatpush1.bf16.msra.mxu1 %v1418_v13  ;;  %777 = vmatprep.subr.bf16.mxu0 %v1446_v23  ;;  %v1439_v37 = vld [vmem:[%s1691_s22 + $0x80] ss:$8 sps:$4 sm:$0xff]   ;;  %v1470_v38 = vld [vmem:[%s1691_s22 + $0x164] ss:$8 sps:$4 sm:$0xff]   ;;  %v1443_v39 = vld [vmem:[%s1691_s22 + $0x94] ss:$8 sps:$4 sm:$0xff]  }
  0x48   : > { %726 = vmatprep.subr.bf16.mxu1 %v1419_v14  ;;  %v1445_v40 = vld [vmem:[%s1691_s22 + $0x90] ss:$8 sps:$4 sm:$0xff]   ;;  %v1472_v41 = vld [vmem:[%s1691_s22 + $0x160] ss:$8 sps:$4 sm:$0xff]   ;;  %v1476_v43 = vld [vmem:[%s1691_s22 + $0x174] ss:$8 sps:$4 sm:$0xff]  }
  0x49   : > { %v1485_v42 = vld [vmem:[%s1693_s23 + $0x4] ss:$12 sps:$4 sm:$0xff]   ;;  %v1482_v48 = vld [vmem:[%s1693_s23 + $0x8] ss:$12 sps:$4 sm:$0xff]   ;;  %v1486_v53 = vld [vmem:[%s1693_s23 + $0x20] ss:$12 sps:$4 sm:$0xff]  }
  0x4a   : > { %778 = vmatpush1.bf16.msra.mxu0 %v1448_v24  ;;  %v1449_v44 = vld [vmem:[%s1691_s22 + $0xa4] ss:$8 sps:$4 sm:$0xff]   ;;  %752 = vmatprep.mubr.bf16.mxu1 %v1485_v42  ;;  %v1478_v45 = vld [vmem:[%s1691_s22 + $0x170] ss:$8 sps:$4 sm:$0xff]   ;;  %v1451_v46 = vld [vmem:[%s1691_s22 + $0xa0] ss:$8 sps:$4 sm:$0xff]  }
  0x4b   : > { %727 = vmatpush1.bf16.msra.mxu1 %v1421_v15  ;;  %779 = vmatprep.subr.bf16.mxu0 %v1452_v26  ;;  %v1455_v47 = vld [vmem:[%s1691_s22 + $0xb4] ss:$8 sps:$4 sm:$0xff]   ;;  %v1457_v49 = vld [vmem:[%s1691_s22 + $0xb0] ss:$8 sps:$4 sm:$0xff]   ;;  %v1461_v50 = vld [vmem:[%s1691_s22 + $0xc4] ss:$8 sps:$4 sm:$0xff]  }
  0x4c   : > { %728 = vmatprep.subr.bf16.mxu1 %v1422_v18  ;;  %v1463_v51 = vld [vmem:[%s1691_s22 + $0xc0] ss:$8 sps:$4 sm:$0xff]   ;;  %v1467_v52 = vld [vmem:[%s1691_s22 + $0xd4] ss:$8 sps:$4 sm:$0xff]   ;;  %v1469_v54 = vld [vmem:[%s1691_s22 + $0xd0] ss:$8 sps:$4 sm:$0xff]  }
  0x4d   : > { %v1473_v55 = vld [vmem:[%s1691_s22 + $0xe4] ss:$8 sps:$4 sm:$0xff]   ;;  %v1475_v56 = vld [vmem:[%s1691_s22 + $0xe0] ss:$8 sps:$4 sm:$0xff]   ;;  %v1479_v57 = vld [vmem:[%s1691_s22 + $0xf4] ss:$8 sps:$4 sm:$0xff]  }
  0x4e   : > { %780 = vmatpush1.bf16.msra.mxu0 %v1454_v28  ;;  %v1481_v58 = vld [vmem:[%s1691_s22 + $0xf0] ss:$8 sps:$4 sm:$0xff]   ;;  %v384_v6 = vld [vmem:[#allocation2] sm:$0xff] }
  0x4f   : > { %729 = vmatpush1.bf16.msra.mxu1 %v1424_v21  ;;  %781 = vmatprep.subr.bf16.mxu0 %v1458_v30  ;;  %v1483_v59 = vld [vmem:[%s1693_s23] ss:$12 sps:$4 sm:$0xff]   ;;  %v1487_v60 = vld [vmem:[%s1693_s23 + $0x1c] ss:$12 sps:$4 sm:$0xff]   ;;  %v1489_v61 = vld [vmem:[%s1693_s23 + $0x18] ss:$12 sps:$4 sm:$0xff]  }
  0x50   : > { %730 = vmatprep.subr.bf16.mxu1 %v1425_v22  ;;  %v386_v12 = vld [vmem:[#allocation2 + $0x10] sm:$0xff]  ;;  %v387_v16 = vld [vmem:[#allocation2 + $0x18] sm:$0xff]  ;;  %v388_v22 = vld [vmem:[#allocation2 + $0x20] sm:$0xff] }
  0x51   : > { %v390_v28 = vld [vmem:[#allocation2 + $0x30] sm:$0xff] }
  0x52   : > { %782 = vmatpush1.bf16.msra.mxu0 %v1460_v32  ;;  %v391_v32 = vld [vmem:[#allocation2 + $0x38] sm:$0xff] }
  0x53   : > { %731 = vmatpush1.bf16.msra.mxu1 %v1427_v25  ;;  %783 = vmatprep.subr.bf16.mxu0 %v1464_v34  ;;  %v389_v25 = vld [vmem:[#allocation2 + $0x28] sm:$0xff] }
  0x54   : > { %732 = vmatprep.subr.bf16.mxu1 %v1428_v27 }
  0x56   : > { %784 = vmatpush1.bf16.msra.mxu0 %v1466_v36 }
  0x57   : > { %733 = vmatpush1.bf16.msra.mxu1 %v1430_v29  ;;  %785 = vmatprep.subr.bf16.mxu0 %v1470_v38  ;;  %v856_v38 = vlaneseq (!%p1252_p13) }
  0x58   : > { %734 = vmatprep.subr.bf16.mxu1 %v1431_v31 }
  0x5a   : > { %786 = vmatpush1.bf16.msra.mxu0 %v1472_v41 }
  0x5b   : > { %735 = vmatpush1.bf16.msra.mxu1 %v1433_v33  ;;  %787 = vmatprep.subr.bf16.mxu0 %v1476_v43 }
  0x5c   : > { %736 = vmatprep.subr.bf16.mxu1 %v1437_v35 }
  0x5e   : > { %788 = vmatpush1.bf16.msra.mxu0 %v1478_v45 }
  0x5f   : > { %737 = vmatpush1.bf16.msra.mxu1 %v1439_v37 }
  0x60   : > { %738 = vmatprep.subr.bf16.mxu1 %v1443_v39  ;;  %v857_v39 = vshrl.u32 (!%p1252_p13), %v856_v38, 7 }
  0x61   : > { %806 = vmatmul.mubr.bf16.vlgmr.msra.gmra.mrb[0].mxu0 %v1482_v48 }
  0x62   : > { %815 = vmatprep.mubr.bf16.mxu0 %v1599_v9  ;;  %v385_v9 = vld [vmem:[#allocation2 + $0x8] sm:$0xff]  ;;  %v858_v42 = vsub.s32 (!%p1252_p13), 0, %v857_v39 }
  0x63   : > { %739 = vmatpush1.bf16.msra.mxu1 %v1445_v40  ;;  %v854_v40 = vld [vmem:[%s1793_s2] sm:$0x3] (!%p1252_p13) }
  0x64   : > { %740 = vmatprep.subr.bf16.mxu1 %v1449_v44  ;;  %v862_v44 = vsub.s32 (!%p1252_p13), 1, %v857_v39  ;;  %v859_v48 = vrot.slane (!%p1252_p13), %v854_v40, %v858_v42 }
  0x67   : > { %741 = vmatpush1.bf16.msra.mxu1 %v1451_v46 }
  0x68   : > { %742 = vmatprep.subr.bf16.mxu1 %v1455_v47 }
  0x69   : > { %816 = vmatmul.mubr.bf16.gmra.mrb[4].mxu0 %v1486_v53 }
  0x6b   : > { %743 = vmatpush1.bf16.msra.mxu1 %v1457_v49  ;;  %v863_v49 = vrot.slane (!%p1252_p13), %v854_v40, %v862_v44 }
  0x6c   : > { %744 = vmatprep.subr.bf16.mxu1 %v1461_v50 }
  0x6f   : > { %745 = vmatpush1.bf16.msra.mxu1 %v1463_v51 }
  0x70   : > { %746 = vmatprep.subr.bf16.mxu1 %v1467_v52 }
  0x73   : > { %747 = vmatpush1.bf16.msra.mxu1 %v1469_v54 }
  0x74   : > { %748 = vmatprep.subr.bf16.mxu1 %v1473_v55 }
  0x77   : > { %749 = vmatpush1.bf16.msra.mxu1 %v1475_v56 }
  0x78   : > { %750 = vmatprep.subr.bf16.mxu1 %v1479_v57 }
  0x7b   : > { %751 = vmatpush1.bf16.msra.mxu1 %v1481_v58 }
  0x7e   : > { %753 = vmatmul.mubr.bf16.vlgmr.msra.gmra.mrb[0].mxu1 %v1483_v59 }
  0x7f   : > { %762 = vmatprep.mubr.bf16.mxu1 %v1487_v60 }
  0x86   : > { %763 = vmatmul.mubr.bf16.gmra.mrb[4].mxu1 %v1489_v61 }
 0x134   : > { %v807_v62 = vpop.f32.mrb[0].mxu0 }
 0x135   : > { %v809_v63 = vpop.f32.mrb[1].mxu0 }
 0x136   : > { %v811_v0 = vpop.f32.mrb[2].mxu0 }
 0x137   : > { %v813_v1 = vpop.f32.mrb[3].mxu0 }
 0x13c   : > { %v817_v2 = vpop.f32.mrb[4].mxu0 }
 0x13d   : > { %v819_v3 = vpop.f32.mrb[5].mxu0 }
 0x13e   : > { %v821_v4 = vpop.f32.mrb[6].mxu0 }
 0x13f   : > { %v823_v5 = vpop.f32.mrb[7].mxu0 }
 0x151   : > { %v754_v7 = vpop.f32.mrb[0].mxu1 }
 0x152   : > { %v808_v8 = vadd.f32 %v807_v62, %v754_v7  ;;  %v756_v10 = vpop.f32.mrb[1].mxu1 }
 0x153   : > { %v810_v11 = vadd.f32 %v809_v63, %v756_v10  ;;  %v758_v13 = vpop.f32.mrb[2].mxu1 }
 0x154   : > { %v826_v14 = vadd.f32 %v808_v8, %v384_v6  ;;  %v812_v15 = vadd.f32 %v811_v0, %v758_v13  ;;  %v760_v17 = vpop.f32.mrb[3].mxu1 }
 0x155   : > { %v827_v18 = vadd.f32 %v810_v11, %v385_v9  ;;  %v814_v19 = vadd.f32 %v813_v1, %v760_v17 }
 0x156   : > { %834 = vst [vmem:[#allocation2] sm:$0xff] %v826_v14  ;;  %v828_v20 = vadd.f32 %v812_v15, %v386_v12 }
 0x157   : > { %835 = vst [vmem:[#allocation2 + $0x8] sm:$0xff] %v827_v18  ;;  %v829_v21 = vadd.f32 %v814_v19, %v387_v16 }
 0x158   : > { %836 = vst [vmem:[#allocation2 + $0x10] sm:$0xff] %v828_v20 }
 0x159   : > { %837 = vst [vmem:[#allocation2 + $0x18] sm:$0xff] %v829_v21  ;;  %v764_v23 = vpop.f32.mrb[4].mxu1 }
 0x15a   : > { %v818_v24 = vadd.f32 %v817_v2, %v764_v23  ;;  %v766_v26 = vpop.f32.mrb[5].mxu1 }
 0x15b   : > { %v820_v27 = vadd.f32 %v819_v3, %v766_v26  ;;  %v768_v29 = vpop.f32.mrb[6].mxu1  ;;  %845 = sbr.rel (%p1252_p13) target bundleno = 364 (0x16c), region = 80 }
 0x15c   : > { %v830_v30 = vadd.f32 %v818_v24, %v388_v22  ;;  %v822_v31 = vadd.f32 %v821_v4, %v768_v29  ;;  %v770_v33 = vpop.f32.mrb[7].mxu1 }
 0x15d   : > { %v831_v34 = vadd.f32 %v820_v27, %v389_v25  ;;  %v824_v35 = vadd.f32 %v823_v5, %v770_v33  ;;  %v846_v41 = vld [vmem:[#allocation2] sm:$0xff] (!%p1252_p13) }
 0x15e   : > { %838 = vst [vmem:[#allocation2 + $0x20] sm:$0xff] %v830_v30  ;;  %v832_v36 = vadd.f32 %v822_v31, %v390_v28  ;;  %v847_v43 = vld [vmem:[#allocation2 + $0x8] sm:$0xff] (!%p1252_p13)  ;;  %v866_v51 = vadd.f32 (!%p1252_p13), %v859_v48, %v846_v41 }
 0x15f   : > { %839 = vst [vmem:[#allocation2 + $0x28] sm:$0xff] %v831_v34  ;;  %v833_v37 = vadd.f32 %v824_v35, %v391_v32  ;;  %v848_v45 = vld [vmem:[#allocation2 + $0x10] sm:$0xff] (!%p1252_p13)  ;;  %v867_v52 = vadd.f32 (!%p1252_p13), %v863_v49, %v847_v43 }
 0x160   : > { %840 = vst [vmem:[#allocation2 + $0x30] sm:$0xff] %v832_v36  ;;  %v849_v46 = vld [vmem:[#allocation2 + $0x18] sm:$0xff] (!%p1252_p13)  ;;  %v868_v53 = vadd.f32 (!%p1252_p13), %v859_v48, %v848_v45  ;;  %v874_v57 = vmax.f32 (!%p1252_p13), %v866_v51, 0.0 }
 0x161   : > { %841 = vst [vmem:[#allocation2 + $0x38] sm:$0xff] %v833_v37  ;;  %v869_v54 = vadd.f32 (!%p1252_p13), %v863_v49, %v849_v46  ;;  %v875_v58 = vmax.f32 (!%p1252_p13), %v867_v52, 0.0 }
 0x162   : > { %v876_v59 = vmax.f32 %v868_v53, 0.0  ;;  %882 = vst [vmem:[#allocation4] sm:$0xff] %v874_v57 }
 0x163   : > { %v877_v60 = vmax.f32 %v869_v54, 0.0  ;;  %883 = vst [vmem:[#allocation4 + $0x8] sm:$0xff] %v875_v58 }
 0x164   : > { %884 = vst [vmem:[#allocation4 + $0x10] sm:$0xff] %v876_v59 }
 0x165   : > { %v850_v47 = vld [vmem:[#allocation2 + $0x20] sm:$0xff]  ;;  %885 = vst [vmem:[#allocation4 + $0x18] sm:$0xff] %v877_v60 }
 0x166   : > { %v851_v50 = vld [vmem:[#allocation2 + $0x28] sm:$0xff]  ;;  %v870_v55 = vadd.f32 %v859_v48, %v850_v47 }
 0x167   : > { %v871_v56 = vadd.f32 %v863_v49, %v851_v50 }
 0x168   : > { %v878_v61 = vmax.f32 %v870_v55, 0.0 }
 0x169   : > { %v879_v62 = vmax.f32 %v871_v56, 0.0 }
 0x16a   : > { %886 = vst [vmem:[#allocation4 + $0x20] sm:$0xff] %v878_v61 }
 0x16b   : > { %887 = vst [vmem:[#allocation4 + $0x28] sm:$0xff] %v879_v62 }
 0x16c PF: > { %p1253_p0 = scmp.ne.s32.totalorder %s1177_s17, 8 }
 0x16d   : > { %s1594_s14 = smov (!%p1253_p0), 0  }
 0x16e   : > { %892 = sbr.rel (%p1253_p0) target bundleno = 383 (0x17f), region = 84 }
 0x175 LB: >> { %v919_v63 = vld [vmem:[#allocation4] sm:$0xff]  ;;  %v921_v0 = vld [vmem:[#allocation4 + $0x10] sm:$0xff]  ;;  %v925_v2 = vld [vmem:[#allocation4 + $0x8] sm:$0xff]  ;;  %s913_s14 = sadd.s32 1, %s1596_s14   ;;  %s1596_s14 = sphi %s1594_s14, %s913_s14  }
 0x176   : >> { %v923_v1 = vld [vmem:[#allocation4 + $0x20] sm:$0xff]  ;;  %920 = vst [vmem:[%s1794_s3] sm:$0xff] %v919_v63  ;;  %922 = vst [vmem:[%s1794_s3 + $0x10] sm:$0xff] %v921_v0  ;;  %v927_v3 = vld [vmem:[#allocation4 + $0x18] sm:$0xff]  ;;  %p912_p1 = scmp.ge.s32.totalorder %s913_s14, 1 }
 0x177   : >> { %924 = vst [vmem:[%s1794_s3 + $0x20] sm:$0xff] %v923_v1  ;;  %v929_v4 = vld [vmem:[#allocation4 + $0x28] sm:$0xff]  ;;  %926 = vst [vmem:[%s1794_s3 + $0x8] sm:$0xff] %v925_v2 }
 0x178   : >> { %928 = vst [vmem:[%s1794_s3 + $0x18] sm:$0xff] %v927_v3  ;;  %930 = vst [vmem:[%s1794_s3 + $0x28] sm:$0xff] %v929_v4  ;;  %915 = sbr.rel (!%p912_p1) target bundleno = 373 (0x175), region = 204 }
 0x17f PF: > { %s13_s16 = sadd.s32 1, %s1576_s16   ;;  %s1795_s12 = smov %s1564_s13 }
 0x180   : > { %p10_p2 = scmp.ge.s32.totalorder %s13_s16, 11   ;;  %s1796_s13 = smov %s1656_s21 }
 0x181   : > { %s1797_s14 = smov %s1572_s15  ;;  %s1798_s15 = smov %s1800_s18 }
 0x182   :  { %12 = sbr.rel (!%p10_p2) target bundleno = 3 (0x3), region = 226 }

</bundles_post_ra>
